<compile_context>
chip_gen: v5e
topology: v5e:2x2
jax: 0.10.0
libtpu: 0.0.40
codegen_flags: <defaults>
</compile_context>

<pallas_src>
import functools

import jax
import jax.numpy as jnp
from jax.experimental import pallas as pl
from jax.experimental.pallas import tpu as pltpu


# --------------------------------------------------------------------------
# helpers
# --------------------------------------------------------------------------

def _round_up(x, m):
    return (x + m - 1) // m * m


def _row_tile(m, max_tm=256):
    """Row tile + padded row count.  Small M uses the full dim (full-dim
    blocks are exempt from the (8,128) divisibility rule) -> no padding."""
    if m <= max_tm:
        return m, m
    return max_tm, _round_up(m, max_tm)


def _pad_rows(x, m_pad):
    if x.shape[0] == m_pad:
        return x
    return jnp.pad(x, ((0, m_pad - x.shape[0]), (0, 0)))


def _pick_tn(n, max_tn=256):
    if n % max_tn == 0:
        return max_tn
    if n % 128 == 0:
        return 128
    return n


def _layernorm_f32(x, g, b, eps=1e-5):
    mu = jnp.mean(x, axis=-1, keepdims=True)
    var = jnp.mean(jnp.square(x - mu), axis=-1, keepdims=True)
    return (x - mu) * jax.lax.rsqrt(var + eps) * g + b


# --------------------------------------------------------------------------
# Pallas kernels
# --------------------------------------------------------------------------

def _matmul_kernel(x_ref, w_ref, b_ref, *rest, activation, has_residual):
    """Tiled o = act(x @ w + b) [+ residual]; f32 accumulator over K tiles."""
    if has_residual:
        r_ref, o_ref, acc_ref = rest
    else:
        o_ref, acc_ref = rest

    k = pl.program_id(2)

    @pl.when(k == 0)
    def _():
        acc_ref[...] = jnp.zeros_like(acc_ref)

    acc_ref[...] += jnp.dot(x_ref[...].astype(jnp.bfloat16),
                            w_ref[...].astype(jnp.bfloat16),
                            preferred_element_type=jnp.float32)

    @pl.when(k == pl.num_programs(2) - 1)
    def _():
        h = acc_ref[...] + b_ref[...].astype(jnp.float32)
        if activation == "quickgelu":
            h = h * jax.nn.sigmoid(1.702 * h)
        if has_residual:
            h = h + r_ref[...].astype(jnp.float32)
        o_ref[...] = h.astype(o_ref.dtype)


def _ln_matmul_kernel(x_ref, g_ref, bt_ref, w_ref, b_ref, o_ref, *, activation):
    """o = act(LayerNorm(x) @ w + b). K (= model width) kept un-tiled."""
    x = x_ref[...].astype(jnp.float32)
    xn = _layernorm_f32(x, g_ref[...].astype(jnp.float32),
                        bt_ref[...].astype(jnp.float32))
    h = jnp.dot(xn.astype(jnp.bfloat16), w_ref[...].astype(jnp.bfloat16),
                preferred_element_type=jnp.float32)
    h = h + b_ref[...].astype(jnp.float32)
    if activation == "quickgelu":
        h = h * jax.nn.sigmoid(1.702 * h)
    o_ref[...] = h.astype(o_ref.dtype)


def _layernorm_kernel(x_ref, g_ref, b_ref, o_ref):
    x = x_ref[...].astype(jnp.float32)
    y = _layernorm_f32(x, g_ref[...].astype(jnp.float32),
                       b_ref[...].astype(jnp.float32))
    o_ref[...] = y.astype(o_ref.dtype)


def _attn_block_kernel(x_ref, g_ref, b1_ref, win_ref, bin_ref,
                       wout_ref, bout_ref, o_ref, *, heads, scale):
    """Full pre-LN attention branch for one batch element:
       o = x + (MHA(LN1(x)) @ W_out + b_out).  Head split is done in-VMEM,
       the fused QKV and the attention output never touch HBM."""
    D = x_ref.shape[2]
    Dh = D // heads

    x = x_ref[0].astype(jnp.float32)                                   # (S, D)
    xn = _layernorm_f32(x, g_ref[...].astype(jnp.float32),
                        b1_ref[...].astype(jnp.float32))
    qkv = jnp.dot(xn.astype(jnp.bfloat16), win_ref[...].astype(jnp.bfloat16),
                  preferred_element_type=jnp.float32)
    qkv = qkv + bin_ref[...].astype(jnp.float32)                       # (S, 3D)

    q = qkv[:, :D] * scale          # scale folded into q
    k = qkv[:, D:2 * D]
    v = qkv[:, 2 * D:]

    dn = (((1,), (1,)), ((), ()))   # contract last dims (no explicit k.T)
    outs = []
    for h in range(heads):
        sl = slice(h * Dh, (h + 1) * Dh)
        qh = q[:, sl].astype(jnp.bfloat16)
        kh = k[:, sl].astype(jnp.bfloat16)
        vh = v[:, sl].astype(jnp.bfloat16)
        s = jax.lax.dot_general(qh, kh, dn,
                                preferred_element_type=jnp.float32)    # (S, S)
        s = s - jnp.max(s, axis=-1, keepdims=True)
        p = jnp.exp(s)
        p = p * pl.reciprocal(jnp.sum(p, axis=-1, keepdims=True), approx=True)
        outs.append(jnp.dot(p.astype(jnp.bfloat16), vh,
                            preferred_element_type=jnp.float32))       # (S, Dh)
    attn = jnp.concatenate(outs, axis=-1)                              # (S, D)

    out = jnp.dot(attn.astype(jnp.bfloat16), wout_ref[...].astype(jnp.bfloat16),
                  preferred_element_type=jnp.float32)
    out = out + bout_ref[...].astype(jnp.float32) + x                  # residual
    o_ref[0] = out.astype(o_ref.dtype)


def _mlp_block_kernel(x_ref, g_ref, b2_ref, wfc_ref, bfc_ref,
                      wpr_ref, bpr_ref, o_ref, acc_ref):
    """Full pre-LN MLP branch: o = x + proj(QuickGELU(fc(LN2(x)))).
       The hidden dim is the (last) reduction grid axis; f32 accumulator."""
    j = pl.program_id(1)

    @pl.when(j == 0)
    def _():
        acc_ref[...] = jnp.zeros_like(acc_ref)

    x = x_ref[...].astype(jnp.float32)
    xn = _layernorm_f32(x, g_ref[...].astype(jnp.float32),
                        b2_ref[...].astype(jnp.float32))
    h = jnp.dot(xn.astype(jnp.bfloat16), wfc_ref[...].astype(jnp.bfloat16),
                preferred_element_type=jnp.float32)
    h = h + bfc_ref[...].astype(jnp.float32)
    h = h * jax.nn.sigmoid(1.702 * h)                                  # QuickGELU
    acc_ref[...] += jnp.dot(h.astype(jnp.bfloat16),
                            wpr_ref[...].astype(jnp.bfloat16),
                            preferred_element_type=jnp.float32)

    @pl.when(j == pl.num_programs(1) - 1)
    def _():
        out = acc_ref[...] + bpr_ref[...].astype(jnp.float32) + x      # residual
        o_ref[...] = out.astype(o_ref.dtype)


# --------------------------------------------------------------------------
# Pallas wrappers
# --------------------------------------------------------------------------

def pallas_matmul(x, w, b, *, residual=None, activation=None,
                  out_dtype=jnp.bfloat16, max_tm=256, max_tn=256, max_tk=512):
    """Tiled (M,K)@(K,N)+b with optional fused activation / residual add."""
    M, K = x.shape
    _, N = w.shape
    tm, m_pad = _row_tile(M, max_tm)
    tn = _pick_tn(N, max_tn)
    tk = K if K <= max_tk else max_tk
    assert K % tk == 0 and N % tn == 0

    x_p = _pad_rows(x, m_pad)
    args = [x_p, w, b.reshape(1, N)]
    in_specs = [
        pl.BlockSpec((tm, tk), lambda i, j, k: (i, k)),
        pl.BlockSpec((tk, tn), lambda i, j, k: (k, j)),
        pl.BlockSpec((1, tn), lambda i, j, k: (0, j)),
    ]
    if residual is not None:
        args.append(_pad_rows(residual, m_pad))
        in_specs.append(pl.BlockSpec((tm, tn), lambda i, j, k: (i, j)))

    out = pl.pallas_call(
        functools.partial(_matmul_kernel, activation=activation,
                          has_residual=residual is not None),
        out_shape=jax.ShapeDtypeStruct((m_pad, N), out_dtype),
        grid=(m_pad // tm, N // tn, K // tk),
        in_specs=in_specs,
        out_specs=pl.BlockSpec((tm, tn), lambda i, j, k: (i, j)),
        scratch_shapes=[pltpu.VMEM((tm, tn), jnp.float32)],
        compiler_params=pltpu.CompilerParams(
            dimension_semantics=("parallel", "parallel", "arbitrary")),
    )(*args)
    return out[:M] if m_pad != M else out


def pallas_ln_matmul(x, gamma, beta, w, b, *, activation=None,
                     out_dtype=jnp.bfloat16, max_tm=256, max_tn=256):
    """Fused LayerNorm(x) @ w + b (+ activation). K (= model width) un-tiled."""
    M, K = x.shape
    _, N = w.shape
    tm, m_pad = _row_tile(M, max_tm)
    tn = _pick_tn(N, max_tn)
    assert N % tn == 0

    x_p = _pad_rows(x, m_pad)
    out = pl.pallas_call(
        functools.partial(_ln_matmul_kernel, activation=activation),
        out_shape=jax.ShapeDtypeStruct((m_pad, N), out_dtype),
        grid=(m_pad // tm, N // tn),
        in_specs=[
            pl.BlockSpec((tm, K), lambda i, j: (i, 0)),
            pl.BlockSpec((1, K), lambda i, j: (0, 0)),
            pl.BlockSpec((1, K), lambda i, j: (0, 0)),
            pl.BlockSpec((K, tn), lambda i, j: (0, j)),
            pl.BlockSpec((1, tn), lambda i, j: (0, j)),
        ],
        out_specs=pl.BlockSpec((tm, tn), lambda i, j: (i, j)),
        compiler_params=pltpu.CompilerParams(
            dimension_semantics=("parallel", "parallel")),
    )(x_p, gamma.reshape(1, K), beta.reshape(1, K), w, b.reshape(1, N))
    return out[:M] if m_pad != M else out


def pallas_layernorm(x, gamma, beta, *, out_dtype=jnp.bfloat16, max_tm=256):
    M, D = x.shape
    tm, m_pad = _row_tile(M, max_tm)
    x_p = _pad_rows(x, m_pad)
    out = pl.pallas_call(
        _layernorm_kernel,
        out_shape=jax.ShapeDtypeStruct((m_pad, D), out_dtype),
        grid=(m_pad // tm,),
        in_specs=[pl.BlockSpec((tm, D), lambda i: (i, 0)),
                  pl.BlockSpec((1, D), lambda i: (0, 0)),
                  pl.BlockSpec((1, D), lambda i: (0, 0))],
        out_specs=pl.BlockSpec((tm, D), lambda i: (i, 0)),
        compiler_params=pltpu.CompilerParams(dimension_semantics=("parallel",)),
    )(x_p, gamma.reshape(1, D), beta.reshape(1, D))
    return out[:M] if m_pad != M else out


def pallas_attn_block(x, gamma, beta, w_in, b_in, w_out, b_out, *, heads,
                      out_dtype=jnp.bfloat16):
    """x: (B, S, D).  Whole attention branch (LN1/QKV/MHA/out-proj/residual)
    in one kernel, gridded over the batch axis.  Weights use a constant block
    index so they stay resident in VMEM across grid steps."""
    B, S, D = x.shape
    scale = float(D // heads) ** -0.5
    return pl.pallas_call(
        functools.partial(_attn_block_kernel, heads=heads, scale=scale),
        out_shape=jax.ShapeDtypeStruct((B, S, D), out_dtype),
        grid=(B,),
        in_specs=[
            pl.BlockSpec((1, S, D), lambda b: (b, 0, 0)),
            pl.BlockSpec((1, D), lambda b: (0, 0)),
            pl.BlockSpec((1, D), lambda b: (0, 0)),
            pl.BlockSpec((D, 3 * D), lambda b: (0, 0)),
            pl.BlockSpec((1, 3 * D), lambda b: (0, 0)),
            pl.BlockSpec((D, D), lambda b: (0, 0)),
            pl.BlockSpec((1, D), lambda b: (0, 0)),
        ],
        out_specs=pl.BlockSpec((1, S, D), lambda b: (b, 0, 0)),
        compiler_params=pltpu.CompilerParams(dimension_semantics=("parallel",)),
    )(x, gamma.reshape(1, D), beta.reshape(1, D),
      w_in, b_in.reshape(1, 3 * D), w_out, b_out.reshape(1, D))


def pallas_mlp_block(x, gamma, beta, w_fc, b_fc, w_pr, b_pr, *,
                     out_dtype=jnp.bfloat16, max_tm=256, max_th=512):
    """x: (M, D).  Whole MLP branch (LN2/fc/QuickGELU/proj/residual) in one
    kernel; the hidden dim is tiled as a reduction axis so the (M, 4D) hidden
    activation never goes to HBM."""
    M, D = x.shape
    H = w_fc.shape[1]
    tm, m_pad = _row_tile(M, max_tm)
    th = H if H <= max_th else max_th
    assert H % th == 0

    x_p = _pad_rows(x, m_pad)
    out = pl.pallas_call(
        _mlp_block_kernel,
        out_shape=jax.ShapeDtypeStruct((m_pad, D), out_dtype),
        grid=(m_pad // tm, H // th),
        in_specs=[
            pl.BlockSpec((tm, D), lambda i, j: (i, 0)),
            pl.BlockSpec((1, D), lambda i, j: (0, 0)),
            pl.BlockSpec((1, D), lambda i, j: (0, 0)),
            pl.BlockSpec((D, th), lambda i, j: (0, j)),
            pl.BlockSpec((1, th), lambda i, j: (0, j)),
            pl.BlockSpec((th, D), lambda i, j: (j, 0)),
            pl.BlockSpec((1, D), lambda i, j: (0, 0)),
        ],
        out_specs=pl.BlockSpec((tm, D), lambda i, j: (i, 0)),
        scratch_shapes=[pltpu.VMEM((tm, D), jnp.float32)],
        compiler_params=pltpu.CompilerParams(
            dimension_semantics=("parallel", "arbitrary")),
    )(x_p, gamma.reshape(1, D), beta.reshape(1, D),
      w_fc, b_fc.reshape(1, H), w_pr, b_pr.reshape(1, D))
    return out[:M] if m_pad != M else out


# --------------------------------------------------------------------------
# CLIP image encoder (ViT) built from the kernels above
# --------------------------------------------------------------------------

def init_params(key, *, in_ch, patch, width, layers, heads, image_size, out_dim):
    del heads
    grid = image_size // patch
    seq = grid * grid + 1
    ks = iter(jax.random.split(key, 8 + layers * 8))
    s = 0.02
    wdt = jnp.bfloat16  # weights stored bf16 (MXU-native, half the DMA bytes)

    def nrm(shape, dtype=wdt):
        return (jax.random.normal(next(ks), shape, dtype=jnp.float32) * s).astype(dtype)

    params = {
        # conv1 weight (width, C, p, p) pre-flattened/transposed for x @ w
        "patch_w": nrm((width, in_ch, patch, patch), jnp.float32)
                   .reshape(width, -1).T.astype(wdt),
        "cls": nrm((width,)),
        "pos": nrm((seq, width)),
        "ln_pre_g": jnp.ones((width,), jnp.float32),
        "ln_pre_b": jnp.zeros((width,), jnp.float32),
        "ln_post_g": jnp.ones((width,), jnp.float32),
        "ln_post_b": jnp.zeros((width,), jnp.float32),
        "proj": nrm((width, out_dim)),
        "blocks": [],
    }
    for _ in range(layers):
        blk = {
            "ln1_g": jnp.ones((width,), jnp.float32),
            "ln1_b": jnp.zeros((width,), jnp.float32),
            "in_w": nrm((3 * width, width), jnp.float32).T.astype(wdt),   # (D, 3D)
            "in_b": nrm((3 * width,)),
            "out_w": nrm((width, width), jnp.float32).T.astype(wdt),      # (D, D)
            "out_b": nrm((width,)),
            "ln2_g": jnp.ones((width,), jnp.float32),
            "ln2_b": jnp.zeros((width,), jnp.float32),
            "fc_w": nrm((4 * width, width), jnp.float32).T.astype(wdt),   # (D, 4D)
            "fc_b": nrm((4 * width,)),
            "pr_w": nrm((width, 4 * width), jnp.float32).T.astype(wdt),   # (4D, D)
            "pr_b": nrm((width,)),
        }
        params["blocks"].append(blk)
    return params


def residual_block(x, blk, *, B, S, D, heads):
    # x: (B*S, D) bf16
    # attention branch: single fused kernel per batch element
    x3 = pallas_attn_block(x.reshape(B, S, D),
                           blk["ln1_g"], blk["ln1_b"],
                           blk["in_w"], blk["in_b"],
                           blk["out_w"], blk["out_b"], heads=heads)
    x = x3.reshape(B * S, D)
    # MLP branch: single fused kernel (hidden dim as reduction axis)
    x = pallas_mlp_block(x, blk["ln2_g"], blk["ln2_b"],
                         blk["fc_w"], blk["fc_b"],
                         blk["pr_w"], blk["pr_b"])
    return x


def encode_image(params, image, *, patch, heads):
    """ImageCLIP.forward == model.encode_image(image). image: (B, C, H, W)."""
    B, C, H, W = image.shape
    gh, gw = H // patch, W // patch
    width = params["patch_w"].shape[1]

    # conv1 (kernel=stride=patch, no bias) == patch-extract + matmul
    # TODO(synk): patch extraction reshape/transpose stays in XLA (pure layout).
    patches = image.reshape(B, C, gh, patch, gw, patch)
    patches = patches.transpose(0, 2, 4, 1, 3, 5).reshape(B * gh * gw,
                                                          C * patch * patch)
    zero_b = jnp.zeros((width,), jnp.float32)
    tok = pallas_matmul(patches, params["patch_w"], zero_b)
    tok = tok.reshape(B, gh * gw, width)

    # class token + positional embedding (tiny glue, kept in XLA)
    cls = jnp.broadcast_to(params["cls"].reshape(1, 1, width).astype(tok.dtype),
                           (B, 1, width))
    x = jnp.concatenate([cls, tok], axis=1)           # (B, S, D)
    x = x + params["pos"][None].astype(tok.dtype)
    S = x.shape[1]
    x = x.reshape(B * S, width)

    # ln_pre
    x = pallas_layernorm(x, params["ln_pre_g"], params["ln_pre_b"])

    # transformer blocks
    for blk in params["blocks"]:
        x = residual_block(x, blk, B=B, S=S, D=width, heads=heads)

    # ln_post fused with the final projection, class-token rows only
    cls_rows = x.reshape(B, S, width)[:, 0, :]
    out_dim = params["proj"].shape[1]
    zero_pb = jnp.zeros((out_dim,), jnp.float32)
    return pallas_ln_matmul(cls_rows, params["ln_post_g"], params["ln_post_b"],
                            params["proj"], zero_pb,
                            out_dtype=jnp.float32)     # (B, out_dim)


# --------------------------------------------------------------------------
# main
# --------------------------------------------------------------------------

if __name__ == "__main__":
    # small but lane-dense config: image 16x16, 3 channels, patch 4 -> 4x4 grid,
    # S = 17, width = 128 (Dh = 64), out_dim = 128 (all last dims 128-aligned).
    B, C, IMG, PATCH = 2, 3, 16, 4
    WIDTH, LAYERS, HEADS, OUT_DIM = 128, 2, 2, 128

    key = jax.random.PRNGKey(0)
    k_img, k_par = jax.random.split(key)

    image = jax.random.normal(k_img, (B, C, IMG, IMG), dtype=jnp.float32)
    params = init_params(k_par, in_ch=C, patch=PATCH, width=WIDTH,
                         layers=LAYERS, heads=HEADS, image_size=IMG,
                         out_dim=OUT_DIM)

    fwd = jax.jit(lambda p, img: encode_image(p, img, patch=PATCH, heads=HEADS))
    out = fwd(params, image)
    out = jax.block_until_ready(out)

    assert out.shape == (B, OUT_DIM), out.shape
    assert bool(jnp.all(jnp.isfinite(out)))
    print("KERNEL_OK")
</pallas_src>

<mosaic_0001>
module attributes {stable_mosaic.version = 11 : i64} {
  func.func @_matmul_kernel(%arg0: i32, %arg1: i32, %arg2: i32, %arg3: memref<32x48xf32, #tpu.memory_space<vmem>>, %arg4: memref<48x128xbf16, #tpu.memory_space<vmem>>, %arg5: memref<1x128xf32, #tpu.memory_space<vmem>>, %arg6: memref<32x128xbf16, #tpu.memory_space<vmem>>, %arg7: memref<32x128xf32, #tpu.memory_space<vmem>>) attributes {dimension_semantics = [#tpu.dimension_semantics<parallel>, #tpu.dimension_semantics<parallel>, #tpu.dimension_semantics<arbitrary>], iteration_bounds = array<i64: 1, 1, 1>, scalar_prefetch = 0 : i64, scratch_operands = 1 : i64, tpu.core_type = #tpu.core_type<tc>, window_params = [{transform_indices = @transform_0, window_bounds = array<i64: 32, 48>}, {transform_indices = @transform_1, window_bounds = array<i64: 48, 128>}, {transform_indices = @transform_2, window_bounds = array<i64: 1, 128>}, {transform_indices = @transform_3, window_bounds = array<i64: 32, 128>}]} {
    %c0_i32 = arith.constant 0 : i32
    %0 = arith.cmpi eq, %arg2, %c0_i32 : i32
    %1 = arith.extui %0 : i1 to i32
    %c0_i32_0 = arith.constant 0 : i32
    %2 = arith.cmpi ne, %1, %c0_i32_0 : i32
    scf.if %2 {
      %cst_10 = arith.constant 0.000000e+00 : f32
      %13 = vector.broadcast %cst_10 : f32 to vector<32x128xf32>
      %c0_11 = arith.constant 0 : index
      %c0_12 = arith.constant 0 : index
      %14 = vector.load %arg7[%c0_11, %c0_12] : memref<32x128xf32, #tpu.memory_space<vmem>>, vector<32x128xf32>
      tpu.vector_store %arg7[%c0_11, %c0_12], %13 {strides = array<i32>} : memref<32x128xf32, #tpu.memory_space<vmem>>, vector<32x128xf32>,
    } else {
    }
    %c0 = arith.constant 0 : index
    %c0_1 = arith.constant 0 : index
    %3 = vector.load %arg7[%c0, %c0_1] : memref<32x128xf32, #tpu.memory_space<vmem>>, vector<32x128xf32>
    %c0_2 = arith.constant 0 : index
    %c0_3 = arith.constant 0 : index
    %4 = vector.load %arg3[%c0_2, %c0_3] : memref<32x48xf32, #tpu.memory_space<vmem>>, vector<32x48xf32>
    %5 = arith.truncf %4 : vector<32x48xf32> to vector<32x48xbf16>
    %c0_4 = arith.constant 0 : index
    %c0_5 = arith.constant 0 : index
    %6 = vector.load %arg4[%c0_4, %c0_5] : memref<48x128xbf16, #tpu.memory_space<vmem>>, vector<48x128xbf16>
    %cst = arith.constant dense<0.000000e+00> : vector<32x128xf32>
    %7 = tpu.matmul %5, %6, %cst {dimension_numbers = #tpu.dot_dimension_numbers<[1], [0], [0], [1], [0, 0, 1, 1], [], []>} : vector<32x48xbf16>, vector<48x128xbf16>, vector<32x128xf32> -> vector<32x128xf32>
    %8 = arith.addf %3, %7 : vector<32x128xf32>
    %c0_6 = arith.constant 0 : index
    %c0_7 = arith.constant 0 : index
    %9 = vector.load %arg7[%c0_6, %c0_7] : memref<32x128xf32, #tpu.memory_space<vmem>>, vector<32x128xf32>
    tpu.vector_store %arg7[%c0_6, %c0_7], %8 {strides = array<i32>} : memref<32x128xf32, #tpu.memory_space<vmem>>, vector<32x128xf32>,
    %c0_i32_8 = arith.constant 0 : i32
    %10 = arith.cmpi eq, %arg2, %c0_i32_8 : i32
    %11 = arith.extui %10 : i1 to i32
    %c0_i32_9 = arith.constant 0 : i32
    %12 = arith.cmpi ne, %11, %c0_i32_9 : i32
    scf.if %12 {
      %c0_10 = arith.constant 0 : index
      %c0_11 = arith.constant 0 : index
      %13 = vector.load %arg7[%c0_10, %c0_11] : memref<32x128xf32, #tpu.memory_space<vmem>>, vector<32x128xf32>
      %c0_12 = arith.constant 0 : index
      %c0_13 = arith.constant 0 : index
      %14 = vector.load %arg5[%c0_12, %c0_13] : memref<1x128xf32, #tpu.memory_space<vmem>>, vector<1x128xf32>
      %15 = vector.broadcast %14 : vector<1x128xf32> to vector<32x128xf32>
      %16 = arith.addf %13, %15 : vector<32x128xf32>
      %17 = arith.truncf %16 : vector<32x128xf32> to vector<32x128xbf16>
      %c0_14 = arith.constant 0 : index
      %c0_15 = arith.constant 0 : index
      %18 = vector.load %arg6[%c0_14, %c0_15] : memref<32x128xbf16, #tpu.memory_space<vmem>>, vector<32x128xbf16>
      tpu.vector_store %arg6[%c0_14, %c0_15], %17 {strides = array<i32>} : memref<32x128xbf16, #tpu.memory_space<vmem>>, vector<32x128xbf16>,
    } else {
    }
    return
  }
  func.func @transform_0(%arg0: i32, %arg1: i32, %arg2: i32) -> (i32, i32) {
    %c0_i32 = arith.constant 0 : i32
    return %arg0, %arg2 : i32, i32
  }
  func.func @transform_1(%arg0: i32, %arg1: i32, %arg2: i32) -> (i32, i32) {
    %c0_i32 = arith.constant 0 : i32
    return %arg2, %arg1 : i32, i32
  }
  func.func @transform_2(%arg0: i32, %arg1: i32, %arg2: i32) -> (i32, i32) {
    %c0_i32 = arith.constant 0 : i32
    %c0_i32_0 = arith.constant 0 : i32
    return %c0_i32, %arg1 : i32, i32
  }
  func.func @transform_3(%arg0: i32, %arg1: i32, %arg2: i32) -> (i32, i32) {
    %c0_i32 = arith.constant 0 : i32
    return %arg0, %arg1 : i32, i32
  }
}

module attributes {stable_mosaic.version = 11 : i64} {
  func.func @_layernorm_kernel(%arg0: i32, %arg1: memref<34x128xbf16, #tpu.memory_space<vmem>>, %arg2: memref<1x128xf32, #tpu.memory_space<vmem>>, %arg3: memref<1x128xf32, #tpu.memory_space<vmem>>, %arg4: memref<34x128xbf16, #tpu.memory_space<vmem>>) attributes {dimension_semantics = [#tpu.dimension_semantics<parallel>], iteration_bounds = array<i64: 1>, scalar_prefetch = 0 : i64, scratch_operands = 0 : i64, tpu.core_type = #tpu.core_type<tc>, window_params = [{transform_indices = @transform_0, window_bounds = array<i64: 34, 128>}, {pipeline_mode = #tpu.pipeline_mode<synchronous>, transform_indices = @transform_1, window_bounds = array<i64: 1, 128>}, {pipeline_mode = #tpu.pipeline_mode<synchronous>, transform_indices = @transform_2, window_bounds = array<i64: 1, 128>}, {transform_indices = @transform_3, window_bounds = array<i64: 34, 128>}]} {
    %c0 = arith.constant 0 : index
    %c0_0 = arith.constant 0 : index
    %0 = vector.load %arg1[%c0, %c0_0] : memref<34x128xbf16, #tpu.memory_space<vmem>>, vector<34x128xbf16>
    %1 = arith.extf %0 : vector<34x128xbf16> to vector<34x128xf32>
    %c0_1 = arith.constant 0 : index
    %c0_2 = arith.constant 0 : index
    %2 = vector.load %arg2[%c0_1, %c0_2] : memref<1x128xf32, #tpu.memory_space<vmem>>, vector<1x128xf32>
    %c0_3 = arith.constant 0 : index
    %c0_4 = arith.constant 0 : index
    %3 = vector.load %arg3[%c0_3, %c0_4] : memref<1x128xf32, #tpu.memory_space<vmem>>, vector<1x128xf32>
    %cst = arith.constant dense<0.000000e+00> : vector<34xf32>
    %4 = vector.multi_reduction <add>, %1, %cst [1] : vector<34x128xf32> to vector<34xf32>
    %5 = vector.shape_cast %4 : vector<34xf32> to vector<34x1xf32>
    %cst_5 = arith.constant 1.280000e+02 : f32
    %6 = vector.broadcast %cst_5 : f32 to vector<34x1xf32>
    %7 = arith.divf %5, %6 : vector<34x1xf32>
    %8 = vector.broadcast %7 : vector<34x1xf32> to vector<34x128xf32>
    %9 = arith.subf %1, %8 : vector<34x128xf32>
    %10 = arith.mulf %9, %9 : vector<34x128xf32>
    %cst_6 = arith.constant dense<0.000000e+00> : vector<34xf32>
    %11 = vector.multi_reduction <add>, %10, %cst_6 [1] : vector<34x128xf32> to vector<34xf32>
    %12 = vector.shape_cast %11 : vector<34xf32> to vector<34x1xf32>
    %cst_7 = arith.constant 1.280000e+02 : f32
    %13 = vector.broadcast %cst_7 : f32 to vector<34x1xf32>
    %14 = arith.divf %12, %13 : vector<34x1xf32>
    %15 = vector.broadcast %7 : vector<34x1xf32> to vector<34x128xf32>
    %16 = arith.subf %1, %15 : vector<34x128xf32>
    %cst_8 = arith.constant 9.99999974E-6 : f32
    %17 = vector.broadcast %cst_8 : f32 to vector<34x1xf32>
    %18 = arith.addf %14, %17 : vector<34x1xf32>
    %19 = math.rsqrt %18 : vector<34x1xf32>
    %20 = vector.broadcast %19 : vector<34x1xf32> to vector<34x128xf32>
    %21 = arith.mulf %16, %20 : vector<34x128xf32>
    %22 = vector.broadcast %2 : vector<1x128xf32> to vector<34x128xf32>
    %23 = arith.mulf %21, %22 : vector<34x128xf32>
    %24 = vector.broadcast %3 : vector<1x128xf32> to vector<34x128xf32>
    %25 = arith.addf %23, %24 : vector<34x128xf32>
    %26 = arith.truncf %25 : vector<34x128xf32> to vector<34x128xbf16>
    %c0_9 = arith.constant 0 : index
    %c0_10 = arith.constant 0 : index
    %27 = vector.load %arg4[%c0_9, %c0_10] : memref<34x128xbf16, #tpu.memory_space<vmem>>, vector<34x128xbf16>
    tpu.vector_store %arg4[%c0_9, %c0_10], %26 {strides = array<i32>} : memref<34x128xbf16, #tpu.memory_space<vmem>>, vector<34x128xbf16>,
    return
  }
  func.func @transform_0(%arg0: i32) -> (i32, i32) {
    %c0_i32 = arith.constant 0 : i32
    %c0_i32_0 = arith.constant 0 : i32
    return %arg0, %c0_i32 : i32, i32
  }
  func.func @transform_1(%arg0: i32) -> (i32, i32) {
    %c0_i32 = arith.constant 0 : i32
    %c0_i32_0 = arith.constant 0 : i32
    %c0_i32_1 = arith.constant 0 : i32
    return %c0_i32, %c0_i32_0 : i32, i32
  }
  func.func @transform_2(%arg0: i32) -> (i32, i32) {
    %c0_i32 = arith.constant 0 : i32
    %c0_i32_0 = arith.constant 0 : i32
    %c0_i32_1 = arith.constant 0 : i32
    return %c0_i32, %c0_i32_0 : i32, i32
  }
  func.func @transform_3(%arg0: i32) -> (i32, i32) {
    %c0_i32 = arith.constant 0 : i32
    %c0_i32_0 = arith.constant 0 : i32
    return %arg0, %c0_i32 : i32, i32
  }
}

module attributes {stable_mosaic.version = 11 : i64} {
  func.func @_mlp_block_kernel(%arg0: i32, %arg1: i32, %arg2: memref<34x128xbf16, #tpu.memory_space<vmem>>, %arg3: memref<1x128xf32, #tpu.memory_space<vmem>>, %arg4: memref<1x128xf32, #tpu.memory_space<vmem>>, %arg5: memref<128x512xbf16, #tpu.memory_space<vmem>>, %arg6: memref<1x512xbf16, #tpu.memory_space<vmem>>, %arg7: memref<512x128xbf16, #tpu.memory_space<vmem>>, %arg8: memref<1x128xbf16, #tpu.memory_space<vmem>>, %arg9: memref<34x128xbf16, #tpu.memory_space<vmem>>, %arg10: memref<34x128xf32, #tpu.memory_space<vmem>>) attributes {dimension_semantics = [#tpu.dimension_semantics<parallel>, #tpu.dimension_semantics<arbitrary>], iteration_bounds = array<i64: 1, 1>, scalar_prefetch = 0 : i64, scratch_operands = 1 : i64, tpu.core_type = #tpu.core_type<tc>, window_params = [{transform_indices = @transform_0, window_bounds = array<i64: 34, 128>}, {pipeline_mode = #tpu.pipeline_mode<synchronous>, transform_indices = @transform_1, window_bounds = array<i64: 1, 128>}, {pipeline_mode = #tpu.pipeline_mode<synchronous>, transform_indices = @transform_2, window_bounds = array<i64: 1, 128>}, {transform_indices = @transform_3, window_bounds = array<i64: 128, 512>}, {transform_indices = @transform_4, window_bounds = array<i64: 1, 512>}, {transform_indices = @transform_5, window_bounds = array<i64: 512, 128>}, {pipeline_mode = #tpu.pipeline_mode<synchronous>, transform_indices = @transform_6, window_bounds = array<i64: 1, 128>}, {transform_indices = @transform_7, window_bounds = array<i64: 34, 128>}]} {
    %c0_i32 = arith.constant 0 : i32
    %0 = arith.cmpi eq, %arg1, %c0_i32 : i32
    %1 = arith.extui %0 : i1 to i32
    %c0_i32_0 = arith.constant 0 : i32
    %2 = arith.cmpi ne, %1, %c0_i32_0 : i32
    scf.if %2 {
      %cst_26 = arith.constant 0.000000e+00 : f32
      %53 = vector.broadcast %cst_26 : f32 to vector<34x128xf32>
      %c0_27 = arith.constant 0 : index
      %c0_28 = arith.constant 0 : index
      %54 = vector.load %arg10[%c0_27, %c0_28] : memref<34x128xf32, #tpu.memory_space<vmem>>, vector<34x128xf32>
      tpu.vector_store %arg10[%c0_27, %c0_28], %53 {strides = array<i32>} : memref<34x128xf32, #tpu.memory_space<vmem>>, vector<34x128xf32>,
    } else {
    }
    %c0 = arith.constant 0 : index
    %c0_1 = arith.constant 0 : index
    %3 = vector.load %arg2[%c0, %c0_1] : memref<34x128xbf16, #tpu.memory_space<vmem>>, vector<34x128xbf16>
    %4 = arith.extf %3 : vector<34x128xbf16> to vector<34x128xf32>
    %c0_2 = arith.constant 0 : index
    %c0_3 = arith.constant 0 : index
    %5 = vector.load %arg3[%c0_2, %c0_3] : memref<1x128xf32, #tpu.memory_space<vmem>>, vector<1x128xf32>
    %c0_4 = arith.constant 0 : index
    %c0_5 = arith.constant 0 : index
    %6 = vector.load %arg4[%c0_4, %c0_5] : memref<1x128xf32, #tpu.memory_space<vmem>>, vector<1x128xf32>
    %cst = arith.constant dense<0.000000e+00> : vector<34xf32>
    %7 = vector.multi_reduction <add>, %4, %cst [1] : vector<34x128xf32> to vector<34xf32>
    %8 = vector.shape_cast %7 : vector<34xf32> to vector<34x1xf32>
    %cst_6 = arith.constant 1.280000e+02 : f32
    %9 = vector.broadcast %cst_6 : f32 to vector<34x1xf32>
    %10 = arith.divf %8, %9 : vector<34x1xf32>
    %11 = vector.broadcast %10 : vector<34x1xf32> to vector<34x128xf32>
    %12 = arith.subf %4, %11 : vector<34x128xf32>
    %13 = arith.mulf %12, %12 : vector<34x128xf32>
    %cst_7 = arith.constant dense<0.000000e+00> : vector<34xf32>
    %14 = vector.multi_reduction <add>, %13, %cst_7 [1] : vector<34x128xf32> to vector<34xf32>
    %15 = vector.shape_cast %14 : vector<34xf32> to vector<34x1xf32>
    %cst_8 = arith.constant 1.280000e+02 : f32
    %16 = vector.broadcast %cst_8 : f32 to vector<34x1xf32>
    %17 = arith.divf %15, %16 : vector<34x1xf32>
    %18 = vector.broadcast %10 : vector<34x1xf32> to vector<34x128xf32>
    %19 = arith.subf %4, %18 : vector<34x128xf32>
    %cst_9 = arith.constant 9.99999974E-6 : f32
    %20 = vector.broadcast %cst_9 : f32 to vector<34x1xf32>
    %21 = arith.addf %17, %20 : vector<34x1xf32>
    %22 = math.rsqrt %21 : vector<34x1xf32>
    %23 = vector.broadcast %22 : vector<34x1xf32> to vector<34x128xf32>
    %24 = arith.mulf %19, %23 : vector<34x128xf32>
    %25 = vector.broadcast %5 : vector<1x128xf32> to vector<34x128xf32>
    %26 = arith.mulf %24, %25 : vector<34x128xf32>
    %27 = vector.broadcast %6 : vector<1x128xf32> to vector<34x128xf32>
    %28 = arith.addf %26, %27 : vector<34x128xf32>
    %29 = arith.truncf %28 : vector<34x128xf32> to vector<34x128xbf16>
    %c0_10 = arith.constant 0 : index
    %c0_11 = arith.constant 0 : index
    %30 = vector.load %arg5[%c0_10, %c0_11] : memref<128x512xbf16, #tpu.memory_space<vmem>>, vector<128x512xbf16>
    %cst_12 = arith.constant dense<0.000000e+00> : vector<34x512xf32>
    %31 = tpu.matmul %29, %30, %cst_12 {dimension_numbers = #tpu.dot_dimension_numbers<[1], [0], [0], [1], [0, 0, 1, 1], [], []>} : vector<34x128xbf16>, vector<128x512xbf16>, vector<34x512xf32> -> vector<34x512xf32>
    %c0_13 = arith.constant 0 : index
    %c0_14 = arith.constant 0 : index
    %32 = vector.load %arg6[%c0_13, %c0_14] : memref<1x512xbf16, #tpu.memory_space<vmem>>, vector<1x512xbf16>
    %33 = arith.extf %32 : vector<1x512xbf16> to vector<1x512xf32>
    %34 = vector.broadcast %33 : vector<1x512xf32> to vector<34x512xf32>
    %35 = arith.addf %31, %34 : vector<34x512xf32>
    %cst_15 = arith.constant 1.702000e+00 : f32
    %36 = vector.broadcast %cst_15 : f32 to vector<34x512xf32>
    %37 = arith.mulf %36, %35 : vector<34x512xf32>
    %38 = arith.negf %37 : vector<34x512xf32>
    %39 = math.exp %38 : vector<34x512xf32>
    %cst_16 = arith.constant 1.000000e+00 : f32
    %40 = vector.broadcast %cst_16 : f32 to vector<34x512xf32>
    %41 = arith.addf %40, %39 : vector<34x512xf32>
    %42 = arith.divf %40, %41 : vector<34x512xf32>
    %43 = arith.mulf %35, %42 : vector<34x512xf32>
    %c0_17 = arith.constant 0 : index
    %c0_18 = arith.constant 0 : index
    %44 = vector.load %arg10[%c0_17, %c0_18] : memref<34x128xf32, #tpu.memory_space<vmem>>, vector<34x128xf32>
    %45 = arith.truncf %43 : vector<34x512xf32> to vector<34x512xbf16>
    %c0_19 = arith.constant 0 : index
    %c0_20 = arith.constant 0 : index
    %46 = vector.load %arg7[%c0_19, %c0_20] : memref<512x128xbf16, #tpu.memory_space<vmem>>, vector<512x128xbf16>
    %cst_21 = arith.constant dense<0.000000e+00> : vector<34x128xf32>
    %47 = tpu.matmul %45, %46, %cst_21 {dimension_numbers = #tpu.dot_dimension_numbers<[1], [0], [0], [1], [0, 0, 1, 1], [], []>} : vector<34x512xbf16>, vector<512x128xbf16>, vector<34x128xf32> -> vector<34x128xf32>
    %48 = arith.addf %44, %47 : vector<34x128xf32>
    %c0_22 = arith.constant 0 : index
    %c0_23 = arith.constant 0 : index
    %49 = vector.load %arg10[%c0_22, %c0_23] : memref<34x128xf32, #tpu.memory_space<vmem>>, vector<34x128xf32>
    tpu.vector_store %arg10[%c0_22, %c0_23], %48 {strides = array<i32>} : memref<34x128xf32, #tpu.memory_space<vmem>>, vector<34x128xf32>,
    %c0_i32_24 = arith.constant 0 : i32
    %50 = arith.cmpi eq, %arg1, %c0_i32_24 : i32
    %51 = arith.extui %50 : i1 to i32
    %c0_i32_25 = arith.constant 0 : i32
    %52 = arith.cmpi ne, %51, %c0_i32_25 : i32
    scf.if %52 {
      %c0_26 = arith.constant 0 : index
      %c0_27 = arith.constant 0 : index
      %53 = vector.load %arg10[%c0_26, %c0_27] : memref<34x128xf32, #tpu.memory_space<vmem>>, vector<34x128xf32>
      %c0_28 = arith.constant 0 : index
      %c0_29 = arith.constant 0 : index
      %54 = vector.load %arg8[%c0_28, %c0_29] : memref<1x128xbf16, #tpu.memory_space<vmem>>, vector<1x128xbf16>
      %55 = arith.extf %54 : vector<1x128xbf16> to vector<1x128xf32>
      %56 = vector.broadcast %55 : vector<1x128xf32> to vector<34x128xf32>
      %57 = arith.addf %53, %56 : vector<34x128xf32>
      %58 = arith.addf %57, %4 : vector<34x128xf32>
      %59 = arith.truncf %58 : vector<34x128xf32> to vector<34x128xbf16>
      %c0_30 = arith.constant 0 : index
      %c0_31 = arith.constant 0 : index
      %60 = vector.load %arg9[%c0_30, %c0_31] : memref<34x128xbf16, #tpu.memory_space<vmem>>, vector<34x128xbf16>
      tpu.vector_store %arg9[%c0_30, %c0_31], %59 {strides = array<i32>} : memref<34x128xbf16, #tpu.memory_space<vmem>>, vector<34x128xbf16>,
    } else {
    }
    return
  }
  func.func @transform_0(%arg0: i32, %arg1: i32) -> (i32, i32) {
    %c0_i32 = arith.constant 0 : i32
    %c0_i32_0 = arith.constant 0 : i32
    return %arg0, %c0_i32 : i32, i32
  }
  func.func @transform_1(%arg0: i32, %arg1: i32) -> (i32, i32) {
    %c0_i32 = arith.constant 0 : i32
    %c0_i32_0 = arith.constant 0 : i32
    %c0_i32_1 = arith.constant 0 : i32
    return %c0_i32, %c0_i32_0 : i32, i32
  }
  func.func @transform_2(%arg0: i32, %arg1: i32) -> (i32, i32) {
    %c0_i32 = arith.constant 0 : i32
    %c0_i32_0 = arith.constant 0 : i32
    %c0_i32_1 = arith.constant 0 : i32
    return %c0_i32, %c0_i32_0 : i32, i32
  }
  func.func @transform_3(%arg0: i32, %arg1: i32) -> (i32, i32) {
    %c0_i32 = arith.constant 0 : i32
    %c0_i32_0 = arith.constant 0 : i32
    return %c0_i32, %arg1 : i32, i32
  }
  func.func @transform_4(%arg0: i32, %arg1: i32) -> (i32, i32) {
    %c0_i32 = arith.constant 0 : i32
    %c0_i32_0 = arith.constant 0 : i32
    return %c0_i32, %arg1 : i32, i32
  }
  func.func @transform_5(%arg0: i32, %arg1: i32) -> (i32, i32) {
    %c0_i32 = arith.constant 0 : i32
    %c0_i32_0 = arith.constant 0 : i32
    return %arg1, %c0_i32 : i32, i32
  }
  func.func @transform_6(%arg0: i32, %arg1: i32) -> (i32, i32) {
    %c0_i32 = arith.constant 0 : i32
    %c0_i32_0 = arith.constant 0 : i32
    %c0_i32_1 = arith.constant 0 : i32
    return %c0_i32, %c0_i32_0 : i32, i32
  }
  func.func @transform_7(%arg0: i32, %arg1: i32) -> (i32, i32) {
    %c0_i32 = arith.constant 0 : i32
    %c0_i32_0 = arith.constant 0 : i32
    return %arg0, %c0_i32 : i32, i32
  }
}

module attributes {stable_mosaic.version = 11 : i64} {
  func.func @_attn_block_kernel(%arg0: i32, %arg1: memref<1x17x128xbf16, #tpu.memory_space<vmem>>, %arg2: memref<1x128xf32, #tpu.memory_space<vmem>>, %arg3: memref<1x128xf32, #tpu.memory_space<vmem>>, %arg4: memref<128x384xbf16, #tpu.memory_space<vmem>>, %arg5: memref<1x384xbf16, #tpu.memory_space<vmem>>, %arg6: memref<128x128xbf16, #tpu.memory_space<vmem>>, %arg7: memref<1x128xbf16, #tpu.memory_space<vmem>>, %arg8: memref<1x17x128xbf16, #tpu.memory_space<vmem>>) attributes {dimension_semantics = [#tpu.dimension_semantics<parallel>], iteration_bounds = array<i64: 2>, scalar_prefetch = 0 : i64, scratch_operands = 0 : i64, tpu.core_type = #tpu.core_type<tc>, window_params = [{transform_indices = @transform_0, window_bounds = array<i64: 1, 17, 128>}, {pipeline_mode = #tpu.pipeline_mode<synchronous>, transform_indices = @transform_1, window_bounds = array<i64: 1, 128>}, {pipeline_mode = #tpu.pipeline_mode<synchronous>, transform_indices = @transform_2, window_bounds = array<i64: 1, 128>}, {pipeline_mode = #tpu.pipeline_mode<synchronous>, transform_indices = @transform_3, window_bounds = array<i64: 128, 384>}, {pipeline_mode = #tpu.pipeline_mode<synchronous>, transform_indices = @transform_4, window_bounds = array<i64: 1, 384>}, {pipeline_mode = #tpu.pipeline_mode<synchronous>, transform_indices = @transform_5, window_bounds = array<i64: 128, 128>}, {pipeline_mode = #tpu.pipeline_mode<synchronous>, transform_indices = @transform_6, window_bounds = array<i64: 1, 128>}, {transform_indices = @transform_7, window_bounds = array<i64: 1, 17, 128>}]} {
    %c0 = arith.constant 0 : index
    %c0_0 = arith.constant 0 : index
    %c0_1 = arith.constant 0 : index
    %0 = vector.load %arg1[%c0, %c0_0, %c0_1] : memref<1x17x128xbf16, #tpu.memory_space<vmem>>, vector<1x17x128xbf16>
    %1 = vector.shape_cast %0 : vector<1x17x128xbf16> to vector<17x128xbf16>
    %2 = arith.extf %1 : vector<17x128xbf16> to vector<17x128xf32>
    %c0_2 = arith.constant 0 : index
    %c0_3 = arith.constant 0 : index
    %3 = vector.load %arg2[%c0_2, %c0_3] : memref<1x128xf32, #tpu.memory_space<vmem>>, vector<1x128xf32>
    %c0_4 = arith.constant 0 : index
    %c0_5 = arith.constant 0 : index
    %4 = vector.load %arg3[%c0_4, %c0_5] : memref<1x128xf32, #tpu.memory_space<vmem>>, vector<1x128xf32>
    %cst = arith.constant dense<0.000000e+00> : vector<17xf32>
    %5 = vector.multi_reduction <add>, %2, %cst [1] : vector<17x128xf32> to vector<17xf32>
    %6 = vector.shape_cast %5 : vector<17xf32> to vector<17x1xf32>
    %cst_6 = arith.constant 1.280000e+02 : f32
    %7 = vector.broadcast %cst_6 : f32 to vector<17x1xf32>
    %8 = arith.divf %6, %7 : vector<17x1xf32>
    %9 = vector.broadcast %8 : vector<17x1xf32> to vector<17x128xf32>
    %10 = arith.subf %2, %9 : vector<17x128xf32>
    %11 = arith.mulf %10, %10 : vector<17x128xf32>
    %cst_7 = arith.constant dense<0.000000e+00> : vector<17xf32>
    %12 = vector.multi_reduction <add>, %11, %cst_7 [1] : vector<17x128xf32> to vector<17xf32>
    %13 = vector.shape_cast %12 : vector<17xf32> to vector<17x1xf32>
    %cst_8 = arith.constant 1.280000e+02 : f32
    %14 = vector.broadcast %cst_8 : f32 to vector<17x1xf32>
    %15 = arith.divf %13, %14 : vector<17x1xf32>
    %16 = vector.broadcast %8 : vector<17x1xf32> to vector<17x128xf32>
    %17 = arith.subf %2, %16 : vector<17x128xf32>
    %cst_9 = arith.constant 9.99999974E-6 : f32
    %18 = vector.broadcast %cst_9 : f32 to vector<17x1xf32>
    %19 = arith.addf %15, %18 : vector<17x1xf32>
    %20 = math.rsqrt %19 : vector<17x1xf32>
    %21 = vector.broadcast %20 : vector<17x1xf32> to vector<17x128xf32>
    %22 = arith.mulf %17, %21 : vector<17x128xf32>
    %23 = vector.broadcast %3 : vector<1x128xf32> to vector<17x128xf32>
    %24 = arith.mulf %22, %23 : vector<17x128xf32>
    %25 = vector.broadcast %4 : vector<1x128xf32> to vector<17x128xf32>
    %26 = arith.addf %24, %25 : vector<17x128xf32>
    %27 = arith.truncf %26 : vector<17x128xf32> to vector<17x128xbf16>
    %c0_10 = arith.constant 0 : index
    %c0_11 = arith.constant 0 : index
    %28 = vector.load %arg4[%c0_10, %c0_11] : memref<128x384xbf16, #tpu.memory_space<vmem>>, vector<128x384xbf16>
    %cst_12 = arith.constant dense<0.000000e+00> : vector<17x384xf32>
    %29 = tpu.matmul %27, %28, %cst_12 {dimension_numbers = #tpu.dot_dimension_numbers<[1], [0], [0], [1], [0, 0, 1, 1], [], []>} : vector<17x128xbf16>, vector<128x384xbf16>, vector<17x384xf32> -> vector<17x384xf32>
    %c0_13 = arith.constant 0 : index
    %c0_14 = arith.constant 0 : index
    %30 = vector.load %arg5[%c0_13, %c0_14] : memref<1x384xbf16, #tpu.memory_space<vmem>>, vector<1x384xbf16>
    %31 = arith.extf %30 : vector<1x384xbf16> to vector<1x384xf32>
    %32 = vector.broadcast %31 : vector<1x384xf32> to vector<17x384xf32>
    %33 = arith.addf %29, %32 : vector<17x384xf32>
    %34 = vector.extract_strided_slice %33 {offsets = [0, 0], sizes = [17, 128], strides = [1, 1]} : vector<17x384xf32> to vector<17x128xf32>
    %cst_15 = arith.constant 1.250000e-01 : f32
    %35 = vector.broadcast %cst_15 : f32 to vector<17x128xf32>
    %36 = arith.mulf %34, %35 : vector<17x128xf32>
    %37 = vector.extract_strided_slice %33 {offsets = [0, 128], sizes = [17, 128], strides = [1, 1]} : vector<17x384xf32> to vector<17x128xf32>
    %38 = vector.extract_strided_slice %33 {offsets = [0, 256], sizes = [17, 128], strides = [1, 1]} : vector<17x384xf32> to vector<17x128xf32>
    %39 = vector.extract_strided_slice %36 {offsets = [0, 0], sizes = [17, 64], strides = [1, 1]} : vector<17x128xf32> to vector<17x64xf32>
    %40 = arith.truncf %39 : vector<17x64xf32> to vector<17x64xbf16>
    %41 = vector.extract_strided_slice %37 {offsets = [0, 0], sizes = [17, 64], strides = [1, 1]} : vector<17x128xf32> to vector<17x64xf32>
    %42 = arith.truncf %41 : vector<17x64xf32> to vector<17x64xbf16>
    %43 = vector.extract_strided_slice %38 {offsets = [0, 0], sizes = [17, 64], strides = [1, 1]} : vector<17x128xf32> to vector<17x64xf32>
    %44 = arith.truncf %43 : vector<17x64xf32> to vector<17x64xbf16>
    %cst_16 = arith.constant dense<0.000000e+00> : vector<17x17xf32>
    %45 = tpu.matmul %40, %42, %cst_16 {dimension_numbers = #tpu.dot_dimension_numbers<[1], [1], [0], [0], [0, 0, 1, 0], [], []>} : vector<17x64xbf16>, vector<17x64xbf16>, vector<17x17xf32> -> vector<17x17xf32>
    %cst_17 = arith.constant dense<0xFF800000> : vector<17xf32>
    %46 = vector.multi_reduction <maximumf>, %45, %cst_17 [1] : vector<17x17xf32> to vector<17xf32>
    %47 = vector.shape_cast %46 : vector<17xf32> to vector<17x1xf32>
    %48 = vector.broadcast %47 : vector<17x1xf32> to vector<17x17xf32>
    %49 = arith.subf %45, %48 : vector<17x17xf32>
    %50 = math.exp %49 : vector<17x17xf32>
    %cst_18 = arith.constant dense<0.000000e+00> : vector<17xf32>
    %51 = vector.multi_reduction <add>, %50, %cst_18 [1] : vector<17x17xf32> to vector<17xf32>
    %52 = vector.shape_cast %51 : vector<17xf32> to vector<17x1xf32>
    %53 = tpu.reciprocal %52 {approx = true} : vector<17x1xf32> -> vector<17x1xf32>
    %54 = vector.broadcast %53 : vector<17x1xf32> to vector<17x17xf32>
    %55 = arith.mulf %50, %54 : vector<17x17xf32>
    %56 = arith.truncf %55 : vector<17x17xf32> to vector<17x17xbf16>
    %cst_19 = arith.constant dense<0.000000e+00> : vector<17x64xf32>
    %57 = tpu.matmul %56, %44, %cst_19 {dimension_numbers = #tpu.dot_dimension_numbers<[1], [0], [0], [1], [0, 0, 1, 1], [], []>} : vector<17x17xbf16>, vector<17x64xbf16>, vector<17x64xf32> -> vector<17x64xf32>
    %58 = vector.extract_strided_slice %36 {offsets = [0, 64], sizes = [17, 64], strides = [1, 1]} : vector<17x128xf32> to vector<17x64xf32>
    %59 = arith.truncf %58 : vector<17x64xf32> to vector<17x64xbf16>
    %60 = vector.extract_strided_slice %37 {offsets = [0, 64], sizes = [17, 64], strides = [1, 1]} : vector<17x128xf32> to vector<17x64xf32>
    %61 = arith.truncf %60 : vector<17x64xf32> to vector<17x64xbf16>
    %62 = vector.extract_strided_slice %38 {offsets = [0, 64], sizes = [17, 64], strides = [1, 1]} : vector<17x128xf32> to vector<17x64xf32>
    %63 = arith.truncf %62 : vector<17x64xf32> to vector<17x64xbf16>
    %cst_20 = arith.constant dense<0.000000e+00> : vector<17x17xf32>
    %64 = tpu.matmul %59, %61, %cst_20 {dimension_numbers = #tpu.dot_dimension_numbers<[1], [1], [0], [0], [0, 0, 1, 0], [], []>} : vector<17x64xbf16>, vector<17x64xbf16>, vector<17x17xf32> -> vector<17x17xf32>
    %cst_21 = arith.constant dense<0xFF800000> : vector<17xf32>
    %65 = vector.multi_reduction <maximumf>, %64, %cst_21 [1] : vector<17x17xf32> to vector<17xf32>
    %66 = vector.shape_cast %65 : vector<17xf32> to vector<17x1xf32>
    %67 = vector.broadcast %66 : vector<17x1xf32> to vector<17x17xf32>
    %68 = arith.subf %64, %67 : vector<17x17xf32>
    %69 = math.exp %68 : vector<17x17xf32>
    %cst_22 = arith.constant dense<0.000000e+00> : vector<17xf32>
    %70 = vector.multi_reduction <add>, %69, %cst_22 [1] : vector<17x17xf32> to vector<17xf32>
    %71 = vector.shape_cast %70 : vector<17xf32> to vector<17x1xf32>
    %72 = tpu.reciprocal %71 {approx = true} : vector<17x1xf32> -> vector<17x1xf32>
    %73 = vector.broadcast %72 : vector<17x1xf32> to vector<17x17xf32>
    %74 = arith.mulf %69, %73 : vector<17x17xf32>
    %75 = arith.truncf %74 : vector<17x17xf32> to vector<17x17xbf16>
    %cst_23 = arith.constant dense<0.000000e+00> : vector<17x64xf32>
    %76 = tpu.matmul %75, %63, %cst_23 {dimension_numbers = #tpu.dot_dimension_numbers<[1], [0], [0], [1], [0, 0, 1, 1], [], []>} : vector<17x17xbf16>, vector<17x64xbf16>, vector<17x64xf32> -> vector<17x64xf32>
    %77 = tpu.concatenate %57, %76 in 1 : vector<17x64xf32>, vector<17x64xf32> -> vector<17x128xf32>
    %78 = arith.truncf %77 : vector<17x128xf32> to vector<17x128xbf16>
    %c0_24 = arith.constant 0 : index
    %c0_25 = arith.constant 0 : index
    %79 = vector.load %arg6[%c0_24, %c0_25] : memref<128x128xbf16, #tpu.memory_space<vmem>>, vector<128x128xbf16>
    %cst_26 = arith.constant dense<0.000000e+00> : vector<17x128xf32>
    %80 = tpu.matmul %78, %79, %cst_26 {dimension_numbers = #tpu.dot_dimension_numbers<[1], [0], [0], [1], [0, 0, 1, 1], [], []>} : vector<17x128xbf16>, vector<128x128xbf16>, vector<17x128xf32> -> vector<17x128xf32>
    %c0_27 = arith.constant 0 : index
    %c0_28 = arith.constant 0 : index
    %81 = vector.load %arg7[%c0_27, %c0_28] : memref<1x128xbf16, #tpu.memory_space<vmem>>, vector<1x128xbf16>
    %82 = arith.extf %81 : vector<1x128xbf16> to vector<1x128xf32>
    %83 = vector.broadcast %82 : vector<1x128xf32> to vector<17x128xf32>
    %84 = arith.addf %80, %83 : vector<17x128xf32>
    %85 = arith.addf %84, %2 : vector<17x128xf32>
    %86 = arith.truncf %85 : vector<17x128xf32> to vector<17x128xbf16>
    %c0_29 = arith.constant 0 : index
    %c0_30 = arith.constant 0 : index
    %c0_31 = arith.constant 0 : index
    %87 = vector.load %arg8[%c0_29, %c0_30, %c0_31] : memref<1x17x128xbf16, #tpu.memory_space<vmem>>, vector<1x17x128xbf16>
    %88 = vector.shape_cast %87 : vector<1x17x128xbf16> to vector<17x128xbf16>
    %89 = vector.shape_cast %86 : vector<17x128xbf16> to vector<1x17x128xbf16>
    tpu.vector_store %arg8[%c0_29, %c0_30, %c0_31], %89 {strides = array<i32>} : memref<1x17x128xbf16, #tpu.memory_space<vmem>>, vector<1x17x128xbf16>,
    return
  }
  func.func @transform_0(%arg0: i32) -> (i32, i32, i32) {
    %c0_i32 = arith.constant 0 : i32
    %c0_i32_0 = arith.constant 0 : i32
    %c0_i32_1 = arith.constant 0 : i32
    return %arg0, %c0_i32, %c0_i32_0 : i32, i32, i32
  }
  func.func @transform_1(%arg0: i32) -> (i32, i32) {
    %c0_i32 = arith.constant 0 : i32
    %c0_i32_0 = arith.constant 0 : i32
    %c0_i32_1 = arith.constant 0 : i32
    return %c0_i32, %c0_i32_0 : i32, i32
  }
  func.func @transform_2(%arg0: i32) -> (i32, i32) {
    %c0_i32 = arith.constant 0 : i32
    %c0_i32_0 = arith.constant 0 : i32
    %c0_i32_1 = arith.constant 0 : i32
    return %c0_i32, %c0_i32_0 : i32, i32
  }
  func.func @transform_3(%arg0: i32) -> (i32, i32) {
    %c0_i32 = arith.constant 0 : i32
    %c0_i32_0 = arith.constant 0 : i32
    %c0_i32_1 = arith.constant 0 : i32
    return %c0_i32, %c0_i32_0 : i32, i32
  }
  func.func @transform_4(%arg0: i32) -> (i32, i32) {
    %c0_i32 = arith.constant 0 : i32
    %c0_i32_0 = arith.constant 0 : i32
    %c0_i32_1 = arith.constant 0 : i32
    return %c0_i32, %c0_i32_0 : i32, i32
  }
  func.func @transform_5(%arg0: i32) -> (i32, i32) {
    %c0_i32 = arith.constant 0 : i32
    %c0_i32_0 = arith.constant 0 : i32
    %c0_i32_1 = arith.constant 0 : i32
    return %c0_i32, %c0_i32_0 : i32, i32
  }
  func.func @transform_6(%arg0: i32) -> (i32, i32) {
    %c0_i32 = arith.constant 0 : i32
    %c0_i32_0 = arith.constant 0 : i32
    %c0_i32_1 = arith.constant 0 : i32
    return %c0_i32, %c0_i32_0 : i32, i32
  }
  func.func @transform_7(%arg0: i32) -> (i32, i32, i32) {
    %c0_i32 = arith.constant 0 : i32
    %c0_i32_0 = arith.constant 0 : i32
    %c0_i32_1 = arith.constant 0 : i32
    return %arg0, %c0_i32, %c0_i32_0 : i32, i32, i32
  }
}

module attributes {stable_mosaic.version = 11 : i64} {
  func.func @_ln_matmul_kernel(%arg0: i32, %arg1: i32, %arg2: memref<2x128xbf16, #tpu.memory_space<vmem>>, %arg3: memref<1x128xf32, #tpu.memory_space<vmem>>, %arg4: memref<1x128xf32, #tpu.memory_space<vmem>>, %arg5: memref<128x128xbf16, #tpu.memory_space<vmem>>, %arg6: memref<1x128xf32, #tpu.memory_space<vmem>>, %arg7: memref<2x128xf32, #tpu.memory_space<vmem>>) attributes {dimension_semantics = [#tpu.dimension_semantics<parallel>, #tpu.dimension_semantics<parallel>], iteration_bounds = array<i64: 1, 1>, scalar_prefetch = 0 : i64, scratch_operands = 0 : i64, tpu.core_type = #tpu.core_type<tc>, window_params = [{transform_indices = @transform_0, window_bounds = array<i64: 2, 128>}, {pipeline_mode = #tpu.pipeline_mode<synchronous>, transform_indices = @transform_1, window_bounds = array<i64: 1, 128>}, {pipeline_mode = #tpu.pipeline_mode<synchronous>, transform_indices = @transform_2, window_bounds = array<i64: 1, 128>}, {transform_indices = @transform_3, window_bounds = array<i64: 128, 128>}, {transform_indices = @transform_4, window_bounds = array<i64: 1, 128>}, {transform_indices = @transform_5, window_bounds = array<i64: 2, 128>}]} {
    %c0 = arith.constant 0 : index
    %c0_0 = arith.constant 0 : index
    %0 = vector.load %arg2[%c0, %c0_0] : memref<2x128xbf16, #tpu.memory_space<vmem>>, vector<2x128xbf16>
    %1 = arith.extf %0 : vector<2x128xbf16> to vector<2x128xf32>
    %c0_1 = arith.constant 0 : index
    %c0_2 = arith.constant 0 : index
    %2 = vector.load %arg3[%c0_1, %c0_2] : memref<1x128xf32, #tpu.memory_space<vmem>>, vector<1x128xf32>
    %c0_3 = arith.constant 0 : index
    %c0_4 = arith.constant 0 : index
    %3 = vector.load %arg4[%c0_3, %c0_4] : memref<1x128xf32, #tpu.memory_space<vmem>>, vector<1x128xf32>
    %cst = arith.constant dense<0.000000e+00> : vector<2xf32>
    %4 = vector.multi_reduction <add>, %1, %cst [1] : vector<2x128xf32> to vector<2xf32>
    %5 = vector.shape_cast %4 : vector<2xf32> to vector<2x1xf32>
    %cst_5 = arith.constant 1.280000e+02 : f32
    %6 = vector.broadcast %cst_5 : f32 to vector<2x1xf32>
    %7 = arith.divf %5, %6 : vector<2x1xf32>
    %8 = vector.broadcast %7 : vector<2x1xf32> to vector<2x128xf32>
    %9 = arith.subf %1, %8 : vector<2x128xf32>
    %10 = arith.mulf %9, %9 : vector<2x128xf32>
    %cst_6 = arith.constant dense<0.000000e+00> : vector<2xf32>
    %11 = vector.multi_reduction <add>, %10, %cst_6 [1] : vector<2x128xf32> to vector<2xf32>
    %12 = vector.shape_cast %11 : vector<2xf32> to vector<2x1xf32>
    %cst_7 = arith.constant 1.280000e+02 : f32
    %13 = vector.broadcast %cst_7 : f32 to vector<2x1xf32>
    %14 = arith.divf %12, %13 : vector<2x1xf32>
    %15 = vector.broadcast %7 : vector<2x1xf32> to vector<2x128xf32>
    %16 = arith.subf %1, %15 : vector<2x128xf32>
    %cst_8 = arith.constant 9.99999974E-6 : f32
    %17 = vector.broadcast %cst_8 : f32 to vector<2x1xf32>
    %18 = arith.addf %14, %17 : vector<2x1xf32>
    %19 = math.rsqrt %18 : vector<2x1xf32>
    %20 = vector.broadcast %19 : vector<2x1xf32> to vector<2x128xf32>
    %21 = arith.mulf %16, %20 : vector<2x128xf32>
    %22 = vector.broadcast %2 : vector<1x128xf32> to vector<2x128xf32>
    %23 = arith.mulf %21, %22 : vector<2x128xf32>
    %24 = vector.broadcast %3 : vector<1x128xf32> to vector<2x128xf32>
    %25 = arith.addf %23, %24 : vector<2x128xf32>
    %26 = arith.truncf %25 : vector<2x128xf32> to vector<2x128xbf16>
    %c0_9 = arith.constant 0 : index
    %c0_10 = arith.constant 0 : index
    %27 = vector.load %arg5[%c0_9, %c0_10] : memref<128x128xbf16, #tpu.memory_space<vmem>>, vector<128x128xbf16>
    %cst_11 = arith.constant dense<0.000000e+00> : vector<2x128xf32>
    %28 = tpu.matmul %26, %27, %cst_11 {dimension_numbers = #tpu.dot_dimension_numbers<[1], [0], [0], [1], [0, 0, 1, 1], [], []>} : vector<2x128xbf16>, vector<128x128xbf16>, vector<2x128xf32> -> vector<2x128xf32>
    %c0_12 = arith.constant 0 : index
    %c0_13 = arith.constant 0 : index
    %29 = vector.load %arg6[%c0_12, %c0_13] : memref<1x128xf32, #tpu.memory_space<vmem>>, vector<1x128xf32>
    %30 = vector.broadcast %29 : vector<1x128xf32> to vector<2x128xf32>
    %31 = arith.addf %28, %30 : vector<2x128xf32>
    %c0_14 = arith.constant 0 : index
    %c0_15 = arith.constant 0 : index
    %32 = vector.load %arg7[%c0_14, %c0_15] : memref<2x128xf32, #tpu.memory_space<vmem>>, vector<2x128xf32>
    tpu.vector_store %arg7[%c0_14, %c0_15], %31 {strides = array<i32>} : memref<2x128xf32, #tpu.memory_space<vmem>>, vector<2x128xf32>,
    return
  }
  func.func @transform_0(%arg0: i32, %arg1: i32) -> (i32, i32) {
    %c0_i32 = arith.constant 0 : i32
    %c0_i32_0 = arith.constant 0 : i32
    return %arg0, %c0_i32 : i32, i32
  }
  func.func @transform_1(%arg0: i32, %arg1: i32) -> (i32, i32) {
    %c0_i32 = arith.constant 0 : i32
    %c0_i32_0 = arith.constant 0 : i32
    %c0_i32_1 = arith.constant 0 : i32
    return %c0_i32, %c0_i32_0 : i32, i32
  }
  func.func @transform_2(%arg0: i32, %arg1: i32) -> (i32, i32) {
    %c0_i32 = arith.constant 0 : i32
    %c0_i32_0 = arith.constant 0 : i32
    %c0_i32_1 = arith.constant 0 : i32
    return %c0_i32, %c0_i32_0 : i32, i32
  }
  func.func @transform_3(%arg0: i32, %arg1: i32) -> (i32, i32) {
    %c0_i32 = arith.constant 0 : i32
    %c0_i32_0 = arith.constant 0 : i32
    return %c0_i32, %arg1 : i32, i32
  }
  func.func @transform_4(%arg0: i32, %arg1: i32) -> (i32, i32) {
    %c0_i32 = arith.constant 0 : i32
    %c0_i32_0 = arith.constant 0 : i32
    return %c0_i32, %arg1 : i32, i32
  }
  func.func @transform_5(%arg0: i32, %arg1: i32) -> (i32, i32) {
    %c0_i32 = arith.constant 0 : i32
    return %arg0, %arg1 : i32, i32
  }
}

</mosaic_0001>

<bundles_post_ra>
// kernel: _lambda_.8
= control target key start
LH: loop header
LB: loop body
LE: loop exit
PB: predicated region body
PF: predicated region fallthrough
CT: control target
= control target key end

     0   :  { %vm34_vm0 = vcmask 1041408   ;;  %v201_v9 = vmov 128.0   ;;  %s274_s0 = inlined_call_operand.vmem [shape: bf16[34,128], index: 0, kind: input, shape index: {}]   ;;  %s275_s1 = inlined_call_operand.vmem [shape: f32[1,128], index: 1, kind: input, shape index: {}]   ;;  %s276_s2 = inlined_call_operand.vmem [shape: f32[1,128], index: 2, kind: input, shape index: {}]   ;;  %s277_s3 = inlined_call_operand.vmem [shape: bf16[34,128], index: 3, kind: output, shape index: {}]  }
   0x1   :  { %v167_v0 = vld [vmem:[%s274_s0] sm:$0xff]   ;;  %v18_v1 = vld [vmem:[%s274_s0 + $0x10] sm:$0x1]  ;;  %v184_v4 = vld [vmem:[%s274_s0 + $0x8] sm:$0xff]   ;;  %189 = vrcp.f32 %v201_v9 }
   0x2   :  { %v169_v2 = vunpack.c.h.bf16 %v167_v0  ;;  %v23_v3 = vunpack.c.l.bf16 %v18_v1  ;;  %v173_v5 = vunpack.c.h.bf16 %v184_v4  ;;  %v172_v7 = vunpack.c.l.bf16 %v184_v4 }
   0x3   :  { %v168_v8 = vunpack.c.l.bf16 %v167_v0 }
   0x4   :  { %28 = vadd.xlane.f32.xlu1 %v169_v2  ;;  %v35_v6 = vsel %vm34_vm0, %v23_v3, 0.0  ;;  %32 = vadd.xlane.f32.xlu2 %v173_v5 }
   0x5   :  { %36 = vadd.xlane.f32.xlu0 %v35_v6 }
   0x7   :  { %v190_v10 = vpop.eup %189 }
   0x8   :  { %v39_v11 = vmul.f32 128.0, %v190_v10  ;;  %vm43_vm1 = vweird.f32 %v190_v10 }
   0xa   :  { %v40_v12 = vsub.f32 1.0, %v39_v11  ;;  %v187_v11 = vld [vmem:[%s275_s1] ss:$0 sm:$0xff] }
   0xc   :  { %30 = vadd.xlane.f32.xlu1 %v172_v7  ;;  %v41_v13 = vmul.f32 %v190_v10, %v40_v12 }
   0xd   :  { %26 = vadd.xlane.f32.xlu0 %v168_v8 }
   0xe   :  { %v42_v14 = vadd.f32 %v190_v10, %v41_v13 }
  0x10   :  { %v44_v15 = vsel %vm43_vm1, %v190_v10, %v42_v14 }
  0x77   :  { %v29_v16 = vpop.xlane.xlu1 %28  ;;  %v33_v26 = vpop.xlane.xlu2 %32 }
  0x78   :  { %v46_v17 = vmul.f32 %v44_v15, %v29_v16  ;;  %v37_v18 = vpop.xlane.xlu0 %36  ;;  %v48_v31 = vmul.f32 %v44_v15, %v33_v26 }
  0x79   :  { %v49_v19 = vmul.f32 %v44_v15, %v37_v18 }
  0x7a   :  { %v232_v20 = vsub.f32 %v169_v2, %v46_v17  ;;  %v249_v35 = vsub.f32 %v173_v5, %v48_v31 }
  0x7b   :  { %v236_v22 = vsub.f32 %v23_v3, %v49_v19 }
  0x7c   :  { %v56_v21 = vmul.f32 %v232_v20, %v232_v20  ;;  %v58_v36 = vmul.f32 %v249_v35, %v249_v35 }
  0x7d   :  { %v59_v28 = vmul.f32 %v236_v22, %v236_v22 }
  0x7e   :  { %62 = vadd.xlane.f32.xlu0 %v56_v21 }
  0x7f   :  { %v31_v23 = vpop.xlane.xlu1 %30  ;;  %v68_v33 = vsel %vm34_vm0, %v59_v28, 0.0 }
  0x80   :  { %v47_v24 = vmul.f32 %v44_v15, %v31_v23  ;;  %v27_v25 = vpop.xlane.xlu0 %26  ;;  %v188_v23 = vld [vmem:[%s276_s2] ss:$0 sm:$0xff] }
  0x81   :  { %v45_v27 = vmul.f32 %v44_v15, %v27_v25 }
  0x82   :  { %v240_v29 = vsub.f32 %v172_v7, %v47_v24 }
  0x83   :  { %v242_v30 = vsub.f32 %v168_v8, %v45_v27 }
  0x84   :  { %v57_v32 = vmul.f32 %v240_v29, %v240_v29 }
  0x85   :  { %v55_v34 = vmul.f32 %v242_v30, %v242_v30 }
  0x86   :  { %64 = vadd.xlane.f32.xlu1 %v57_v32  ;;  %69 = vadd.xlane.f32.xlu0 %v68_v33 }
  0x87   :  { %60 = vadd.xlane.f32.xlu2 %v55_v34 }
  0x8f   :  { %66 = vadd.xlane.f32.xlu2 %v58_v36 }
  0xf1   :  { %v63_v37 = vpop.xlane.xlu0 %62 }
  0xf2   :  { %v72_v38 = vmul.f32 %v63_v37, %v44_v15 }
  0xf4   :  { %v77_v39 = vadd.f32 1e-05, %v72_v38 }
  0xf6   :  { %191 = vrsqrt.f32 %v77_v39  ;;  %vm97_vm2 = vweird.f32 %v77_v39 }
  0xf9   :  { %v65_v40 = vpop.xlane.xlu1 %64  ;;  %v70_v41 = vpop.xlane.xlu0 %69 }
  0xfa   :  { %v73_v42 = vmul.f32 %v65_v40, %v44_v15  ;;  %v75_v43 = vmul.f32 %v70_v41, %v44_v15  ;;  %v61_v44 = vpop.xlane.xlu2 %60 }
  0xfb   :  { %v71_v45 = vmul.f32 %v61_v44, %v44_v15 }
  0xfc   :  { %v192_v46 = vpop.eup %191  ;;  %v78_v47 = vadd.f32 1e-05, %v73_v42  ;;  %v80_v48 = vadd.f32 1e-05, %v75_v43 }
  0xfd   :  { %v92_v49 = vmul.f32 %v192_v46, %v77_v39  ;;  %v76_v50 = vadd.f32 1e-05, %v71_v45  ;;  %vm98_vm3 = vweird.f32 %v192_v46 }
  0xfe   :  { %193 = vrsqrt.f32 %v78_v47  ;;  %vm99_vm4 = vmor %vm97_vm2, %vm98_vm3  ;;  %vm107_vm6 = vweird.f32 %v78_v47  ;;  %vm127_vm8 = vweird.f32 %v80_v48 }
  0xff   :  { %v93_v51 = vmul.f32 %v192_v46, %v92_v49  ;;  %195 = vrsqrt.f32 %v80_v48  ;;  %vm87_vm9 = vweird.f32 %v76_v50 }
 0x100   :  { %197 = vrsqrt.f32 %v76_v50 }
 0x101   :  { %v94_v52 = vmul.f32 0.5, %v93_v51 }
 0x102   :  { %v67_v53 = vpop.xlane.xlu2 %66 }
 0x103   :  { %v95_v54 = vsub.f32 1.5, %v94_v52  ;;  %v74_v55 = vmul.f32 %v67_v53, %v44_v15 }
 0x104   :  { %v194_v56 = vpop.eup %193 }
 0x105   :  { %v196_v57 = vpop.eup %195  ;;  %v102_v58 = vmul.f32 %v194_v56, %v78_v47  ;;  %v79_v59 = vadd.f32 1e-05, %v74_v55  ;;  %v96_v62 = vmul.f32 %v192_v46, %v95_v54  ;;  %vm108_vm10 = vweird.f32 %v194_v56 }
 0x106   :  { %v198_v60 = vpop.eup %197  ;;  %v122_v61 = vmul.f32 %v196_v57, %v80_v48  ;;  %vm128_vm5 = vweird.f32 %v196_v57  ;;  %vm109_vm13 = vmor %vm107_vm6, %vm108_vm10 }
 0x107   :  { %v103_v63 = vmul.f32 %v194_v56, %v102_v58  ;;  %v82_v0 = vmul.f32 %v198_v60, %v76_v50  ;;  %199 = vrsqrt.f32 %v79_v59  ;;  %v100_v5 = vsel %vm99_vm4, %v192_v46, %v96_v62  ;;  %vm129_vm11 = vmor %vm127_vm8, %vm128_vm5 }
 0x108   :  { %v123_v1 = vmul.f32 %v196_v57, %v122_v61  ;;  %vm88_vm7 = vweird.f32 %v198_v60  ;;  %v132_v12 = vmul.f32 %v100_v5, %v232_v20  ;;  %vm117_vm15 = vweird.f32 %v79_v59 }
 0x109   :  { %v104_v2 = vmul.f32 0.5, %v103_v63  ;;  %v83_v3 = vmul.f32 %v198_v60, %v82_v0  ;;  %vm89_vm12 = vmor %vm87_vm9, %vm88_vm7 }
 0x10a   :  { %v124_v4 = vmul.f32 0.5, %v123_v1  ;;  %v140_v24 = vmul.f32 %v187_v11, %v132_v12 }
 0x10b   :  { %v105_v6 = vsub.f32 1.5, %v104_v2  ;;  %v84_v7 = vmul.f32 0.5, %v83_v3 }
 0x10c   :  { %v125_v8 = vsub.f32 1.5, %v124_v4  ;;  %v148_v33 = vadd.f32 %v188_v23, %v140_v24 }
 0x10d   :  { %v85_v9 = vsub.f32 1.5, %v84_v7  ;;  %v200_v10 = vpop.eup %199  ;;  %v106_v14 = vmul.f32 %v194_v56, %v105_v6 }
 0x10e   :  { %v126_v13 = vmul.f32 %v196_v57, %v125_v8  ;;  %v112_v16 = vmul.f32 %v200_v10, %v79_v59  ;;  %vm118_vm14 = vweird.f32 %v200_v10 }
 0x10f   :  { %v86_v15 = vmul.f32 %v198_v60, %v85_v9  ;;  %v110_v25 = vsel %vm109_vm13, %v194_v56, %v106_v14  ;;  %vm119_vm0 = vmor %vm117_vm15, %vm118_vm14 }
 0x110   :  { %v130_v17 = vsel %vm129_vm11, %v196_v57, %v126_v13  ;;  %v113_v21 = vmul.f32 %v200_v10, %v112_v16 }
 0x111   :  { %v135_v18 = vmul.f32 %v130_v17, %v236_v22  ;;  %v90_v19 = vsel %vm89_vm12, %v198_v60, %v86_v15  ;;  %v133_v22 = vmul.f32 %v110_v25, %v240_v29 }
 0x112   :  { %v131_v20 = vmul.f32 %v90_v19, %v242_v30  ;;  %v114_v27 = vmul.f32 0.5, %v113_v21 }
 0x113   :  { %v143_v26 = vmul.f32 %v187_v11, %v135_v18  ;;  %v141_v39 = vmul.f32 %v187_v11, %v133_v22 }
 0x114   :  { %v139_v28 = vmul.f32 %v187_v11, %v131_v20  ;;  %v115_v32 = vsub.f32 1.5, %v114_v27 }
 0x115   :  { %v151_v31 = vadd.f32 %v188_v23, %v143_v26  ;;  %v149_v29 = vadd.f32 %v188_v23, %v141_v39 }
 0x116   :  { %v147_v34 = vadd.f32 %v188_v23, %v139_v28  ;;  %v116_v37 = vmul.f32 %v200_v10, %v115_v32 }
 0x117   :  { %v156_v36 = vpack.c.bf16 %v151_v31, %v151_v31 }
 0x118   :  { %v177_v38 = vpack.c.bf16 %v148_v33, %v147_v34  ;;  %v120_v30 = vsel %vm119_vm0, %v200_v10, %v116_v37 }
 0x119   :  { %161 = vst [vmem:[%s277_s3 + $0x10] sm:$0x1] %v156_v36  ;;  %v134_v40 = vmul.f32 %v120_v30, %v249_v35 }
 0x11a   :  { %178 = vst [vmem:[%s277_s3] sm:$0xff] %v177_v38  }
 0x11b   :  { %v142_v41 = vmul.f32 %v187_v11, %v134_v40 }
 0x11d   :  { %v150_v42 = vadd.f32 %v188_v23, %v142_v41 }
 0x11f   :  { %v182_v43 = vpack.c.bf16 %v150_v42, %v149_v29 }
 0x121   :  { %185 = vst [vmem:[%s277_s3 + $0x8] sm:$0xff] %v182_v43  }

// kernel: _lambda_.7
= control target key start
LH: loop header
LB: loop body
LE: loop exit
PB: predicated region body
PF: predicated region fallthrough
CT: control target
= control target key end

     0   :  { %vm57_vm0 = vcmask 392192   ;;  %s200_s1 = inlined_call_operand.vmem [shape: bf16[48,128], index: 1, kind: input, shape index: {}]   ;;  %s201_s2 = inlined_call_operand.vmem [shape: f32[1,128], index: 2, kind: input, shape index: {}]   ;;  %s202_s0 = inlined_call_operand.vmem [shape: f32[32,48], index: 0, kind: input, shape index: {}]   ;;  %s203_s3 = inlined_call_operand.vmem [shape: bf16[32,128], index: 3, kind: output, shape index: {}]  }
   0x1   :  { %v134_v0 = vld [vmem:[%s200_s1 + $0x10] sm:$0xff]  ;;  %v133_v1 = vld [vmem:[%s200_s1 + $0x8] sm:$0xff]  ;;  %v132_v2 = vld [vmem:[%s200_s1] sm:$0xff] }
   0x2   :  { %69 = vmatpush.bf16.msra.mxu0 %v134_v0  ;;  %146 = vmatpush.bf16.msra.mxu1 %v134_v0  ;;  %v27_v3 = vld [vmem:[%s202_s0] sm:$0xff]  ;;  %v28_v4 = vld [vmem:[%s202_s0 + $0x8] sm:$0xff]  ;;  %v29_v5 = vld [vmem:[%s202_s0 + $0x10] sm:$0xff] }
   0x3   :  { %v30_v6 = vld [vmem:[%s202_s0 + $0x18] sm:$0xff]  ;;  %v31_v7 = vpack.c.bf16 %v28_v4, %v27_v3  ;;  %v149_v11 = vld [vmem:[%s201_s2] ss:$0 sm:$0xff] }
   0x4   :  { %v32_v8 = vpack.c.bf16 %v30_v6, %v29_v5 }
   0x6   :  { %70 = vmatpush.bf16.msra.mxu0 %v133_v1  ;;  %147 = vmatpush.bf16.msra.mxu1 %v133_v1 }
   0xa   :  { %71 = vmatpush.bf16.msra.mxu0 %v132_v2  ;;  %148 = vmatpush.bf16.msra.mxu1 %v132_v2 }
   0xd   :  { %130 = vmatmul.msk.bf16.vlgmr.msra.gmra.mxu0 %vm57_vm0, %v31_v7  ;;  %131 = vmatmul.msk.bf16.vlgmr.msra.gmra.mxu1 %vm57_vm0, %v32_v8 }
  0x8a   :  { %v73_v9 = vpop.f32.mrf.mxu0  ;;  %v78_v10 = vpop.f32.mrf.mxu1 }
  0x8b   :  { %v102_v14 = vadd.f32 %v149_v11, %v73_v9  ;;  %v104_v15 = vadd.f32 %v149_v11, %v78_v10 }
  0x92   :  { %v75_v12 = vpop.f32.mrf.mxu0  ;;  %v80_v13 = vpop.f32.mrf.mxu1 }
  0x93   :  { %v103_v16 = vadd.f32 %v149_v11, %v75_v12  ;;  %v105_v17 = vadd.f32 %v149_v11, %v80_v13 }
  0x95   :  { %v138_v18 = vpack.c.bf16 %v103_v16, %v102_v14  ;;  %v143_v19 = vpack.c.bf16 %v105_v17, %v104_v15 }
  0x97   :  { %139 = vst [vmem:[%s203_s3] sm:$0xff] %v138_v18  }
  0x98   :  { %145 = vst [vmem:[%s203_s3 + $0x8] sm:$0xff] %v143_v19  }

// kernel: _lambda_.10
= control target key start
LH: loop header
LB: loop body
LE: loop exit
PB: predicated region body
PF: predicated region fallthrough
CT: control target
= control target key end

     0   :  { %vm55_vm0 = vcmask 1041408   ;;  %v1761_v9 = vmov 128.0   ;;  %s2875_s0 = inlined_call_operand.vmem [shape: bf16[34,128], index: 0, kind: input, shape index: {}]   ;;  %s2876_s1 = inlined_call_operand.vmem [shape: f32[1,128], index: 1, kind: input, shape index: {}]   ;;  %s2877_s2 = inlined_call_operand.vmem [shape: f32[1,128], index: 2, kind: input, shape index: {}]   ;;  %s2878_s3 = inlined_call_operand.vmem [shape: bf16[128,512], index: 3, kind: input, shape index: {}]   ;;  %s2879_s5 = inlined_call_operand.vmem [shape: bf16[512,128], index: 5, kind: input, shape index: {}]   ;;  %s2880_s4 = inlined_call_operand.vmem [shape: bf16[1,512], index: 4, kind: input, shape index: {}]   ;;  %s2881_s6 = inlined_call_operand.vmem [shape: bf16[1,128], index: 6, kind: input, shape index: {}]   ;;  %s2882_s7 = inlined_call_operand.vmem [shape: bf16[34,128], index: 7, kind: output, shape index: {}]  }
   0x1   :  { %v1663_v0 = vld [vmem:[%s2875_s0 + $0x8] sm:$0xff]   ;;  %v1646_v1 = vld [vmem:[%s2875_s0] sm:$0xff]   ;;  %v39_v2 = vld [vmem:[%s2875_s0 + $0x10] sm:$0x1]  ;;  %1669 = vrcp.f32 %v1761_v9 }
   0x2   :  { %v1812_v3 = vunpack.c.l.bf16 %v1663_v0  ;;  %v1814_v4 = vunpack.c.l.bf16 %v1646_v1  ;;  %v1816_v5 = vunpack.c.l.bf16 %v39_v2  ;;  %v1822_v7 = vunpack.c.h.bf16 %v1663_v0  ;;  %v1419_v37 = vld [vmem:[%s2878_s3 + $0xe0] sm:$0xf]  ;;  %v1611_v38 = vld [vmem:[%s2878_s3 + $0xec] sm:$0xf0]  ;;  %v1609_v39 = vld [vmem:[%s2878_s3 + $0xe4] sm:$0xf] }
   0x3   :  { %v1824_v8 = vunpack.c.h.bf16 %v1646_v1  ;;  %v1420_v40 = vor.u32 %v1611_v38, %v1419_v37  ;;  %v1421_v41 = vld [vmem:[%s2878_s3 + $0xf0] sm:$0xf0]  ;;  %v1427_v42 = vld [vmem:[%s2878_s3 + $0xe8] sm:$0xf]  ;;  %v1612_v43 = vld [vmem:[%s2878_s3 + $0xf4] sm:$0xf0] }
   0x4   :  { %51 = vadd.xlane.f32.xlu1 %v1812_v3  ;;  %47 = vadd.xlane.f32.xlu0 %v1814_v4  ;;  %v56_v6 = vsel %vm55_vm0, %v1816_v5, 0.0  ;;  %v1424_v44 = vor.u32 %v1609_v39, %v1421_v41  ;;  %v1428_v45 = vor.u32 %v1612_v43, %v1427_v42  ;;  %v1610_v46 = vld [vmem:[%s2878_s3 + $0xec] sm:$0xf]  ;;  %v1429_v47 = vld [vmem:[%s2878_s3 + $0xf8] sm:$0xf0] }
   0x5   :  { %57 = vadd.xlane.f32.xlu2 %v56_v6  ;;  %383 = vmatpush.bf16.msra.mxu0 %v1420_v40  ;;  %v1432_v48 = vor.u32 %v1610_v46, %v1429_v47  ;;  %v1403_v49 = vld [vmem:[%s2878_s3 + $0xc0] sm:$0xf]  ;;  %v1607_v50 = vld [vmem:[%s2878_s3 + $0xcc] sm:$0xf0]  ;;  %v1605_v51 = vld [vmem:[%s2878_s3 + $0xc4] sm:$0xf] }
   0x6   :  { %406 = vmatpush.bf16.msra.mxu1 %v1424_v44  ;;  %429 = vmatpush.bf16.msra.mxu2 %v1428_v45  ;;  %v1404_v52 = vor.u32 %v1607_v50, %v1403_v49  ;;  %v1405_v53 = vld [vmem:[%s2878_s3 + $0xd0] sm:$0xf0]  ;;  %v1411_v54 = vld [vmem:[%s2878_s3 + $0xc8] sm:$0xf]  ;;  %v1608_v55 = vld [vmem:[%s2878_s3 + $0xd4] sm:$0xf0] }
   0x7   :  { %v1670_v10 = vpop.eup %1669  ;;  %452 = vmatpush.bf16.msra.mxu3 %v1432_v48  ;;  %v1408_v56 = vor.u32 %v1605_v51, %v1405_v53  ;;  %v1412_v57 = vor.u32 %v1608_v55, %v1411_v54  ;;  %v1606_v58 = vld [vmem:[%s2878_s3 + $0xcc] sm:$0xf]  ;;  %v1413_v59 = vld [vmem:[%s2878_s3 + $0xd8] sm:$0xf0]  ;;  %v1387_v61 = vld [vmem:[%s2878_s3 + $0xa0] sm:$0xf] }
   0x8   :  { %v60_v11 = vmul.f32 128.0, %v1670_v10  ;;  %vm64_vm1 = vweird.f32 %v1670_v10  ;;  %v1416_v60 = vor.u32 %v1606_v58, %v1413_v59  ;;  %v1603_v62 = vld [vmem:[%s2878_s3 + $0xac] sm:$0xf0]  ;;  %v1601_v63 = vld [vmem:[%s2878_s3 + $0xa4] sm:$0xf] }
   0x9   :  { %384 = vmatpush.bf16.msra.mxu0 %v1404_v52  ;;  %v1388_v0 = vor.u32 %v1603_v62, %v1387_v61  ;;  %v1389_v1 = vld [vmem:[%s2878_s3 + $0xb0] sm:$0xf0]  ;;  %v1395_v2 = vld [vmem:[%s2878_s3 + $0xa8] sm:$0xf]  ;;  %v1604_v6 = vld [vmem:[%s2878_s3 + $0xb4] sm:$0xf0] }
   0xa   :  { %v61_v12 = vsub.f32 1.0, %v60_v11  ;;  %407 = vmatpush.bf16.msra.mxu1 %v1408_v56  ;;  %430 = vmatpush.bf16.msra.mxu2 %v1412_v57  ;;  %v1392_v9 = vor.u32 %v1601_v63, %v1389_v1  ;;  %v1602_v11 = vld [vmem:[%s2878_s3 + $0xac] sm:$0xf]  ;;  %v1363_v37 = vld [vmem:[%s2878_s3 + $0x68] sm:$0xf] }
   0xb   :  { %453 = vmatpush.bf16.msra.mxu3 %v1416_v60  ;;  %v1596_v38 = vld [vmem:[%s2878_s3 + $0x74] sm:$0xf0]  ;;  %v1594_v41 = vld [vmem:[%s2878_s3 + $0x6c] sm:$0xf]  ;;  %v1365_v42 = vld [vmem:[%s2878_s3 + $0x78] sm:$0xf0] }
   0xc   :  { %53 = vadd.xlane.f32.xlu1 %v1822_v7  ;;  %49 = vadd.xlane.f32.xlu0 %v1824_v8  ;;  %v62_v13 = vmul.f32 %v1670_v10, %v61_v12  ;;  %v1397_v12 = vld [vmem:[%s2878_s3 + $0xb8] sm:$0xf0]  ;;  %v1364_v40 = vor.u32 %v1596_v38, %v1363_v37  ;;  %v1368_v43 = vor.u32 %v1594_v41, %v1365_v42  ;;  %v1339_v44 = vld [vmem:[%s2878_s3 + $0x40] sm:$0xf]  ;;  %v1591_v45 = vld [vmem:[%s2878_s3 + $0x4c] sm:$0xf0] }
   0xd   :  { %385 = vmatpush.bf16.msra.mxu0 %v1388_v0  ;;  %v1589_v46 = vld [vmem:[%s2878_s3 + $0x44] sm:$0xf]  ;;  %v1340_v47 = vor.u32 %v1591_v45, %v1339_v44  ;;  %v1341_v48 = vld [vmem:[%s2878_s3 + $0x50] sm:$0xf0]  ;;  %v1347_v49 = vld [vmem:[%s2878_s3 + $0x48] sm:$0xf] }
   0xe   :  { %v63_v14 = vadd.f32 %v1670_v10, %v62_v13  ;;  %v1400_v13 = vor.u32 %v1602_v11, %v1397_v12  ;;  %408 = vmatpush.bf16.msra.mxu1 %v1392_v9  ;;  %v1592_v50 = vld [vmem:[%s2878_s3 + $0x54] sm:$0xf0]  ;;  %v1344_v51 = vor.u32 %v1589_v46, %v1341_v48  ;;  %v1590_v53 = vld [vmem:[%s2878_s3 + $0x4c] sm:$0xf]  ;;  %v1349_v54 = vld [vmem:[%s2878_s3 + $0x58] sm:$0xf0] }
   0xf   :  { %v1348_v52 = vor.u32 %v1592_v50, %v1347_v49  ;;  %v1352_v55 = vor.u32 %v1590_v53, %v1349_v54  ;;  %v1323_v56 = vld [vmem:[%s2878_s3 + $0x20] sm:$0xf]  ;;  %v1587_v57 = vld [vmem:[%s2878_s3 + $0x2c] sm:$0xf0]  ;;  %v1585_v58 = vld [vmem:[%s2878_s3 + $0x24] sm:$0xf] }
  0x10   :  { %v1828_v15 = vsel %vm64_vm1, %v1670_v10, %v63_v14  ;;  %v1396_v10 = vor.u32 %v1604_v6, %v1395_v2  ;;  %v1371_v14 = vld [vmem:[%s2878_s3 + $0x80] sm:$0xf]  ;;  %454 = vmatpush.bf16.msra.mxu3 %v1400_v13  ;;  %v1324_v59 = vor.u32 %v1587_v57, %v1323_v56  ;;  %v1325_v60 = vld [vmem:[%s2878_s3 + $0x30] sm:$0xf0]  ;;  %v1331_v61 = vld [vmem:[%s2878_s3 + $0x28] sm:$0xf] }
  0x11   :  { %v1588_v62 = vld [vmem:[%s2878_s3 + $0x34] sm:$0xf0]  ;;  %v1328_v0 = vor.u32 %v1585_v58, %v1325_v60  ;;  %v1586_v2 = vld [vmem:[%s2878_s3 + $0x2c] sm:$0xf]  ;;  %v1333_v6 = vld [vmem:[%s2878_s3 + $0x38] sm:$0xf0] }
  0x12   :  { %431 = vmatpush.bf16.msra.mxu2 %v1396_v10  ;;  %v1332_v1 = vor.u32 %v1588_v62, %v1331_v61  ;;  %v1336_v11 = vor.u32 %v1586_v2, %v1333_v6  ;;  %v1307_v12 = vld [vmem:[%s2878_s3] sm:$0xf]  ;;  %v1583_v13 = vld [vmem:[%s2878_s3 + $0xc] sm:$0xf0] }
  0x13   :  { %v1667_v61 = vld [vmem:[%s2876_s1] ss:$0 sm:$0xff] }
  0x77   :  { %v52_v16 = vpop.xlane.xlu1 %51  ;;  %v48_v17 = vpop.xlane.xlu0 %47 }
  0x78   :  { %v68_v18 = vmul.f32 %v1828_v15, %v52_v16  ;;  %v66_v19 = vmul.f32 %v1828_v15, %v48_v17  ;;  %v58_v24 = vpop.xlane.xlu2 %57  ;;  %v1599_v16 = vld [vmem:[%s2878_s3 + $0x8c] sm:$0xf0]  ;;  %v1597_v17 = vld [vmem:[%s2878_s3 + $0x84] sm:$0xf] }
  0x79   :  { %v70_v27 = vmul.f32 %v1828_v15, %v58_v24 }
  0x7a   :  { %v1833_v20 = vsub.f32 %v1812_v3, %v68_v18  ;;  %v1836_v21 = vsub.f32 %v1814_v4, %v66_v19  ;;  %v1372_v18 = vor.u32 %v1599_v16, %v1371_v14  ;;  %v1373_v19 = vld [vmem:[%s2878_s3 + $0x90] sm:$0xf0]  ;;  %v1581_v14 = vld [vmem:[%s2878_s3 + $0x4] sm:$0xf] }
  0x7b   :  { %v1852_v32 = vsub.f32 %v1816_v5, %v70_v27  ;;  %v1376_v24 = vor.u32 %v1597_v17, %v1373_v19  ;;  %v1381_v27 = vld [vmem:[%s2878_s3 + $0x98] sm:$0xf0]  ;;  %v1308_v17 = vor.u32 %v1583_v13, %v1307_v12 }
  0x7c   :  { %v78_v22 = vmul.f32 %v1833_v20, %v1833_v20  ;;  %v76_v23 = vmul.f32 %v1836_v21, %v1836_v21  ;;  %386 = vmatpush.bf16.msra.mxu0 %v1372_v18  ;;  %v1309_v18 = vld [vmem:[%s2878_s3 + $0x10] sm:$0xf0] }
  0x7d   :  { %v80_v35 = vmul.f32 %v1852_v32, %v1852_v32  ;;  %409 = vmatpush.bf16.msra.mxu1 %v1376_v24  ;;  %v1584_v24 = vld [vmem:[%s2878_s3 + $0x14] sm:$0xf0] }
  0x7e   :  { %85 = vadd.xlane.f32.xlu1 %v78_v22  ;;  %81 = vadd.xlane.f32.xlu2 %v76_v23  ;;  %v1379_v22 = vld [vmem:[%s2878_s3 + $0x88] sm:$0xf]  ;;  %v1600_v23 = vld [vmem:[%s2878_s3 + $0x94] sm:$0xf0] }
  0x7f   :  { %v54_v25 = vpop.xlane.xlu1 %53  ;;  %v50_v26 = vpop.xlane.xlu0 %49  ;;  %v89_v36 = vsel %vm55_vm0, %v80_v35, 0.0 }
  0x80   :  { %v69_v28 = vmul.f32 %v1828_v15, %v54_v25  ;;  %v67_v29 = vmul.f32 %v1828_v15, %v50_v26  ;;  %v1380_v25 = vor.u32 %v1600_v23, %v1379_v22  ;;  %v1598_v26 = vld [vmem:[%s2878_s3 + $0x8c] sm:$0xf]  ;;  %v1312_v22 = vor.u32 %v1581_v14, %v1309_v18  ;;  %v1315_v23 = vld [vmem:[%s2878_s3 + $0x8] sm:$0xf] }
  0x82   :  { %v1846_v30 = vsub.f32 %v1822_v7, %v69_v28  ;;  %v1849_v31 = vsub.f32 %v1824_v8, %v67_v29  ;;  %v1384_v28 = vor.u32 %v1598_v26, %v1381_v27  ;;  %432 = vmatpush.bf16.msra.mxu2 %v1380_v25  ;;  %v1355_v29 = vld [vmem:[%s2878_s3 + $0x60] sm:$0xf]  ;;  %v1582_v25 = vld [vmem:[%s2878_s3 + $0xc] sm:$0xf]  ;;  %v1316_v26 = vor.u32 %v1584_v24, %v1315_v23  ;;  %v1317_v27 = vld [vmem:[%s2878_s3 + $0x18] sm:$0xf0] }
  0x84   :  { %v79_v33 = vmul.f32 %v1846_v30, %v1846_v30  ;;  %v77_v34 = vmul.f32 %v1849_v31, %v1849_v31  ;;  %455 = vmatpush.bf16.msra.mxu3 %v1384_v28  ;;  %v1320_v28 = vor.u32 %v1582_v25, %v1317_v27 }
  0x86   :  { %87 = vadd.xlane.f32.xlu2 %v79_v33  ;;  %83 = vadd.xlane.f32.xlu0 %v77_v34  ;;  %v1595_v33 = vld [vmem:[%s2878_s3 + $0x6c] sm:$0xf0]  ;;  %v1593_v34 = vld [vmem:[%s2878_s3 + $0x64] sm:$0xf] }
  0x87   :  { %v1356_v35 = vor.u32 %v1595_v33, %v1355_v29  ;;  %433 = vmatpush.bf16.msra.mxu2 %v1364_v40 }
  0x88   :  { %456 = vmatpush.bf16.msra.mxu3 %v1368_v43 }
  0x89   :  { %387 = vmatpush.bf16.msra.mxu0 %v1356_v35 }
  0x8b   :  { %434 = vmatpush.bf16.msra.mxu2 %v1348_v52 }
  0x8c   :  { %457 = vmatpush.bf16.msra.mxu3 %v1352_v55 }
  0x8d   :  { %388 = vmatpush.bf16.msra.mxu0 %v1340_v47 }
  0x8e   :  { %90 = vadd.xlane.f32.xlu0 %v89_v36  ;;  %v1357_v36 = vld [vmem:[%s2878_s3 + $0x70] sm:$0xf0] }
  0x8f   :  { %v1360_v39 = vor.u32 %v1593_v34, %v1357_v36  ;;  %435 = vmatpush.bf16.msra.mxu2 %v1332_v1 }
  0x90   :  { %458 = vmatpush.bf16.msra.mxu3 %v1336_v11 }
  0x91   :  { %410 = vmatpush.bf16.msra.mxu1 %v1360_v39  ;;  %389 = vmatpush.bf16.msra.mxu0 %v1324_v59 }
  0x93   :  { %436 = vmatpush.bf16.msra.mxu2 %v1316_v26 }
  0x94   :  { %459 = vmatpush.bf16.msra.mxu3 %v1320_v28 }
  0x95   :  { %411 = vmatpush.bf16.msra.mxu1 %v1344_v51  ;;  %390 = vmatpush.bf16.msra.mxu0 %v1308_v17 }
  0x99   :  { %412 = vmatpush.bf16.msra.mxu1 %v1328_v0 }
  0x9d   :  { %413 = vmatpush.bf16.msra.mxu1 %v1312_v22 }
  0xf1   :  { %v82_v63 = vpop.xlane.xlu2 %81  ;;  %v86_v9 = vpop.xlane.xlu1 %85 }
  0xf2   :  { %v92_v10 = vmul.f32 %v82_v63, %v1828_v15  ;;  %v94_v19 = vmul.f32 %v86_v9, %v1828_v15 }
  0xf4   :  { %v97_v16 = vadd.f32 1e-05, %v92_v10  ;;  %v99_v29 = vadd.f32 1e-05, %v94_v19  ;;  %v1668_v10 = vld [vmem:[%s2877_s2] ss:$0 sm:$0xff] }
  0xf6   :  { %1671 = vrsqrt.f32 %v97_v16  ;;  %vm108_vm3 = vweird.f32 %v97_v16  ;;  %vm128_vm10 = vweird.f32 %v99_v29 }
  0xf7   :  { %1673 = vrsqrt.f32 %v99_v29 }
  0xf9   :  { %v88_v33 = vpop.xlane.xlu2 %87  ;;  %v84_v34 = vpop.xlane.xlu0 %83 }
  0xfa   :  { %v95_v35 = vmul.f32 %v88_v33, %v1828_v15  ;;  %v93_v36 = vmul.f32 %v84_v34, %v1828_v15 }
  0xfc   :  { %v100_v37 = vadd.f32 1e-05, %v95_v35  ;;  %v98_v38 = vadd.f32 1e-05, %v93_v36  ;;  %v1672_v39 = vpop.eup %1671 }
  0xfd   :  { %v103_v40 = vmul.f32 %v1672_v39, %v97_v16  ;;  %v1674_v44 = vpop.eup %1673  ;;  %vm109_vm2 = vweird.f32 %v1672_v39 }
  0xfe   :  { %1675 = vrsqrt.f32 %v100_v37  ;;  %v123_v50 = vmul.f32 %v1674_v44, %v99_v29  ;;  %vm110_vm4 = vmor %vm108_vm3, %vm109_vm2  ;;  %vm118_vm6 = vweird.f32 %v98_v38  ;;  %vm138_vm8 = vweird.f32 %v100_v37 }
  0xff   :  { %1677 = vrsqrt.f32 %v98_v38  ;;  %v104_v41 = vmul.f32 %v1672_v39, %v103_v40  ;;  %vm129_vm11 = vweird.f32 %v1674_v44  ;;  %v1628_v40 = vld [vmem:[%s2879_s5 + $0x78] sm:$0xff] }
 0x100   :  { %v124_v56 = vmul.f32 %v1674_v44, %v123_v50  ;;  %vm130_vm13 = vmor %vm128_vm10, %vm129_vm11  ;;  %1191 = vmatpush.bf16.msrb.mxu1 %v1628_v40 }
 0x101   :  { %v91_v42 = vpop.xlane.xlu0 %90  ;;  %v105_v43 = vmul.f32 0.5, %v104_v41  ;;  %v208_v41 = vld [vmem:[%s2880_s4] sm:$0xf] }
 0x102   :  { %v96_v45 = vmul.f32 %v91_v42, %v1828_v15  ;;  %v125_v62 = vmul.f32 0.5, %v124_v56  ;;  %v1644_v42 = vld [vmem:[%s2879_s5 + $0xf8] sm:$0xff]  ;;  %v1635_v56 = vld [vmem:[%s2879_s5 + $0xb0] sm:$0xff] }
 0x103   :  { %v106_v47 = vsub.f32 1.5, %v105_v43  ;;  %v209_v43 = vunpack.c.l.bf16 %v208_v41  ;;  %1237 = vmatpush.bf16.msrb.mxu3 %v1644_v42 }
 0x104   :  { %v1676_v46 = vpop.eup %1675  ;;  %v101_v53 = vadd.f32 1e-05, %v96_v45  ;;  %v126_v11 = vsub.f32 1.5, %v125_v62 }
 0x105   :  { %v1678_v48 = vpop.eup %1677  ;;  %v133_v49 = vmul.f32 %v1676_v46, %v100_v37  ;;  %v107_v51 = vmul.f32 %v1672_v39, %v106_v47  ;;  %vm139_vm9 = vweird.f32 %v1676_v46  ;;  %v212_v45 = vperm.slane %v209_v43, 2  ;;  %v1627_v47 = vld [vmem:[%s2879_s5 + $0x70] sm:$0xff] }
 0x106   :  { %v113_v52 = vmul.f32 %v1678_v48, %v98_v38  ;;  %1679 = vrsqrt.f32 %v101_v53  ;;  %vm119_vm5 = vweird.f32 %v1678_v48  ;;  %vm140_vm12 = vmor %vm138_vm8, %vm139_vm9  ;;  %v127_v17 = vmul.f32 %v1674_v44, %v126_v11  ;;  %1192 = vmatpush.bf16.msrb.mxu1 %v1627_v47 }
 0x107   :  { %v134_v54 = vmul.f32 %v1676_v46, %v133_v49  ;;  %v111_v57 = vsel %vm110_vm4, %v1672_v39, %v107_v51  ;;  %vm120_vm7 = vmor %vm118_vm6, %vm119_vm5  ;;  %vm148_vm14 = vweird.f32 %v101_v53  ;;  %v1620_v39 = vld [vmem:[%s2879_s5 + $0x38] sm:$0xff]  ;;  %v2092_v49 = vperm.slane %v212_v45, 0  ;;  %v1617_v45 = vld [vmem:[%s2879_s5 + $0x20] sm:$0xff] }
 0x108   :  { %v114_v55 = vmul.f32 %v1678_v48, %v113_v52  ;;  %v152_v15 = vmul.f32 %v111_v57, %v1836_v21  ;;  %v131_v22 = vsel %vm130_vm13, %v1674_v44, %v127_v17  ;;  %1168 = vmatpush.bf16.msrb.mxu0 %v1620_v39  ;;  %v211_v44 = vperm.slane %v209_v43, 0  ;;  %v1643_v57 = vld [vmem:[%s2879_s5 + $0xf0] sm:$0xff] }
 0x109   :  { %v135_v59 = vmul.f32 0.5, %v134_v54  ;;  %v154_v25 = vmul.f32 %v131_v22, %v1833_v20  ;;  %v213_v52 = vperm.slane %v209_v43, 4  ;;  %1238 = vmatpush.bf16.msrb.mxu3 %v1643_v57 }
 0x10a   :  { %v115_v58 = vmul.f32 0.5, %v114_v55  ;;  %v160_v9 = vmul.f32 %v1667_v61, %v152_v15 }
 0x10b   :  { %v136_v0 = vsub.f32 1.5, %v135_v59  ;;  %v162_v28 = vmul.f32 %v1667_v61, %v154_v25 }
 0x10c   :  { %v116_v60 = vsub.f32 1.5, %v115_v58  ;;  %v1680_v2 = vpop.eup %1679  ;;  %v168_v14 = vadd.f32 %v1668_v10, %v160_v9 }
 0x10d   :  { %v137_v12 = vmul.f32 %v1676_v46, %v136_v0  ;;  %v143_v13 = vmul.f32 %v1680_v2, %v101_v53  ;;  %vm149_vm15 = vweird.f32 %v1680_v2  ;;  %v170_v34 = vadd.f32 %v1668_v10, %v162_v28 }
 0x10e   :  { %v117_v63 = vmul.f32 %v1678_v48, %v116_v60  ;;  %vm150_vm0 = vmor %vm148_vm14, %vm149_vm15  ;;  %v214_v53 = vperm.slane %v209_v43, 6  ;;  %v2108_v60 = vperm.slane %v213_v52, 0 }
 0x10f   :  { %v144_v19 = vmul.f32 %v1680_v2, %v143_v13  ;;  %v1634_v13 = vld [vmem:[%s2879_s5 + $0xa8] sm:$0xff] }
 0x110   :  { %v121_v1 = vsel %vm120_vm7, %v1678_v48, %v117_v63  ;;  %v2090_v48 = vperm.slane %v211_v44, 0  ;;  %v2110_v15 = vperm.slane %v214_v53, 0 }
 0x111   :  { %v153_v6 = vmul.f32 %v121_v1, %v1849_v31  ;;  %v141_v31 = vsel %vm140_vm12, %v1676_v46, %v137_v12  ;;  %v145_v24 = vmul.f32 0.5, %v144_v19  ;;  %v1619_v46 = vld [vmem:[%s2879_s5 + $0x30] sm:$0xff] }
 0x112   :  { %v155_v23 = vmul.f32 %v141_v31, %v1846_v30  ;;  %1169 = vmatpush.bf16.msrb.mxu0 %v1619_v46  ;;  %v1625_v46 = vld [vmem:[%s2879_s5 + $0x60] sm:$0xff] }
 0x113   :  { %v161_v21 = vmul.f32 %v1667_v61, %v153_v6  ;;  %v146_v27 = vsub.f32 1.5, %v145_v24 }
 0x114   :  { %v163_v26 = vmul.f32 %v1667_v61, %v155_v23 }
 0x115   :  { %v169_v16 = vadd.f32 %v1668_v10, %v161_v21  ;;  %v147_v33 = vmul.f32 %v1680_v2, %v146_v27  ;;  %v1626_v27 = vld [vmem:[%s2879_s5 + $0x68] sm:$0xff] }
 0x116   :  { %v171_v29 = vadd.f32 %v1668_v10, %v163_v26  ;;  %v1618_v26 = vld [vmem:[%s2879_s5 + $0x28] sm:$0xff]  ;;  %1193 = vmatpush.bf16.msrb.mxu1 %v1626_v27 }
 0x117   :  { %v173_v18 = vpack.c.bf16 %v169_v16, %v168_v14  ;;  %v151_v36 = vsel %vm150_vm0, %v1680_v2, %v147_v33  ;;  %1170 = vmatpush.bf16.msrb.mxu0 %v1618_v26 }
 0x118   :  { %v174_v35 = vpack.c.bf16 %v171_v29, %v170_v34  ;;  %v156_v30 = vmul.f32 %v151_v36, %v1852_v32  ;;  %v1636_v32 = vld [vmem:[%s2879_s5 + $0xb8] sm:$0xff] }
 0x119   :  { %391 = vmatmul.bf16.vlgmr.msra.gmra.mxu0 %v173_v18  ;;  %414 = vmatmul.bf16.vlgmr.msra.gmra.mxu1 %v173_v18 }
 0x11a   :  { %437 = vmatmul.bf16.vlgmr.msra.gmra.mxu2 %v173_v18  ;;  %460 = vmatmul.bf16.vlgmr.msra.gmra.mxu3 %v173_v18  ;;  %v164_v37 = vmul.f32 %v1667_v61, %v156_v30 }
 0x11b   :  { %1214 = vmatpush.bf16.msrb.mxu2 %v1636_v32  ;;  %1171 = vmatpush.bf16.msrb.mxu0 %v1617_v45 }
 0x11c   :  { %v172_v38 = vadd.f32 %v1668_v10, %v164_v37  ;;  %1194 = vmatpush.bf16.msrb.mxu1 %v1625_v46 }
 0x11e   :  { %v175_v20 = vpack.c.bf16 %v172_v38, %v172_v38 }
 0x11f   :  { %1215 = vmatpush.bf16.msrb.mxu2 %v1635_v56 }
 0x123   :  { %1216 = vmatpush.bf16.msrb.mxu2 %v1634_v13 }
 0x129   :  { %396 = vmatmul.bf16.gmra.mxu0 %v174_v35  ;;  %419 = vmatmul.bf16.gmra.mxu1 %v174_v35 }
 0x12a   :  { %442 = vmatmul.bf16.gmra.mxu2 %v174_v35  ;;  %465 = vmatmul.bf16.gmra.mxu3 %v174_v35 }
 0x139   :  { %401 = vmatmul.bf16.gmra.mxu0 %v175_v20  ;;  %424 = vmatmul.bf16.gmra.mxu1 %v175_v20 }
 0x13a   :  { %447 = vmatmul.bf16.gmra.mxu2 %v175_v20  ;;  %470 = vmatmul.bf16.gmra.mxu3 %v175_v20  ;;  %v1642_v20 = vld [vmem:[%s2879_s5 + $0xe8] sm:$0xff] }
 0x13b   :  { %1239 = vmatpush.bf16.msrb.mxu3 %v1642_v20  ;;  %v1624_v20 = vld [vmem:[%s2879_s5 + $0x58] sm:$0xff] }
 0x13c   :  { %1195 = vmatpush.bf16.msrb.mxu1 %v1624_v20 }
 0x196   :  { %v392_v50 = vpop.f32.mrf.mxu0  ;;  %v415_v51 = vpop.f32.mrf.mxu1 }
 0x197   :  { %v2095_v54 = vadd.f32 %v392_v50, %v2090_v48  ;;  %v2098_v55 = vadd.f32 %v415_v51, %v2092_v49  ;;  %v1633_v50 = vld [vmem:[%s2879_s5 + $0xa0] sm:$0xff] }
 0x198   :  { %v1641_v51 = vld [vmem:[%s2879_s5 + $0xe0] sm:$0xff]  ;;  %1217 = vmatpush.bf16.msrb.mxu2 %v1633_v50 }
 0x199   :  { %v1433_v58 = vmul.f32 -1.702, %v2095_v54  ;;  %v1434_v59 = vmul.f32 -1.702, %v2098_v55  ;;  %1240 = vmatpush.bf16.msrb.mxu3 %v1641_v51 }
 0x19b   :  { %v515_v61 = vmul.f32 1.442695, %v1433_v58  ;;  %v517_v62 = vmul.f32 1.442695, %v1434_v59 }
 0x19d   :  { %1681 = vpow2.f32 %v515_v61  ;;  %v438_v63 = vpop.f32.mrf.mxu2  ;;  %v461_v0 = vpop.f32.mrf.mxu3 }
 0x19e   :  { %1683 = vpow2.f32 %v517_v62  ;;  %v2113_v1 = vadd.f32 %v438_v63, %v2108_v60  ;;  %v2116_v2 = vadd.f32 %v461_v0, %v2110_v15  ;;  %v394_v6 = vpop.f32.mrf.mxu0  ;;  %v417_v9 = vpop.f32.mrf.mxu1 }
 0x19f   :  { %v2119_v10 = vadd.f32 %v394_v6, %v2090_v48  ;;  %v2122_v11 = vadd.f32 %v417_v9, %v2092_v49 }
 0x1a0   :  { %v1435_v21 = vmul.f32 -1.702, %v2113_v1  ;;  %v1436_v12 = vmul.f32 -1.702, %v2116_v2 }
 0x1a1   :  { %v1437_v14 = vmul.f32 -1.702, %v2119_v10  ;;  %v1438_v18 = vmul.f32 -1.702, %v2122_v11 }
 0x1a2   :  { %v519_v16 = vmul.f32 1.442695, %v1435_v21  ;;  %v521_v17 = vmul.f32 1.442695, %v1436_v12 }
 0x1a3   :  { %v1682_v31 = vpop.eup %1681  ;;  %v523_v23 = vmul.f32 1.442695, %v1437_v14  ;;  %v525_v28 = vmul.f32 1.442695, %v1438_v18 }
 0x1a4   :  { %v1684_v19 = vpop.eup %1683  ;;  %v2131_v22 = vadd.f32 1.0, %v1682_v31  ;;  %1685 = vpow2.f32 %v519_v16 }
 0x1a5   :  { %v2133_v24 = vadd.f32 1.0, %v1684_v19  ;;  %1687 = vpow2.f32 %v521_v17  ;;  %v440_v25 = vpop.f32.mrf.mxu2  ;;  %v463_v36 = vpop.f32.mrf.mxu3 }
 0x1a6   :  { %1689 = vrcp.f32 %v2131_v22  ;;  %v2144_v29 = vadd.f32 %v440_v25, %v2108_v60  ;;  %v397_v33 = vpop.f32.mrf.mxu0  ;;  %v2149_v38 = vpop.f32.mrf.mxu1  ;;  %v2164_v42 = vadd.f32 %v463_v36, %v2110_v15  ;;  %v584_v21 = vand.u32 2147483647, %v2131_v22 }
 0x1a7   :  { %1691 = vrcp.f32 %v2133_v24  ;;  %v2192_v63 = vadd.f32 %v397_v33, %v2090_v48  ;;  %v586_v16 = vand.u32 2147483648, %v2131_v22  ;;  %v599_v17 = vand.u32 2147483647, %v2133_v24  ;;  %v1640_v33 = vld [vmem:[%s2879_s5 + $0xd8] sm:$0xff] }
 0x1a8   :  { %1693 = vpow2.f32 %v523_v23  ;;  %v1439_v35 = vmul.f32 -1.702, %v2144_v29  ;;  %v1440_v57 = vmul.f32 -1.702, %v2164_v42  ;;  %v601_v19 = vand.u32 2147483648, %v2133_v24  ;;  %1241 = vmatpush.bf16.msrb.mxu3 %v1640_v33 }
 0x1a9   :  { %1695 = vpow2.f32 %v525_v28  ;;  %v1441_v23 = vmul.f32 -1.702, %v2192_v63  ;;  %vm580_vm1 = vweird.f32 %v2131_v22  ;;  %v1632_v28 = vld [vmem:[%s2879_s5 + $0x98] sm:$0xff]  ;;  %vm2225_vm3 = vcmp.eq.f32.partialorder %v584_v21, 8.507059e+37 }
 0x1aa   :  { %v1686_v34 = vpop.eup %1685  ;;  %v527_v44 = vmul.f32 1.442695, %v1439_v35  ;;  %v529_v12 = vmul.f32 1.442695, %v1440_v57  ;;  %vm595_vm4 = vweird.f32 %v2133_v24  ;;  %vm2238_vm5 = vcmp.eq.f32.partialorder %v599_v17, 8.507059e+37  ;;  %1218 = vmatpush.bf16.msrb.mxu2 %v1632_v28 }
 0x1ab   :  { %v1688_v30 = vpop.eup %1687  ;;  %v2147_v37 = vadd.f32 1.0, %v1686_v34  ;;  %v602_v50 = vor.u32 1.1754944e-38, %v601_v19  ;;  %v531_v51 = vmul.f32 1.442695, %v1441_v23 }
 0x1ac   :  { %v2154_v39 = vpop.eup %1689  ;;  %v2156_v40 = vadd.f32 1.0, %v1688_v30  ;;  %v1616_v30 = vld [vmem:[%s2879_s5 + $0x18] sm:$0xff] }
 0x1ad   :  { %v2158_v41 = vpop.eup %1691  ;;  %v576_v32 = vmul.f32 %v2154_v39, %v2131_v22  ;;  %1697 = vrcp.f32 %v2147_v37  ;;  %v2195_v6 = vpop.f32.mrf.mxu2  ;;  %vm581_vm2 = vweird.f32 %v2154_v39  ;;  %v616_v45 = vand.u32 2147483648, %v2147_v37  ;;  %1172 = vmatpush.bf16.msrb.mxu0 %v1616_v30 }
 0x1ae   :  { %v1694_v43 = vpop.eup %1693  ;;  %v591_v47 = vmul.f32 %v2158_v41, %v2133_v24  ;;  %1699 = vrcp.f32 %v2156_v40  ;;  %v2184_v58 = vpop.f32.mrf.mxu0  ;;  %vm2247_vm6 = vmor %vm580_vm1, %vm581_vm2  ;;  %vm596_vm7 = vweird.f32 %v2158_v41  ;;  %vm610_vm8 = vweird.f32 %v2147_v37 }
 0x1af   :  { %v1696_v52 = vpop.eup %1695  ;;  %v577_v53 = vsub.f32 1.0, %v576_v32  ;;  %v2181_v56 = vadd.f32 1.0, %v1694_v43  ;;  %1701 = vpow2.f32 %v527_v44  ;;  %v2200_v13 = vpop.f32.mrf.mxu3  ;;  %v587_v32 = vor.u32 1.1754944e-38, %v586_v16  ;;  %vm2274_vm9 = vmor %vm595_vm4, %vm596_vm7  ;;  %v1615_v43 = vld [vmem:[%s2879_s5 + $0x10] sm:$0xff] }
 0x1b0   :  { %v592_v61 = vsub.f32 1.0, %v591_v47  ;;  %v2189_v62 = vadd.f32 1.0, %v1696_v52  ;;  %v2202_v14 = vpop.f32.mrf.mxu1  ;;  %v631_v21 = vand.u32 2147483648, %v2156_v40  ;;  %v2279_v17 = vor.u32 1.1754944e-38, %v616_v45 }
 0x1b1   :  { %1703 = vrcp.f32 %v2181_v56  ;;  %v578_v0 = vmul.f32 %v2154_v39, %v577_v53  ;;  %vm625_vm10 = vweird.f32 %v2156_v40  ;;  %v646_v23 = vand.u32 2147483648, %v2181_v56  ;;  %1173 = vmatpush.bf16.msrb.mxu0 %v1615_v43 }
 0x1b2   :  { %v593_v31 = vmul.f32 %v2158_v41, %v592_v61  ;;  %1705 = vrcp.f32 %v2189_v62  ;;  %v644_v20 = vand.u32 2147483647, %v2181_v56  ;;  %vm640_vm13 = vweird.f32 %v2181_v56 }
 0x1b3   :  { %v2186_v59 = vpop.eup %1697  ;;  %v579_v26 = vadd.f32 %v2154_v39, %v578_v0  ;;  %1707 = vpow2.f32 %v529_v12  ;;  %v614_v0 = vand.u32 2147483647, %v2147_v37  ;;  %v2268_v12 = vadd.f32 %v2149_v38, %v2092_v49 }
 0x1b4   :  { %v2197_v9 = vpop.eup %1699  ;;  %v606_v18 = vmul.f32 %v2186_v59, %v2147_v37  ;;  %v594_v47 = vadd.f32 %v2158_v41, %v593_v31  ;;  %vm611_vm12 = vweird.f32 %v2186_v59  ;;  %vm655_vm2 = vweird.f32 %v2189_v62 }
 0x1b5   :  { %v1702_v25 = vpop.eup %1701  ;;  %v621_v27 = vmul.f32 %v2197_v9, %v2156_v40  ;;  %v583_v52 = vsel %vm2247_vm6, %v2154_v39, %v579_v26  ;;  %v2283_v31 = vpop.f32.mrf.mxu2  ;;  %vm2300_vm11 = vcmp.eq.f32.partialorder %v614_v0, 8.507059e+37  ;;  %vm626_vm14 = vweird.f32 %v2197_v9  ;;  %vm2350_vm0 = vmor %vm610_vm8, %vm611_vm12 }
 0x1b6   :  { %v2230_v36 = vadd.f32 1.0, %v1702_v25  ;;  %v607_v44 = vsub.f32 1.0, %v606_v18  ;;  %v2259_v57 = vpop.f32.mrf.mxu0  ;;  %v629_v18 = vand.u32 2147483647, %v2156_v40  ;;  %v588_v19 = vsel %vm2225_vm3, %v587_v32, %v583_v52  ;;  %vm2370_vm3 = vmor %vm625_vm10, %vm626_vm14 }
 0x1b7   :  { %v2223_v34 = vpop.eup %1703  ;;  %v622_v53 = vsub.f32 1.0, %v621_v27  ;;  %v598_v24 = vsel %vm2274_vm9, %v2158_v41, %v594_v47  ;;  %v2291_v25 = vpop.f32.mrf.mxu3  ;;  %v2304_v41 = vor.u32 1.1754944e-38, %v631_v21  ;;  %v1442_v32 = vmul.f32 -1.702, %v2268_v12 }
 0x1b8   :  { %v636_v22 = vmul.f32 %v2223_v34, %v2181_v56  ;;  %1709 = vrcp.f32 %v2230_v36  ;;  %v2261_v61 = vpop.eup %1705  ;;  %v608_v16 = vmul.f32 %v2186_v59, %v607_v44  ;;  %v2293_v26 = vpop.f32.mrf.mxu1  ;;  %v2310_v44 = vadd.f32 %v2195_v6, %v2108_v60  ;;  %v1613_v56 = vld [vmem:[%s2879_s5] sm:$0xff] }
 0x1b9   :  { %v1708_v38 = vpop.eup %1707  ;;  %1711 = vpow2.f32 %v531_v51  ;;  %v623_v27 = vmul.f32 %v2197_v9, %v622_v53  ;;  %v651_v33 = vmul.f32 %v2261_v61, %v2189_v62  ;;  %v2315_v46 = vmul.f32 %v588_v19, %v2095_v54 }
 0x1ba   :  { %v637_v28 = vsub.f32 1.0, %v636_v22  ;;  %v2298_v30 = vadd.f32 1.0, %v1708_v38  ;;  %v603_v47 = vsel %vm2238_vm5, %v602_v50, %v598_v24  ;;  %v609_v51 = vadd.f32 %v2186_v59, %v608_v16  ;;  %v1623_v50 = vld [vmem:[%s2879_s5 + $0x50] sm:$0xff] }
 0x1bb   :  { %vm2323_vm15 = vcmp.eq.f32.partialorder %v629_v18, 8.507059e+37  ;;  %v2330_v54 = vadd.f32 %v2200_v13, %v2110_v15  ;;  %v2334_v6 = vadd.f32 %v2184_v58, %v2090_v48  ;;  %v624_v53 = vadd.f32 %v2197_v9, %v623_v27  ;;  %1196 = vmatpush.bf16.msrb.mxu1 %v1623_v50 }
 0x1bc   :  { %1713 = vrcp.f32 %v2298_v30  ;;  %v638_v22 = vmul.f32 %v2223_v34, %v637_v28  ;;  %v2344_v0 = vor.u32 1.1754944e-38, %v646_v23  ;;  %v652_v13 = vsub.f32 1.0, %v651_v33 }
 0x1bd   :  { %v659_v16 = vand.u32 2147483647, %v2189_v62  ;;  %v533_v38 = vmul.f32 1.442695, %v1442_v32  ;;  %v1443_v19 = vmul.f32 -1.702, %v2310_v44  ;;  %v613_v24 = vsel %vm2350_vm0, %v2186_v59, %v609_v51 }
 0x1be   :  { %v2312_v45 = vpop.eup %1709  ;;  %v404_v21 = vpop.f32.mrf.mxu0  ;;  %vm641_vm1 = vweird.f32 %v2223_v34  ;;  %v661_v37 = vand.u32 2147483648, %v2189_v62  ;;  %vm2374_vm4 = vcmp.eq.f32.partialorder %v644_v20, 8.507059e+37  ;;  %v1444_v33 = vmul.f32 -1.702, %v2330_v54  ;;  %v1614_v20 = vld [vmem:[%s2879_s5 + $0x8] sm:$0xff] }
 0x1bf   :  { %v1712_v39 = vpop.eup %1711  ;;  %v666_v18 = vmul.f32 %v2312_v45, %v2230_v36  ;;  %1715 = vpow2.f32 %v533_v38  ;;  %v535_v59 = vmul.f32 1.442695, %v1443_v19  ;;  %v1445_v32 = vmul.f32 -1.702, %v2334_v6  ;;  %v1622_v21 = vld [vmem:[%s2879_s5 + $0x48] sm:$0xff]  ;;  %1174 = vmatpush.bf16.msrb.mxu0 %v1614_v20  ;;  %vm2418_vm5 = vmor %vm640_vm13, %vm641_vm1 }
 0x1c0   :  { %v2364_v23 = vadd.f32 1.0, %v1712_v39  ;;  %v427_v51 = vpop.f32.mrf.mxu1  ;;  %v628_v43 = vsel %vm2370_vm3, %v2197_v9, %v624_v53  ;;  %v639_v40 = vadd.f32 %v2223_v34, %v638_v22  ;;  %v653_v50 = vmul.f32 %v2261_v61, %v652_v13  ;;  %v1631_v53 = vld [vmem:[%s2879_s5 + $0x90] sm:$0xff]  ;;  %v2397_v22 = vpop.f32.mrf.mxu2  ;;  %1197 = vmatpush.bf16.msrb.mxu1 %v1622_v21 }
 0x1c1   :  { %v667_v58 = vsub.f32 1.0, %v666_v18  ;;  %v537_v38 = vmul.f32 1.442695, %v1444_v33  ;;  %v539_v9 = vmul.f32 1.442695, %v1445_v32  ;;  %v2399_v13 = vpop.f32.mrf.mxu3  ;;  %v2402_v19 = vmul.f32 %v603_v47, %v2098_v55  ;;  %1219 = vmatpush.bf16.msrb.mxu2 %v1631_v53 }
 0x1c2   :  { %1717 = vrcp.f32 %v2364_v23  ;;  %v2392_v39 = vpop.eup %1713  ;;  %v618_v27 = vsel %vm2300_vm11, %v2279_v17, %v613_v24  ;;  %v2407_v51 = vor.u32 1.1754944e-38, %v661_v37  ;;  %vm2422_vm6 = vcmp.eq.f32.partialorder %v659_v16, 8.507059e+37  ;;  %v1621_v16 = vld [vmem:[%s2879_s5 + $0x40] sm:$0xff] }
 0x1c3   :  { %1719 = vpow2.f32 %v535_v59  ;;  %v681_v18 = vmul.f32 %v2392_v39, %v2298_v30  ;;  %v1639_v59 = vld [vmem:[%s2879_s5 + $0xd0] sm:$0xff]  ;;  %v674_v35 = vand.u32 2147483647, %v2230_v36  ;;  %v676_v47 = vand.u32 2147483648, %v2230_v36  ;;  %1175 = vmatpush.bf16.msrb.mxu0 %v1613_v56 }
 0x1c4   :  { %1721 = vpow2.f32 %v537_v38  ;;  %v2430_v24 = vadd.f32 %v2202_v14, %v2092_v49  ;;  %v633_v37 = vsel %vm2323_vm15, %v2304_v41, %v628_v43  ;;  %v643_v33 = vsel %vm2418_vm5, %v2223_v34, %v639_v40  ;;  %1242 = vmatpush.bf16.msrb.mxu3 %v1639_v59  ;;  %v1630_v41 = vld [vmem:[%s2879_s5 + $0x88] sm:$0xff]  ;;  %1198 = vmatpush.bf16.msrb.mxu1 %v1621_v16 }
 0x1c5   :  { %v654_v14 = vadd.f32 %v2261_v61, %v653_v50  ;;  %vm656_vm7 = vweird.f32 %v2261_v61  ;;  %v1716_v32 = vpop.eup %1715  ;;  %v668_v20 = vmul.f32 %v2312_v45, %v667_v58  ;;  %v682_v21 = vsub.f32 1.0, %v681_v18  ;;  %v1638_v34 = vld [vmem:[%s2879_s5 + $0xc8] sm:$0xff]  ;;  %1220 = vmatpush.bf16.msrb.mxu2 %v1630_v41 }
 0x1c6   :  { %1723 = vpow2.f32 %v539_v9  ;;  %v1446_v38 = vmul.f32 -1.702, %v2430_v24  ;;  %v2457_v43 = vmul.f32 %v618_v27, %v2113_v1  ;;  %vm670_vm8 = vweird.f32 %v2230_v36  ;;  %vm2473_vm9 = vmor %vm655_vm2, %vm656_vm7 }
 0x1c7   :  { %v2460_v40 = vadd.f32 1.0, %v1716_v32  ;;  %v2464_v50 = vadd.f32 %v2283_v31, %v2108_v60  ;;  %v2467_v9 = vmul.f32 %v633_v37, %v2116_v2  ;;  %vm2477_vm10 = vcmp.eq.f32.partialorder %v674_v35, 8.507059e+37 }
 0x1c8   :  { %v2454_v52 = vpop.eup %1717  ;;  %v677_v31 = vor.u32 1.1754944e-38, %v676_v47  ;;  %v541_v18 = vmul.f32 1.442695, %v1446_v38  ;;  %v648_v2 = vsel %vm2374_vm4, %v2344_v0, %v643_v33  ;;  %v658_v62 = vsel %vm2473_vm9, %v2261_v61, %v654_v14  ;;  %1243 = vmatpush.bf16.msrb.mxu3 %v1638_v34  ;;  %v1629_v0 = vld [vmem:[%s2879_s5 + $0x80] sm:$0xff]  ;;  %v450_v28 = vpop.f32.mrf.mxu2 }
 0x1c9   :  { %v1720_v58 = vpop.eup %1719  ;;  %v696_v27 = vmul.f32 %v2454_v52, %v2364_v23  ;;  %vm671_vm11 = vweird.f32 %v2312_v45  ;;  %1725 = vrcp.f32 %v2460_v40  ;;  %v669_v55 = vadd.f32 %v2312_v45, %v668_v20  ;;  %v473_v56 = vpop.f32.mrf.mxu3  ;;  %v1637_v61 = vld [vmem:[%s2879_s5 + $0xc0] sm:$0xff]  ;;  %1221 = vmatpush.bf16.msrb.mxu2 %v1629_v0 }
 0x1ca   :  { %v1722_v59 = vpop.eup %1721  ;;  %v683_v35 = vmul.f32 %v2392_v39, %v682_v21  ;;  %v2493_v47 = vadd.f32 1.0, %v1720_v58  ;;  %1727 = vpow2.f32 %v541_v18  ;;  %v689_v16 = vand.u32 2147483647, %v2298_v30  ;;  %vm2522_vm13 = vmor %vm670_vm8, %vm671_vm11 }
 0x1cb   :  { %v697_v37 = vsub.f32 1.0, %v696_v27  ;;  %v2502_v33 = vadd.f32 1.0, %v1722_v59  ;;  %v1447_v14 = vmul.f32 -1.702, %v2464_v50  ;;  %vm685_vm12 = vweird.f32 %v2298_v30 }
 0x1cc   :  { %v1724_v32 = vpop.eup %1723  ;;  %v691_v20 = vand.u32 2147483648, %v2298_v30  ;;  %1729 = vrcp.f32 %v2493_v47  ;;  %v2510_v21 = vadd.f32 %v2291_v25, %v2110_v15  ;;  %v2513_v38 = vmul.f32 %v648_v2, %v2119_v10  ;;  %1244 = vmatpush.bf16.msrb.mxu3 %v1637_v61 }
 0x1cd   :  { %v663_v41 = vsel %vm2422_vm6, %v2407_v51, %v658_v62  ;;  %v704_v58 = vand.u32 2147483647, %v2364_v23  ;;  %v706_v25 = vand.u32 2147483648, %v2364_v23  ;;  %v673_v10 = vsel %vm2522_vm13, %v2312_v45, %v669_v55 }
 0x1ce   :  { %v684_v17 = vadd.f32 %v2392_v39, %v683_v35  ;;  %vm686_vm14 = vweird.f32 %v2392_v39  ;;  %1731 = vrcp.f32 %v2502_v33  ;;  %vm2536_vm15 = vcmp.eq.f32.partialorder %v689_v16, 8.507059e+37 }
 0x1cf   :  { %v2534_v36 = vpop.eup %1725  ;;  %v698_v1 = vmul.f32 %v2454_v52, %v697_v37  ;;  %v2541_v27 = vadd.f32 1.0, %v1724_v32  ;;  %v543_v18 = vmul.f32 1.442695, %v1447_v14  ;;  %v2544_v45 = vmul.f32 %v663_v41, %v2122_v11  ;;  %vm2552_vm1 = vmor %vm685_vm12, %vm686_vm14 }
 0x1d0   :  { %v1728_v2 = vpop.eup %1727  ;;  %v692_v62 = vor.u32 1.1754944e-38, %v691_v20  ;;  %vm700_vm0 = vweird.f32 %v2364_v23  ;;  %v1448_v59 = vmul.f32 -1.702, %v2510_v21  ;;  %v678_v55 = vsel %vm2477_vm10, %v677_v31, %v673_v10 }
 0x1d1   :  { %vm2556_vm2 = vcmp.eq.f32.partialorder %v704_v58, 8.507059e+37  ;;  %v707_v11 = vor.u32 1.1754944e-38, %v706_v25  ;;  %1733 = vrcp.f32 %v2541_v27  ;;  %v688_v53 = vsel %vm2552_vm1, %v2392_v39, %v684_v17 }
 0x1d2   :  { %v2561_v28 = vpop.eup %1729  ;;  %v711_v30 = vmul.f32 %v2534_v36, %v2460_v40  ;;  %v721_v31 = vand.u32 2147483648, %v2460_v40  ;;  %v2571_v56 = vadd.f32 %v2259_v57, %v2090_v48  ;;  %v699_v61 = vadd.f32 %v2454_v52, %v698_v1 }
 0x1d3   :  { %vm701_vm3 = vweird.f32 %v2454_v52  ;;  %v2575_v16 = vadd.f32 1.0, %v1728_v2  ;;  %1735 = vpow2.f32 %v543_v18  ;;  %v2580_v39 = vmul.f32 %v678_v55, %v2144_v29 }
 0x1d4   :  { %v2577_v37 = vpop.eup %1731  ;;  %v726_v14 = vmul.f32 %v2561_v28, %v2493_v47  ;;  %v545_v32 = vmul.f32 1.442695, %v1448_v59  ;;  %v2586_v48 = vadd.f32 %v2293_v26, %v2092_v49  ;;  %v693_v57 = vsel %vm2536_vm15, %v692_v62, %v688_v53  ;;  %vm2596_vm4 = vmor %vm700_vm0, %vm701_vm3 }
 0x1d5   :  { %v736_v20 = vand.u32 2147483648, %v2493_v47  ;;  %v741_v41 = vmul.f32 %v2577_v37, %v2502_v33  ;;  %1737 = vrcp.f32 %v2575_v16  ;;  %v712_v34 = vsub.f32 1.0, %v711_v30 }
 0x1d6   :  { %v719_v49 = vand.u32 2147483647, %v2460_v40  ;;  %v2601_v26 = vor.u32 1.1754944e-38, %v721_v31  ;;  %v2605_v58 = vadd.f32 %v2397_v22, %v2108_v60  ;;  %v703_v10 = vsel %vm2596_vm4, %v2454_v52, %v699_v61 }
 0x1d7   :  { %v2607_v25 = vpop.eup %1733  ;;  %v751_v23 = vand.u32 2147483648, %v2502_v33  ;;  %1739 = vpow2.f32 %v545_v32  ;;  %v1449_v17 = vmul.f32 -1.702, %v2571_v56  ;;  %v2615_v51 = vmul.f32 %v693_v57, %v2164_v42 }
 0x1d8   :  { %vm715_vm5 = vweird.f32 %v2460_v40  ;;  %v727_v1 = vsub.f32 1.0, %v726_v14  ;;  %v742_v18 = vsub.f32 1.0, %v741_v41  ;;  %v756_v60 = vmul.f32 %v2607_v25, %v2541_v27 }
 0x1d9   :  { %v1736_v22 = vpop.eup %1735  ;;  %vm716_vm6 = vweird.f32 %v2534_v36  ;;  %vm730_vm7 = vweird.f32 %v2493_v47  ;;  %v734_v52 = vand.u32 2147483647, %v2493_v47  ;;  %v2623_v2 = vor.u32 1.1754944e-38, %v736_v20 }
 0x1da   :  { %v749_v62 = vand.u32 2147483647, %v2502_v33  ;;  %v708_v42 = vsel %vm2556_vm2, %v707_v11, %v703_v10  ;;  %v713_v59 = vmul.f32 %v2534_v36, %v712_v34  ;;  %vm745_vm8 = vweird.f32 %v2502_v33  ;;  %vm2673_vm13 = vmor %vm715_vm5, %vm716_vm6 }
 0x1db   :  { %v757_v55 = vsub.f32 1.0, %v756_v60  ;;  %v2630_v35 = vadd.f32 1.0, %v1736_v22  ;;  %v2632_v53 = vpop.eup %1737  ;;  %v2634_v30 = vor.u32 1.1754944e-38, %v751_v23  ;;  %vm760_vm9 = vweird.f32 %v2541_v27 }
 0x1dc   :  { %v764_v31 = vand.u32 2147483647, %v2541_v27  ;;  %v547_v61 = vmul.f32 1.442695, %v1449_v17  ;;  %v728_v14 = vmul.f32 %v2561_v28, %v727_v1  ;;  %v743_v0 = vmul.f32 %v2577_v37, %v742_v18 }
 0x1dd   :  { %v771_v11 = vmul.f32 %v2632_v53, %v2575_v16  ;;  %v1450_v32 = vmul.f32 -1.702, %v2586_v48  ;;  %v1740_v57 = vpop.eup %1739  ;;  %v2644_v20 = vmul.f32 %v708_v42, %v2192_v63  ;;  %v758_v41 = vmul.f32 %v2607_v25, %v757_v55 }
 0x1de   :  { %v766_v29 = vand.u32 2147483648, %v2541_v27  ;;  %1741 = vrcp.f32 %v2630_v35  ;;  %v2650_v34 = vadd.f32 %v2534_v36, %v713_v59  ;;  %vm731_vm10 = vweird.f32 %v2561_v28 }
 0x1df   :  { %v772_v10 = vsub.f32 1.0, %v771_v11  ;;  %v781_v23 = vand.u32 2147483648, %v2575_v16  ;;  %vm746_vm11 = vweird.f32 %v2577_v37  ;;  %v2655_v17 = vadd.f32 1.0, %v1740_v57  ;;  %vm2688_vm15 = vmor %vm730_vm7, %vm731_vm10 }
 0x1e0   :  { %1743 = vpow2.f32 %v547_v61  ;;  %v1451_v63 = vmul.f32 -1.702, %v2605_v58  ;;  %v2659_v1 = vadd.f32 %v2561_v28, %v728_v14  ;;  %v2662_v18 = vadd.f32 %v2577_v37, %v743_v0  ;;  %vm2698_vm1 = vmor %vm745_vm8, %vm746_vm11 }
 0x1e1   :  { %vm2664_vm12 = vcmp.eq.f32.partialorder %v764_v31, 8.507059e+37  ;;  %v779_v22 = vand.u32 2147483647, %v2575_v16  ;;  %v549_v42 = vmul.f32 1.442695, %v1450_v32  ;;  %v759_v55 = vadd.f32 %v2607_v25, %v758_v41 }
 0x1e2   :  { %vm761_vm14 = vweird.f32 %v2607_v25  ;;  %v767_v61 = vor.u32 1.1754944e-38, %v766_v29  ;;  %1745 = vrcp.f32 %v2655_v17  ;;  %v718_v31 = vsel %vm2673_vm13, %v2534_v36, %v2650_v34 }
 0x1e3   :  { %v773_v0 = vmul.f32 %v2632_v53, %v772_v10  ;;  %vm775_vm0 = vweird.f32 %v2575_v16  ;;  %v782_v11 = vor.u32 1.1754944e-38, %v781_v23  ;;  %1747 = vpow2.f32 %v549_v42  ;;  %vm2726_vm3 = vmor %vm760_vm9, %vm761_vm14 }
 0x1e4   :  { %v1742_v32 = vpop.eup %1741  ;;  %v551_v47 = vmul.f32 1.442695, %v1451_v63  ;;  %v2704_v41 = vadd.f32 %v2399_v13, %v2110_v15  ;;  %v900_v29 = vpack.c.bf16 %v2513_v38, %v2315_v46  ;;  %vm2710_vm2 = vcmp.eq.f32.partialorder %v719_v49, 8.507059e+37 }
 0x1e5   :  { %v733_v33 = vsel %vm2688_vm15, %v2561_v28, %v2659_v1  ;;  %v748_v15 = vsel %vm2698_vm1, %v2577_v37, %v2662_v18  ;;  %vm776_vm4 = vweird.f32 %v2632_v53  ;;  %vm2731_vm5 = vcmp.eq.f32.partialorder %v779_v22, 8.507059e+37 }
 0x1e6   :  { %v786_v40 = vmul.f32 %v1742_v32, %v2630_v35  ;;  %v1744_v38 = vpop.eup %1743  ;;  %vm2736_vm6 = vcmp.eq.f32.partialorder %v734_v52, 8.507059e+37  ;;  %v763_v27 = vsel %vm2726_vm3, %v2607_v25, %v759_v55  ;;  %v794_v37 = vand.u32 2147483647, %v2630_v35  ;;  %1176 = vmatmul.bf16.vlgmr.msrb.gmra.mxu0 %v900_v29  ;;  %vm2767_vm9 = vmor %vm775_vm0, %vm776_vm4 }
 0x1e7   :  { %1749 = vpow2.f32 %v551_v47  ;;  %v1452_v49 = vmul.f32 -1.702, %v2704_v41  ;;  %vm2745_vm7 = vcmp.eq.f32.partialorder %v749_v62, 8.507059e+37  ;;  %v774_v63 = vadd.f32 %v2632_v53, %v773_v0 }
 0x1e8   :  { %v787_v52 = vsub.f32 1.0, %v786_v40  ;;  %v2750_v1 = vadd.f32 1.0, %v1744_v38  ;;  %v901_v18 = vpack.c.bf16 %v2544_v45, %v2402_v19  ;;  %v1746_v22 = vpop.eup %1745  ;;  %v796_v25 = vand.u32 2147483648, %v2630_v35 }
 0x1e9   :  { %v553_v42 = vmul.f32 1.442695, %v1452_v49  ;;  %v902_v55 = vpack.c.bf16 %v2580_v39, %v2457_v43  ;;  %v903_v62 = vpack.c.bf16 %v2615_v51, %v2467_v9  ;;  %vm791_vm8 = vweird.f32 %v1742_v32  ;;  %v1748_v57 = vpop.eup %1747 }
 0x1ea   :  { %v788_v14 = vmul.f32 %v1742_v32, %v787_v52  ;;  %v801_v0 = vmul.f32 %v1746_v22, %v2655_v17  ;;  %1751 = vrcp.f32 %v2750_v1  ;;  %1199 = vmatmul.bf16.vlgmr.msrb.gmra.mxu1 %v901_v18  ;;  %v768_v19 = vsel %vm2664_vm12, %v767_v61, %v763_v27 }
 0x1eb   :  { %vm790_vm10 = vweird.f32 %v2630_v35  ;;  %vm2772_vm11 = vcmp.eq.f32.partialorder %v794_v37, 8.507059e+37  ;;  %1753 = vpow2.f32 %v553_v42  ;;  %1222 = vmatmul.bf16.vlgmr.msrb.gmra.mxu2 %v902_v55  ;;  %1245 = vmatmul.bf16.vlgmr.msrb.gmra.mxu3 %v903_v62  ;;  %v778_v45 = vsel %vm2767_vm9, %v2632_v53, %v774_v63 }
 0x1ec   :  { %v789_v39 = vadd.f32 %v1742_v32, %v788_v14  ;;  %v802_v51 = vsub.f32 1.0, %v801_v0  ;;  %v2779_v16 = vadd.f32 1.0, %v1748_v57  ;;  %vm792_vm12 = vmor %vm790_vm10, %vm791_vm8  ;;  %v797_v61 = vor.u32 1.1754944e-38, %v796_v25 }
 0x1ed   :  { %v1750_v60 = vpop.eup %1749  ;;  %vm806_vm14 = vweird.f32 %v1746_v22  ;;  %v809_v35 = vand.u32 2147483647, %v2655_v17  ;;  %v811_v47 = vand.u32 2147483648, %v2655_v17  ;;  %v723_v53 = vsel %vm2710_vm2, %v2601_v26, %v718_v31 }
 0x1ee   :  { %v793_v29 = vsel %vm792_vm12, %v1742_v32, %v789_v39  ;;  %v803_v46 = vmul.f32 %v1746_v22, %v802_v51  ;;  %1755 = vrcp.f32 %v2779_v16  ;;  %v2785_v40 = vadd.f32 1.0, %v1750_v60 }
 0x1ef   :  { %v887_v38 = vmul.f32 %v768_v19, %v2334_v6  ;;  %v783_v27 = vsel %vm2731_vm5, %v782_v11, %v778_v45  ;;  %v798_v32 = vsel %vm2772_vm11, %v797_v61, %v793_v29  ;;  %v738_v59 = vsel %vm2736_vm6, %v2623_v2, %v733_v33 }
 0x1f0   :  { %v2800_v37 = vpop.eup %1751  ;;  %v804_v49 = vadd.f32 %v1746_v22, %v803_v46  ;;  %vm805_vm13 = vweird.f32 %v2655_v17  ;;  %1757 = vrcp.f32 %v2785_v40  ;;  %v753_v6 = vsel %vm2745_vm7, %v2634_v30, %v748_v15 }
 0x1f1   :  { %v1754_v36 = vpop.eup %1753  ;;  %vm807_vm15 = vmor %vm805_vm13, %vm806_vm14  ;;  %vm810_vm0 = vcmp.eq.f32.partialorder %v809_v35, 8.507059e+37  ;;  %v812_v26 = vor.u32 1.1754944e-38, %v811_v47  ;;  %v816_v34 = vmul.f32 %v2800_v37, %v2750_v1  ;;  %v888_v31 = vmul.f32 %v783_v27, %v2430_v24 }
 0x1f2   :  { %v889_v2 = vmul.f32 %v798_v32, %v2464_v50  ;;  %v808_v11 = vsel %vm807_vm15, %v1746_v22, %v804_v49  ;;  %v2815_v17 = vadd.f32 1.0, %v1754_v36  ;;  %v904_v33 = vpack.c.bf16 %v887_v38, %v2644_v20 }
 0x1f3   :  { %v813_v10 = vsel %vm810_vm0, %v812_v26, %v808_v11  ;;  %v817_v13 = vsub.f32 1.0, %v816_v34  ;;  %v884_v30 = vmul.f32 %v723_v53, %v2268_v12  ;;  %v885_v15 = vmul.f32 %v738_v59, %v2310_v44 }
 0x1f4   :  { %v1756_v28 = vpop.eup %1755  ;;  %v890_v23 = vmul.f32 %v813_v10, %v2510_v21  ;;  %1759 = vrcp.f32 %v2815_v17  ;;  %v886_v24 = vmul.f32 %v753_v6, %v2330_v54  ;;  %vm821_vm1 = vweird.f32 %v2800_v37 }
 0x1f5   :  { %v818_v50 = vmul.f32 %v2800_v37, %v817_v13  ;;  %v831_v63 = vmul.f32 %v1756_v28, %v2779_v16  ;;  %v905_v18 = vpack.c.bf16 %v888_v31, %v884_v30  ;;  %v906_v22 = vpack.c.bf16 %v889_v2, %v885_v15 }
 0x1f6   :  { %v1758_v52 = vpop.eup %1757  ;;  %1181 = vmatmul.bf16.gmra.mxu0 %v904_v33  ;;  %v907_v20 = vpack.c.bf16 %v890_v23, %v886_v24  ;;  %v826_v25 = vand.u32 2147483648, %v2750_v1  ;;  %vm820_vm2 = vweird.f32 %v2750_v1  ;;  %v824_v54 = vand.u32 2147483647, %v2750_v1 }
 0x1f7   :  { %v819_v12 = vadd.f32 %v2800_v37, %v818_v50  ;;  %v832_v44 = vsub.f32 1.0, %v831_v63  ;;  %v846_v21 = vmul.f32 %v1758_v52, %v2785_v40  ;;  %vm2831_vm3 = vmor %vm820_vm2, %vm821_vm1  ;;  %vm836_vm4 = vweird.f32 %v1756_v28 }
 0x1f8   :  { %v839_v0 = vand.u32 2147483647, %v2779_v16  ;;  %v841_v57 = vand.u32 2147483648, %v2779_v16  ;;  %vm851_vm5 = vweird.f32 %v1758_v52  ;;  %v827_v9 = vor.u32 1.1754944e-38, %v826_v25 }
 0x1f9   :  { %v833_v42 = vmul.f32 %v1756_v28, %v832_v44  ;;  %v847_v55 = vsub.f32 1.0, %v846_v21  ;;  %v823_v19 = vsel %vm2831_vm3, %v2800_v37, %v819_v12  ;;  %vm835_vm6 = vweird.f32 %v2779_v16 }
 0x1fa   :  { %v1760_v62 = vpop.eup %1759  ;;  %1204 = vmatmul.bf16.gmra.mxu1 %v905_v18  ;;  %v856_v45 = vand.u32 2147483648, %v2785_v40  ;;  %vm825_vm7 = vcmp.eq.f32.partialorder %v824_v54, 8.507059e+37  ;;  %vm2843_vm8 = vmor %vm835_vm6, %vm836_vm4  ;;  %vm850_vm9 = vweird.f32 %v2785_v40  ;;  %v854_v61 = vand.u32 2147483647, %v2785_v40 }
 0x1fb   :  { %1227 = vmatmul.bf16.gmra.mxu2 %v906_v22  ;;  %1250 = vmatmul.bf16.gmra.mxu3 %v907_v20  ;;  %v834_v1 = vadd.f32 %v1756_v28, %v833_v42  ;;  %v848_v43 = vmul.f32 %v1758_v52, %v847_v55  ;;  %v861_v39 = vmul.f32 %v1760_v62, %v2815_v17  ;;  %vm852_vm10 = vmor %vm850_vm9, %vm851_vm5  ;;  %vm840_vm11 = vcmp.eq.f32.partialorder %v839_v0, 8.507059e+37 }
 0x1fc   :  { %v828_v35 = vsel %vm825_vm7, %v827_v9, %v823_v19  ;;  %v842_v29 = vor.u32 1.1754944e-38, %v841_v57  ;;  %v871_v53 = vand.u32 2147483648, %v2815_v17  ;;  %v857_v38 = vor.u32 1.1754944e-38, %v856_v45 }
 0x1fd   :  { %v849_v60 = vadd.f32 %v1758_v52, %v848_v43  ;;  %v838_v47 = vsel %vm2843_vm8, %v1756_v28, %v834_v1  ;;  %v862_v16 = vsub.f32 1.0, %v861_v39  ;;  %vm866_vm12 = vweird.f32 %v1760_v62 }
 0x1fe   :  { %v869_v32 = vand.u32 2147483647, %v2815_v17  ;;  %v891_v37 = vmul.f32 %v828_v35, %v2571_v56  ;;  %v843_v59 = vsel %vm840_vm11, %v842_v29, %v838_v47  ;;  %vm855_vm14 = vcmp.eq.f32.partialorder %v854_v61, 8.507059e+37 }
 0x1ff   :  { %v853_v46 = vsel %vm852_vm10, %v1758_v52, %v849_v60  ;;  %v863_v27 = vmul.f32 %v1760_v62, %v862_v16  ;;  %vm865_vm13 = vweird.f32 %v2815_v17  ;;  %v872_v36 = vor.u32 1.1754944e-38, %v871_v53 }
 0x200   :  { %v858_v40 = vsel %vm855_vm14, %v857_v38, %v853_v46  ;;  %vm867_vm15 = vmor %vm865_vm13, %vm866_vm12  ;;  %v892_v6 = vmul.f32 %v843_v59, %v2586_v48  ;;  %vm870_vm0 = vcmp.eq.f32.partialorder %v869_v32, 8.507059e+37  ;;  %v908_v34 = vpack.c.bf16 %v891_v37, %v891_v37 }
 0x201   :  { %v864_v49 = vadd.f32 %v1760_v62, %v863_v27  ;;  %v893_v31 = vmul.f32 %v858_v40, %v2605_v58  ;;  %v1762_v17 = vmov 0.0  }
 0x202   :  { %v909_v56 = vpack.c.bf16 %v892_v6, %v892_v6  ;;  %34 = vst [vmem:[#allocation2 + $0x18] sm:$0x3] %v1762_v17 }
 0x203   :  { %v868_v26 = vsel %vm867_vm15, %v1760_v62, %v864_v49  ;;  %v910_v10 = vpack.c.bf16 %v893_v31, %v893_v31 }
 0x204   :  { %v873_v2 = vsel %vm870_vm0, %v872_v36, %v868_v26 }
 0x205   :  { %v894_v11 = vmul.f32 %v873_v2, %v2704_v41  ;;  %v1278_v41 = vld [vmem:[%s2881_s6] sm:$0x1] }
 0x206   :  { %1186 = vmatmul.bf16.gmra.mxu0 %v908_v34  ;;  %v1279_v63 = vunpack.c.l.bf16 %v1278_v41 }
 0x207   :  { %v911_v33 = vpack.c.bf16 %v894_v11, %v894_v11 }
 0x208   :  { %v1280_v12 = vperm.slane %v1279_v63, 0 }
 0x209   :  { %v899_v40 = vld [vmem:[#allocation2 + $0x18] sm:$0x3] }
 0x20a   :  { %1209 = vmatmul.bf16.gmra.mxu1 %v909_v56 }
 0x20b   :  { %1232 = vmatmul.bf16.gmra.mxu2 %v910_v10  ;;  %1255 = vmatmul.bf16.gmra.mxu3 %v911_v33 }
 0x263   :  { %v1177_v13 = vpop.f32.mrf.mxu0 }
 0x267   :  { %v1200_v28 = vpop.f32.mrf.mxu1 }
 0x268   :  { %v1201_v30 = vadd.f32 %v1200_v28, %v1177_v13 }
 0x26b   :  { %v1179_v48 = vpop.f32.mrf.mxu0 }
 0x26e   :  { %v1223_v15 = vpop.f32.mrf.mxu2  ;;  %v1246_v23 = vpop.f32.mrf.mxu3 }
 0x26f   :  { %v1202_v24 = vpop.f32.mrf.mxu1  ;;  %v1224_v58 = vadd.f32 %v1223_v15, %v1201_v30 }
 0x270   :  { %v1203_v18 = vadd.f32 %v1202_v24, %v1179_v48 }
 0x271   :  { %v1247_v50 = vadd.f32 %v1246_v23, %v1224_v58 }
 0x273   :  { %v1182_v52 = vpop.f32.mrf.mxu0  ;;  %v1281_v54 = vadd.f32 %v1280_v12, %v1247_v50 }
 0x275   :  { %v1286_v57 = vadd.f32 %v1814_v4, %v1281_v54 }
 0x276   :  { %v1225_v22 = vpop.f32.mrf.mxu2  ;;  %v1248_v20 = vpop.f32.mrf.mxu3 }
 0x277   :  { %v1205_v44 = vpop.f32.mrf.mxu1  ;;  %v1226_v21 = vadd.f32 %v1225_v22, %v1203_v18 }
 0x278   :  { %v1206_v55 = vadd.f32 %v1205_v44, %v1182_v52 }
 0x279   :  { %v1249_v25 = vadd.f32 %v1248_v20, %v1226_v21 }
 0x27b   :  { %v1184_v42 = vpop.f32.mrf.mxu0  ;;  %v1282_v62 = vadd.f32 %v1280_v12, %v1249_v25 }
 0x27d   :  { %v1287_v19 = vadd.f32 %v1824_v8, %v1282_v62 }
 0x27e   :  { %v1228_v14 = vpop.f32.mrf.mxu2  ;;  %v1251_v0 = vpop.f32.mrf.mxu3 }
 0x27f   :  { %v1207_v1 = vpop.f32.mrf.mxu1  ;;  %v1229_v43 = vadd.f32 %v1228_v14, %v1206_v55  ;;  %v1656_v9 = vpack.c.bf16 %v1287_v19, %v1286_v57 }
 0x280   :  { %v1208_v51 = vadd.f32 %v1207_v1, %v1184_v42 }
 0x281   :  { %v1252_v45 = vadd.f32 %v1251_v0, %v1229_v43  ;;  %1657 = vst [vmem:[%s2882_s7] sm:$0xff] %v1656_v9  }
 0x283   :  { %v1187_v39 = vpop.f32.mrf.mxu0  ;;  %v1283_v29 = vadd.f32 %v1280_v12, %v1252_v45 }
 0x285   :  { %v1288_v27 = vadd.f32 %v1812_v3, %v1283_v29 }
 0x286   :  { %v1230_v60 = vpop.f32.mrf.mxu2  ;;  %v1253_v61 = vpop.f32.mrf.mxu3 }
 0x287   :  { %v1210_v35 = vpop.f32.mrf.mxu1  ;;  %v1231_v47 = vadd.f32 %v1230_v60, %v1208_v51 }
 0x288   :  { %v1211_v4 = vadd.f32 %v1210_v35, %v1187_v39 }
 0x289   :  { %v1254_v16 = vadd.f32 %v1253_v61, %v1231_v47 }
 0x28b   :  { %v1189_v46 = vpop.f32.mrf.mxu0  ;;  %v1284_v53 = vadd.f32 %v1280_v12, %v1254_v16 }
 0x28d   :  { %v1289_v32 = vadd.f32 %v1822_v7, %v1284_v53 }
 0x28e   :  { %v1233_v8 = vpop.f32.mrf.mxu2  ;;  %v1256_v38 = vpop.f32.mrf.mxu3 }
 0x28f   :  { %v1212_v37 = vpop.f32.mrf.mxu1  ;;  %v1234_v59 = vadd.f32 %v1233_v8, %v1211_v4  ;;  %v1661_v49 = vpack.c.bf16 %v1289_v32, %v1288_v27 }
 0x291   :  { %v1257_v36 = vadd.f32 %v1256_v38, %v1234_v59  ;;  %1664 = vst [vmem:[%s2882_s7 + $0x8] sm:$0xff] %v1661_v49  }
 0x293   :  { %v1264_v6 = vadd.f32 %v1257_v36, %v899_v40 }
 0x295   :  { %1269 = vst [vmem:[#allocation2 + $0x18] sm:$0x3] %v1264_v6 }
 0x296   :  { %v1235_v26 = vpop.f32.mrf.mxu2  ;;  %v1258_v34 = vpop.f32.mrf.mxu3 }
 0x29c   :  { %v1277_v31 = vld [vmem:[#allocation2 + $0x18] sm:$0x3] }
 0x29d   :  { %v1285_v2 = vadd.f32 %v1280_v12, %v1277_v31 }
 0x29f   :  { %v1290_v11 = vadd.f32 %v1285_v2, %v1816_v5 }
 0x2a1   :  { %v1295_v3 = vpack.c.bf16 %v1290_v11, %v1290_v11 }
 0x2a3   :  { %1300 = vst [vmem:[%s2882_s7 + $0x10] sm:$0x1] %v1295_v3 }

// kernel: _lambda_.13
= control target key start
LH: loop header
LB: loop body
LE: loop exit
PB: predicated region body
PF: predicated region fallthrough
CT: control target
= control target key end

     0   :  { %vm25_vm0 = vcmask 1041408   ;;  %s310_s0 = inlined_call_operand.vmem [shape: bf16[2,128], index: 0, kind: input, shape index: {}]   ;;  %s311_s1 = inlined_call_operand.vmem [shape: f32[1,128], index: 1, kind: input, shape index: {}]   ;;  %s312_s2 = inlined_call_operand.vmem [shape: f32[1,128], index: 2, kind: input, shape index: {}]   ;;  %s313_s3 = inlined_call_operand.vmem [shape: bf16[128,128], index: 3, kind: input, shape index: {}]   ;;  %s314_s4 = inlined_call_operand.vmem [shape: f32[1,128], index: 4, kind: input, shape index: {}]   ;;  %s315_s5 = inlined_call_operand.hbm [shape: f32[2,128], index: 5, kind: output, shape index: {}]  }
   0x1   :  { %v21_v0 = vld [vmem:[%s310_s0] sm:$0x1] }
   0x2   :  { %v22_v1 = vunpack.c.l.bf16 %v21_v0 }
   0x3   :  { %10 = vsyncpa [#allocation3], 0  ;;  %v237_v3 = vmov 128.0   ;;  %v201_v4 = vld [vmem:[%s313_s3 + $0x38] sm:$0xff]  ;;  %v200_v16 = vld [vmem:[%s313_s3 + $0x30] sm:$0xff]  ;;  %s238_s15 = smov [#allocation2]  }
   0x4   :  { %v26_v2 = vsel %vm25_vm0, %v22_v1, 0.0  ;;  %207 = vrcp.f32 %v237_v3  ;;  %132 = vmatpush.bf16.msra.mxu0 %v201_v4  ;;  %v199_v17 = vld [vmem:[%s313_s3 + $0x28] sm:$0xff]  ;;  %v198_v18 = vld [vmem:[%s313_s3 + $0x20] sm:$0xff]  ;;  %v197_v19 = vld [vmem:[%s313_s3 + $0x18] sm:$0xff]  ;;  %s151_s16 = sshll.u32 %s238_s15, 4  ;;  %s152_s16 = int_to_ptr.vmem [resolvable:$true] %s151_s16 }
   0x5   :  { %27 = vadd.xlane.f32.xlu0 %v26_v2  ;;  %v196_v20 = vld [vmem:[%s313_s3 + $0x10] sm:$0xff]  ;;  %v195_v21 = vld [vmem:[%s313_s3 + $0x8] sm:$0xff]  ;;  %v194_v22 = vld [vmem:[%s313_s3] sm:$0xff] }
   0x6   :  { %v204_v32 = vld [vmem:[%s311_s1] ss:$0 sm:$0xff]  ;;  %s153_s1 = sshll.u32 %s315_s5, 4  ;;  %s154_s1 = int_to_ptr.hbm [resolvable:$true] %s153_s1 }
   0x7   :  { %v205_v35 = vld [vmem:[%s312_s2] ss:$0 sm:$0xff] }
   0x8   :  { %133 = vmatpush.bf16.msra.mxu0 %v200_v16  ;;  %v206_v39 = vld [vmem:[%s314_s4] ss:$0 sm:$0xff] }
   0xa   :  { %v208_v5 = vpop.eup %207 }
   0xb   :  { %v30_v6 = vmul.f32 128.0, %v208_v5  ;;  %vm34_vm1 = vweird.f32 %v208_v5 }
   0xc   :  { %134 = vmatpush.bf16.msra.mxu0 %v199_v17 }
   0xd   :  { %v31_v7 = vsub.f32 1.0, %v30_v6 }
   0xf   :  { %v32_v8 = vmul.f32 %v208_v5, %v31_v7 }
  0x10   :  { %135 = vmatpush.bf16.msra.mxu0 %v198_v18 }
  0x11   :  { %v33_v9 = vadd.f32 %v208_v5, %v32_v8 }
  0x13   :  { %v35_v10 = vsel %vm34_vm1, %v208_v5, %v33_v9 }
  0x14   :  { %136 = vmatpush.bf16.msra.mxu0 %v197_v19 }
  0x18   :  { %137 = vmatpush.bf16.msra.mxu0 %v196_v20 }
  0x1c   :  { %138 = vmatpush.bf16.msra.mxu0 %v195_v21 }
  0x20   :  { %139 = vmatpush.bf16.msra.mxu0 %v194_v22 }
  0x78   :  { %v28_v11 = vpop.xlane.xlu0 %27 }
  0x79   :  { %v36_v12 = vmul.f32 %v35_v10, %v28_v11 }
  0x7b   :  { %v37_v13 = vsub.f32 %v22_v1, %v36_v12 }
  0x7d   :  { %v38_v14 = vmul.f32 %v37_v13, %v37_v13 }
  0x7f   :  { %v39_v15 = vsel %vm25_vm0, %v38_v14, 0.0 }
  0x80   :  { %40 = vadd.xlane.f32.xlu0 %v39_v15 }
  0xf3   :  { %v41_v23 = vpop.xlane.xlu0 %40 }
  0xf4   :  { %v42_v24 = vmul.f32 %v41_v23, %v35_v10 }
  0xf6   :  { %v43_v25 = vadd.f32 1e-05, %v42_v24 }
  0xf8   :  { %209 = vrsqrt.f32 %v43_v25  ;;  %vm50_vm3 = vweird.f32 %v43_v25 }
  0xfe   :  { %v210_v26 = vpop.eup %209 }
  0xff   :  { %v45_v27 = vmul.f32 %v210_v26, %v43_v25  ;;  %vm51_vm2 = vweird.f32 %v210_v26 }
 0x100   :  { %vm52_vm4 = vmor %vm50_vm3, %vm51_vm2 }
 0x101   :  { %v46_v28 = vmul.f32 %v210_v26, %v45_v27 }
 0x103   :  { %v47_v29 = vmul.f32 0.5, %v46_v28 }
 0x105   :  { %v48_v30 = vsub.f32 1.5, %v47_v29 }
 0x107   :  { %v49_v31 = vmul.f32 %v210_v26, %v48_v30 }
 0x109   :  { %v53_v33 = vsel %vm52_vm4, %v210_v26, %v49_v31 }
 0x10a   :  { %v54_v34 = vmul.f32 %v53_v33, %v37_v13 }
 0x10c   :  { %v58_v36 = vmul.f32 %v204_v32, %v54_v34 }
 0x10e   :  { %v62_v37 = vadd.f32 %v205_v35, %v58_v36 }
 0x110   :  { %v63_v38 = vpack.c.bf16 %v62_v37, %v62_v37 }
 0x112   :  { %140 = vmatmul.bf16.vlgmr.msra.gmra.mxu0 %v63_v38 }
 0x18f   :  { %v141_v40 = vpop.f32.mrf.mxu0 }
 0x190   :  { %v142_v41 = vadd.f32 %v206_v39, %v141_v40 }
 0x192   :  { %145 = vst [vmem:[#allocation2] sm:$0x3] %v142_v41 }
 0x193   :  { %156 = dma.vmem_to_hbm [thread:$0]  %s152_s16, 32, %s154_s1, [#allocation3]  }
 0x197   :  { %v143_v42 = vpop.f32.mrf.mxu0 }
 0x198   :  { %235 = dma.done.wait [#allocation3], 32  }
 0x199   :  { %236 = vsyncadd [#allocation3], 4294967264 }
 0x19a   :  { %161 = vsyncpa [#allocation3], 1 }

// kernel: _lambda_.9
= control target key start
LH: loop header
LB: loop body
LE: loop exit
PB: predicated region body
PF: predicated region fallthrough
CT: control target
= control target key end

     0   :  { %s1274_s24 = smov 0   ;;  %s1567_s0 = inlined_call_operand.vmem [shape: bf16[2,17,128], index: 0, kind: input, shape index: {}]   ;;  %s1568_s1 = inlined_call_operand.vmem [shape: f32[1,128], index: 1, kind: input, shape index: {}]   ;;  %s1569_s2 = inlined_call_operand.vmem [shape: f32[1,128], index: 2, kind: input, shape index: {}]   ;;  %s1570_s3 = inlined_call_operand.vmem [shape: bf16[128,384], index: 3, kind: input, shape index: {}]   ;;  %s1571_s4 = inlined_call_operand.vmem [shape: bf16[1,384], index: 4, kind: input, shape index: {}]   ;;  %s1572_s5 = inlined_call_operand.vmem [shape: bf16[128,128], index: 5, kind: input, shape index: {}]   ;;  %s1573_s6 = inlined_call_operand.vmem [shape: bf16[1,128], index: 6, kind: input, shape index: {}]   ;;  %s1574_s7 = inlined_call_operand.vmem [shape: bf16[2,17,128], index: 7, kind: output, shape index: {}]  }
   0x1 LB: > { %s986_s25 = sadd.s32 4294967295, %s1229_s24   ;;  %p990_p0 = scmp.ge.s32.totalorder %s1229_s24, 1  ;;  %s1229_s24 = sphi %s1274_s24, %s17_s24  }
   0x2   : > { %p237_p1 = scmp.lt.s32.totalorder %s1229_s24, 3 }
   0x4   : > { %p238_p2 = pnand %p990_p0, %p237_p1 }
   0x5   : > { %p269_p3 = scmp.lt.s32.totalorder (!%p238_p2), %s986_s25, 1  ;;  %s1232_s9 = smov (!%p238_p2), 64  }
   0x6   : > { %241 = sbr.rel (%p238_p2) target bundleno = 1364 (0x554), region = 48 }
   0xb   : > { %s1576_s25 = smov (!%p269_p3, %s986_s25), 1  ;;  %vm292_vm0 = vcmask 1040384   ;;  %v1231_v6 = vmov 128.0   ;;  %v1079_v26 = vld [vmem:[%s1570_s3 + $0xa8] sm:$0xf]  ;;  %vm607_vm11 = vcmask 523264  }
   0xc   : > { %s1172_s26 = smul.u32 12, %s1576_s25  ;;  %1191 = vrcp.f32 %v1231_v6  ;;  %v1153_v27 = vld [vmem:[%s1570_s3 + $0xb0] sm:$0xf0]  ;;  %v1152_v28 = vld [vmem:[%s1570_s3 + $0xac] sm:$0xf]  ;;  %vm638_vm12 = vcmask 138240  }
   0xd   : > { %v1080_v29 = vor.u32 %v1153_v27, %v1079_v26  ;;  %v1081_v30 = vld [vmem:[%s1570_s3 + $0xb4] sm:$0xf0]  ;;  %v1087_v31 = vld [vmem:[%s1570_s3 + $0xb0] sm:$0xf]  ;;  %v1154_v32 = vld [vmem:[%s1570_s3 + $0xb8] sm:$0xf0] }
   0xe   : > { %s273_s29 = scalar_lea.vmem %s1567_s0, %s1172_s26  ;;  %v1084_v33 = vor.u32 %v1152_v28, %v1081_v30  ;;  %v1088_v34 = vor.u32 %v1154_v32, %v1087_v31  ;;  %v1067_v35 = vld [vmem:[%s1570_s3 + $0x90] sm:$0xf]  ;;  %v1150_v36 = vld [vmem:[%s1570_s3 + $0x98] sm:$0xf0]  ;;  %v1149_v37 = vld [vmem:[%s1570_s3 + $0x94] sm:$0xf]  ;;  %s278_s10 = scalar_lea.vmem %s1574_s7, %s1172_s26 }
   0xf   : > { %v1164_v0 = vld [vmem:[%s273_s29] sm:$0xff]   ;;  %v282_v1 = vld [vmem:[%s273_s29 + $0x8] sm:$0x1]  ;;  %544 = vmatpush.bf16.msra.mxu0 %v1080_v29  ;;  %v1068_v38 = vor.u32 %v1150_v36, %v1067_v35  ;;  %v1075_v40 = vld [vmem:[%s1570_s3 + $0x98] sm:$0xf]  ;;  %vm645_vm13 = vcmask 131072  }
  0x10   : > { %v1290_v2 = vunpack.c.l.bf16 %v1164_v0  ;;  %v1292_v3 = vunpack.c.l.bf16 %v282_v1  ;;  %v1297_v5 = vunpack.c.h.bf16 %v1164_v0  ;;  %562 = vmatpush.bf16.msra.mxu1 %v1084_v33  ;;  %580 = vmatpush.bf16.msra.mxu2 %v1088_v34  ;;  %v1069_v39 = vld [vmem:[%s1570_s3 + $0x9c] sm:$0xf0]  ;;  %v1151_v41 = vld [vmem:[%s1570_s3 + $0xa0] sm:$0xf0]  ;;  %v1055_v44 = vld [vmem:[%s1570_s3 + $0x78] sm:$0xf] }
  0x11   : > { %v1072_v42 = vor.u32 %v1149_v37, %v1069_v39  ;;  %v1076_v43 = vor.u32 %v1151_v41, %v1075_v40  ;;  %v1147_v45 = vld [vmem:[%s1570_s3 + $0x80] sm:$0xf0]  ;;  %v1146_v46 = vld [vmem:[%s1570_s3 + $0x7c] sm:$0xf]  ;;  %v1057_v48 = vld [vmem:[%s1570_s3 + $0x84] sm:$0xf0] }
  0x12   : > { %288 = vadd.xlane.f32.xlu0 %v1290_v2  ;;  %v293_v4 = vsel %vm292_vm0, %v1292_v3, 0.0  ;;  %v1192_v7 = vpop.eup %1191  ;;  %v1056_v47 = vor.u32 %v1147_v45, %v1055_v44  ;;  %v1063_v49 = vld [vmem:[%s1570_s3 + $0x80] sm:$0xf]  ;;  %v1148_v50 = vld [vmem:[%s1570_s3 + $0x88] sm:$0xf0]  ;;  %v1060_v51 = vor.u32 %v1146_v46, %v1057_v48 }
  0x13   : > { %294 = vadd.xlane.f32.xlu1 %v293_v4  ;;  %v297_v8 = vmul.f32 128.0, %v1192_v7  ;;  %vm301_vm1 = vweird.f32 %v1192_v7  ;;  %545 = vmatpush.bf16.msra.mxu0 %v1068_v38  ;;  %v1064_v52 = vor.u32 %v1148_v50, %v1063_v49  ;;  %v1043_v53 = vld [vmem:[%s1570_s3 + $0x60] sm:$0xf]  ;;  %v1144_v54 = vld [vmem:[%s1570_s3 + $0x68] sm:$0xf0] }
  0x14   : > { %563 = vmatpush.bf16.msra.mxu1 %v1072_v42  ;;  %581 = vmatpush.bf16.msra.mxu2 %v1076_v43  ;;  %v1143_v55 = vld [vmem:[%s1570_s3 + $0x64] sm:$0xf]  ;;  %v1044_v56 = vor.u32 %v1144_v54, %v1043_v53  ;;  %v1045_v57 = vld [vmem:[%s1570_s3 + $0x6c] sm:$0xf0]  ;;  %v1051_v58 = vld [vmem:[%s1570_s3 + $0x68] sm:$0xf] }
  0x15   : > { %v298_v9 = vsub.f32 1.0, %v297_v8  ;;  %v1145_v59 = vld [vmem:[%s1570_s3 + $0x70] sm:$0xf0]  ;;  %v1048_v60 = vor.u32 %v1143_v55, %v1045_v57  ;;  %v1031_v62 = vld [vmem:[%s1570_s3 + $0x48] sm:$0xf] }
  0x16   : > { %v1052_v61 = vor.u32 %v1145_v59, %v1051_v58  ;;  %v1141_v63 = vld [vmem:[%s1570_s3 + $0x50] sm:$0xf0]  ;;  %v1140_v0 = vld [vmem:[%s1570_s3 + $0x4c] sm:$0xf]  ;;  %v1033_v4 = vld [vmem:[%s1570_s3 + $0x54] sm:$0xf0] }
  0x17   : > { %v299_v10 = vmul.f32 %v1192_v7, %v298_v9  ;;  %546 = vmatpush.bf16.msra.mxu0 %v1056_v47  ;;  %v1032_v1 = vor.u32 %v1141_v63, %v1031_v62  ;;  %v1039_v6 = vld [vmem:[%s1570_s3 + $0x50] sm:$0xf]  ;;  %v1036_v8 = vor.u32 %v1140_v0, %v1033_v4  ;;  %v1009_v27 = vld [vmem:[%s1570_s3 + $0x24] sm:$0xf0]  ;;  %v1015_v28 = vld [vmem:[%s1570_s3 + $0x20] sm:$0xf] }
  0x18   : > { %564 = vmatpush.bf16.msra.mxu1 %v1060_v51  ;;  %582 = vmatpush.bf16.msra.mxu2 %v1064_v52  ;;  %v1136_v29 = vld [vmem:[%s1570_s3 + $0x28] sm:$0xf0]  ;;  %v995_v34 = vld [vmem:[%s1570_s3] sm:$0xf]  ;;  %v1131_v36 = vld [vmem:[%s1570_s3 + $0x4] sm:$0xf] }
  0x19   : > { %v300_v11 = vadd.f32 %v1192_v7, %v299_v10  ;;  %v1019_v10 = vld [vmem:[%s1570_s3 + $0x30] sm:$0xf]  ;;  %v1016_v31 = vor.u32 %v1136_v29, %v1015_v28  ;;  %v1132_v35 = vld [vmem:[%s1570_s3 + $0x8] sm:$0xf0]  ;;  %v1003_v39 = vld [vmem:[%s1570_s3 + $0x8] sm:$0xf] }
  0x1a   : > { %290 = vadd.xlane.f32.xlu0 %v1297_v5  ;;  %v996_v37 = vor.u32 %v1132_v35, %v995_v34  ;;  %v997_v38 = vld [vmem:[%s1570_s3 + $0xc] sm:$0xf0]  ;;  %v1133_v40 = vld [vmem:[%s1570_s3 + $0x10] sm:$0xf0]  ;;  %vm926_vm14 = vsmask.f32 256 }
  0x1b   : > { %v1300_v12 = vsel %vm301_vm1, %v1192_v7, %v300_v11  ;;  %547 = vmatpush.bf16.msra.mxu0 %v1044_v56  ;;  %v1142_v7 = vld [vmem:[%s1570_s3 + $0x58] sm:$0xf0]  ;;  %v1000_v42 = vor.u32 %v1131_v36, %v997_v38  ;;  %v1004_v43 = vor.u32 %v1133_v40, %v1003_v39  ;;  %vm927_vm15 = vmand %vm292_vm0, %vm926_vm14 }
  0x1c   : > { %565 = vmatpush.bf16.msra.mxu1 %v1048_v60  ;;  %583 = vmatpush.bf16.msra.mxu2 %v1052_v61  ;;  %v1040_v9 = vor.u32 %v1142_v7, %v1039_v6  ;;  %v1138_v11 = vld [vmem:[%s1570_s3 + $0x38] sm:$0xf0] }
  0x1f   : > { %548 = vmatpush.bf16.msra.mxu0 %v1032_v1 }
  0x20   : > { %566 = vmatpush.bf16.msra.mxu1 %v1036_v8  ;;  %584 = vmatpush.bf16.msra.mxu2 %v1040_v9  ;;  %v1190_v9 = vld [vmem:[%s1569_s2] ss:$0 sm:$0xff] }
  0x85   : > { %v289_v13 = vpop.xlane.xlu0 %288 }
  0x86   : > { %v303_v14 = vmul.f32 %v1300_v12, %v289_v13  ;;  %v295_v17 = vpop.xlane.xlu1 %294  ;;  %v1137_v13 = vld [vmem:[%s1570_s3 + $0x34] sm:$0xf] }
  0x87   : > { %v305_v19 = vmul.f32 %v1300_v12, %v295_v17  ;;  %v1027_v17 = vld [vmem:[%s1570_s3 + $0x38] sm:$0xf] }
  0x88   : > { %v1304_v15 = vsub.f32 %v1290_v2, %v303_v14  ;;  %v1020_v14 = vor.u32 %v1138_v11, %v1019_v10 }
  0x89   : > { %v1314_v22 = vsub.f32 %v1292_v3, %v305_v19 }
  0x8a   : > { %v309_v16 = vmul.f32 %v1304_v15, %v1304_v15  ;;  %549 = vmatpush.bf16.msra.mxu0 %v1020_v14 }
  0x8b   : > { %v311_v24 = vmul.f32 %v1314_v22, %v1314_v22 }
  0x8c   : > { %312 = vadd.xlane.f32.xlu1 %v309_v16  ;;  %v1021_v16 = vld [vmem:[%s1570_s3 + $0x3c] sm:$0xf0] }
  0x8d   : > { %v291_v18 = vpop.xlane.xlu0 %290  ;;  %v316_v25 = vsel %vm292_vm0, %v311_v24, 0.0  ;;  %v1024_v19 = vor.u32 %v1137_v13, %v1021_v16  ;;  %v1135_v24 = vld [vmem:[%s1570_s3 + $0x20] sm:$0xf0] }
  0x8e   : > { %v304_v20 = vmul.f32 %v1300_v12, %v291_v18  ;;  %v1139_v18 = vld [vmem:[%s1570_s3 + $0x40] sm:$0xf0] }
  0x8f   : > { %567 = vmatpush.bf16.msra.mxu1 %v1024_v19 }
  0x90   : > { %v1311_v21 = vsub.f32 %v1297_v5, %v304_v20  ;;  %v1028_v20 = vor.u32 %v1139_v18, %v1027_v17 }
  0x92   : > { %v310_v23 = vmul.f32 %v1311_v21, %v1311_v21  ;;  %585 = vmatpush.bf16.msra.mxu2 %v1028_v20 }
  0x94   : > { %314 = vadd.xlane.f32.xlu2 %v310_v23  ;;  %v1007_v23 = vld [vmem:[%s1570_s3 + $0x18] sm:$0xf] }
  0x95   : > { %v1008_v26 = vor.u32 %v1135_v24, %v1007_v23  ;;  %v404_v24 = vld [vmem:[%s1571_s4] sm:$0x7] }
  0x96   : > { %586 = vmatpush.bf16.msra.mxu2 %v1016_v31 }
  0x97   : > { %550 = vmatpush.bf16.msra.mxu0 %v1008_v26 }
  0x9a   : > { %587 = vmatpush.bf16.msra.mxu2 %v1004_v43 }
  0x9b   : > { %551 = vmatpush.bf16.msra.mxu0 %v996_v37 }
  0x9c   : > { %317 = vadd.xlane.f32.xlu2 %v316_v25  ;;  %v1134_v25 = vld [vmem:[%s1570_s3 + $0x1c] sm:$0xf] }
  0x9d   : > { %v1012_v30 = vor.u32 %v1134_v25, %v1009_v27  ;;  %v405_v25 = vunpack.c.l.bf16 %v404_v24 }
  0x9f   : > { %568 = vmatpush.bf16.msra.mxu1 %v1012_v30  ;;  %v407_v26 = vperm.slane %v405_v25, 0  ;;  %v408_v29 = vperm.slane %v405_v25, 2 }
  0xa1   : > { %v413_v30 = vperm.slane %v407_v26, 0  ;;  %v414_v31 = vperm.slane %v408_v29, 0 }
  0xa3   : > { %569 = vmatpush.bf16.msra.mxu1 %v1000_v42 }
  0xff   : > { %v313_v32 = vpop.xlane.xlu1 %312 }
 0x100   : > { %v319_v33 = vmul.f32 %v313_v32, %v1300_v12 }
 0x102   : > { %v322_v41 = vadd.f32 1e-05, %v319_v33 }
 0x104   : > { %1193 = vrsqrt.f32 %v322_v41  ;;  %vm331_vm3 = vweird.f32 %v322_v41 }
 0x107   : > { %v315_v44 = vpop.xlane.xlu2 %314 }
 0x108   : > { %v320_v45 = vmul.f32 %v315_v44, %v1300_v12 }
 0x10a   : > { %v1194_v46 = vpop.eup %1193  ;;  %v323_v47 = vadd.f32 1e-05, %v320_v45 }
 0x10b   : > { %v326_v48 = vmul.f32 %v1194_v46, %v322_v41  ;;  %vm332_vm2 = vweird.f32 %v1194_v46 }
 0x10c   : > { %1195 = vrsqrt.f32 %v323_v47  ;;  %vm333_vm4 = vmor %vm331_vm3, %vm332_vm2  ;;  %vm341_vm6 = vweird.f32 %v323_v47 }
 0x10d   : > { %v327_v49 = vmul.f32 %v1194_v46, %v326_v48 }
 0x10f   : > { %v328_v50 = vmul.f32 0.5, %v327_v49  ;;  %v318_v51 = vpop.xlane.xlu2 %317 }
 0x110   : > { %v321_v52 = vmul.f32 %v318_v51, %v1300_v12  ;;  %v1189_v12 = vld [vmem:[%s1568_s1] ss:$0 sm:$0xff] }
 0x111   : > { %v329_v53 = vsub.f32 1.5, %v328_v50 }
 0x112   : > { %v1196_v54 = vpop.eup %1195  ;;  %v324_v55 = vadd.f32 1e-05, %v321_v52 }
 0x113   : > { %v330_v56 = vmul.f32 %v1194_v46, %v329_v53  ;;  %v336_v57 = vmul.f32 %v1196_v54, %v323_v47  ;;  %vm342_vm5 = vweird.f32 %v1196_v54 }
 0x114   : > { %1197 = vrsqrt.f32 %v324_v55  ;;  %vm343_vm7 = vmor %vm341_vm6, %vm342_vm5  ;;  %vm351_vm8 = vweird.f32 %v324_v55 }
 0x115   : > { %v337_v58 = vmul.f32 %v1196_v54, %v336_v57  ;;  %v334_v59 = vsel %vm333_vm4, %v1194_v46, %v330_v56  ;;  %v409_v46 = vperm.slane %v405_v25, 4  ;;  %v1233_v57 = vmov 0  }
 0x116   : > { %v355_v63 = vmul.f32 %v334_v59, %v1304_v15 }
 0x117   : > { %v338_v60 = vmul.f32 0.5, %v337_v58  ;;  %v415_v50 = vperm.slane %v409_v46, 0  ;;  %v1485_v58 = vsel %vm292_vm0, 65535, %v1233_v57 }
 0x118   : > { %v361_v8 = vmul.f32 %v1189_v12, %v355_v63 }
 0x119   : > { %v339_v61 = vsub.f32 1.5, %v338_v60 }
 0x11a   : > { %v1198_v62 = vpop.eup %1197  ;;  %v367_v13 = vadd.f32 %v1190_v9, %v361_v8 }
 0x11b   : > { %v340_v0 = vmul.f32 %v1196_v54, %v339_v61  ;;  %v346_v1 = vmul.f32 %v1198_v62, %v324_v55  ;;  %vm352_vm9 = vweird.f32 %v1198_v62 }
 0x11c   : > { %vm353_vm10 = vmor %vm351_vm8, %vm352_vm9 }
 0x11d   : > { %v344_v4 = vsel %vm343_vm7, %v1196_v54, %v340_v0  ;;  %v347_v6 = vmul.f32 %v1198_v62, %v346_v1 }
 0x11e   : > { %v356_v7 = vmul.f32 %v344_v4, %v1311_v21 }
 0x11f   : > { %v348_v10 = vmul.f32 0.5, %v347_v6 }
 0x120   : > { %v362_v11 = vmul.f32 %v1189_v12, %v356_v7 }
 0x121   : > { %v349_v15 = vsub.f32 1.5, %v348_v10 }
 0x122   : > { %v368_v14 = vadd.f32 %v1190_v9, %v362_v11 }
 0x123   : > { %v350_v16 = vmul.f32 %v1198_v62, %v349_v15 }
 0x124   : > { %v370_v17 = vpack.c.bf16 %v368_v14, %v367_v13 }
 0x125   : > { %v354_v18 = vsel %vm353_vm10, %v1198_v62, %v350_v16 }
 0x126   : > { %552 = vmatmul.bf16.vlgmr.msra.gmra.mxu0 %v370_v17  ;;  %570 = vmatmul.bf16.vlgmr.msra.gmra.mxu1 %v370_v17  ;;  %v357_v21 = vmul.f32 %v354_v18, %v1314_v22 }
 0x127   : > { %588 = vmatmul.bf16.vlgmr.msra.gmra.mxu2 %v370_v17 }
 0x128   : > { %v363_v19 = vmul.f32 %v1189_v12, %v357_v21 }
 0x12a   : > { %v369_v20 = vadd.f32 %v1190_v9, %v363_v19 }
 0x12c   : > { %v371_v23 = vpack.c.bf16 %v369_v20, %v369_v20 }
 0x136   : > { %557 = vmatmul.bf16.gmra.mxu0 %v371_v23  ;;  %575 = vmatmul.bf16.gmra.mxu1 %v371_v23 }
 0x137   : > { %593 = vmatmul.bf16.gmra.mxu2 %v371_v23 }
 0x1a3   : > { %v553_v27 = vpop.f32.mrf.mxu0  ;;  %v571_v28 = vpop.f32.mrf.mxu1 }
 0x1a4   : > { %v554_v32 = vadd.f32 %v553_v27, %v413_v30  ;;  %v572_v35 = vadd.f32 %v571_v28, %v414_v31 }
 0x1a6   : > { %v598_v38 = vmul.f32 0.125, %v554_v32 }
 0x1aa   : > { %v589_v33 = vpop.f32.mrf.mxu2 }
 0x1ab   : > { %v555_v22 = vpop.f32.mrf.mxu0  ;;  %v573_v34 = vpop.f32.mrf.mxu1  ;;  %v590_v63 = vadd.f32 %v589_v33, %v415_v50 }
 0x1ac   : > { %v556_v36 = vadd.f32 %v555_v22, %v413_v30  ;;  %v574_v37 = vadd.f32 %v573_v34, %v414_v31 }
 0x1ae   : > { %v599_v39 = vmul.f32 0.125, %v556_v36  ;;  %v603_v40 = vpack.c.bf16 %v574_v37, %v572_v35 }
 0x1b0   : > { %v601_v41 = vpack.c.bf16 %v599_v39, %v598_v38  ;;  %712 = vrot.lane.b32.xlu1 %v603_v40, %s1232_s9  ;;  %v615_v61 = vsel %vm607_vm11, %v603_v40, 0 }
 0x1b2   : > { %v591_v42 = vpop.f32.mrf.mxu2  ;;  %706 = vrot.lane.b32.xlu2 %v601_v41, %s1232_s9 }
 0x1b3   : > { %v558_v43 = vpop.f32.mrf.mxu0  ;;  %v576_v44 = vpop.f32.mrf.mxu1  ;;  %v592_v60 = vadd.f32 %v591_v42, %v415_v50 }
 0x1b4   : > { %v577_v45 = vadd.f32 %v576_v44, %v414_v31  ;;  %v559_v47 = vadd.f32 %v558_v43, %v413_v30 }
 0x1b5   : > { %v1490_v0 = vpack.c.bf16 %v592_v60, %v590_v63 }
 0x1b6   : > { %v604_v48 = vpack.c.bf16 %v577_v45, %v577_v45  ;;  %v600_v51 = vmul.f32 0.125, %v559_v47 }
 0x1b8   : > { %714 = vrot.lane.b32.xlu0 %v604_v48, %s1232_s9  ;;  %v618_v49 = vsel %vm607_vm11, %v604_v48, 0  ;;  %v602_v59 = vpack.c.bf16 %v600_v51, %v600_v51 }
 0x1b9   : > { %626 = vmatpush.bf16.xpose.msra.mxu3 %v618_v49 }
 0x1ba   : > { %v594_v52 = vpop.f32.mrf.mxu2 }
 0x1bb   : > { %v595_v53 = vadd.f32 %v594_v52, %v415_v50  ;;  %v560_v54 = vpop.f32.mrf.mxu0  ;;  %v578_v55 = vpop.f32.mrf.mxu1 }
 0x1bd   : > { %v606_v56 = vpack.c.bf16 %v595_v53, %v595_v53 }
 0x1bf   : > { %v684_v62 = vand.u32 %v1485_v58, %v606_v56 }
 0x1c0   : > { %708 = vrot.lane.b32.xlu0 %v602_v59, %s1232_s9 }
 0x1c1   : > { %627 = vmatpush.bf16.xpose.msra.mxu3 %v615_v61 }
 0x1c2   : > { %v596_v12 = vpop.f32.mrf.mxu2 }
 0x1c8   : > { %1089 = vmatmul.msk.bf16.vlgmr.msra.gmra.mxu3 %vm607_vm11, %v601_v41 }
 0x1c9   : > { %692 = vmatpush.bf16.msrb.mxu3 %v684_v62 }
 0x1cd   : > { %693 = vmatpush.bf16.msrb.mxu3 %v1490_v0 }
 0x1d8   : > { %1090 = vmatmul.msk.bf16.gmra.mxu3 %vm607_vm11, %v602_v59 }
 0x20c   : > { %v707_v8 = vpop.permute.xlu2 %706 }
 0x222   : > { %v713_v6 = vpop.permute.xlu1 %712 }
 0x223   : > { %v723_v7 = vsel %vm607_vm11, %v713_v6, 0 }
 0x22a   : > { %v715_v1 = vpop.permute.xlu0 %714 }
 0x22b   : > { %v726_v4 = vsel %vm607_vm11, %v715_v1, 0 }
 0x22c   : > { %734 = vmatpush.bf16.xpose.msrb.mxu0 %v726_v4 }
 0x232   : > { %v709_v9 = vpop.permute.xlu0 %708 }
 0x234   : > { %735 = vmatpush.bf16.xpose.msrb.mxu0 %v723_v7 }
 0x23b   : > { %1093 = vmatmul.msk.bf16.vlgmr.msrb.gmra.mxu0 %vm607_vm11, %v707_v8 }
 0x24b   : > { %v629_v10 = vpop.f32.mrf.mxu3  ;;  %1094 = vmatmul.msk.bf16.gmra.mxu0 %vm607_vm11, %v709_v9 }
 0x24c   : > { %v639_v18 = vsel %vm638_vm12, %v629_v10, -inf }
 0x253   : > { %v631_v11 = vpop.f32.mrf.mxu3 }
 0x254   : > { %v642_v20 = vsel %vm638_vm12, %v631_v11, -inf }
 0x25b   : > { %v1499_v15 = vpop.f32.mrf.mxu3 }
 0x25c   : > { %v646_v41 = vsel %vm645_vm13, %v1499_v15, -inf }
 0x263   : > { %v636_v13 = vpop.f32.mrf.mxu3 }
 0x2b8   : > { %v737_v14 = vpop.f32.mrf.mxu0 }
 0x2b9   : > { %v746_v16 = vsel %vm638_vm12, %v737_v14, -inf }
 0x2ba   : > { %747 = vmax.xlane.f32.xlu2 %v746_v16 }
 0x2c0   : > { %v739_v17 = vpop.f32.mrf.mxu0 }
 0x2c1   : > { %v749_v21 = vsel %vm638_vm12, %v739_v17, -inf }
 0x2c2   : > { %640 = vmax.xlane.f32.xlu2 %v639_v18  ;;  %750 = vmax.xlane.f32.xlu1 %v749_v21  ;;  %v1162_v18 = vld [vmem:[%s1572_s5 + $0x38] sm:$0xff] }
 0x2c3   : > { %899 = vmatpush.bf16.msrb.mxu2 %v1162_v18 }
 0x2c8   : > { %v742_v19 = vpop.f32.mrf.mxu0 }
 0x2c9   : > { %v752_v23 = vsel %vm645_vm13, %v742_v19, -inf }
 0x2ca   : > { %643 = vmax.xlane.f32.xlu1 %v642_v20  ;;  %753 = vmax.xlane.f32.xlu0 %v752_v23  ;;  %v1161_v20 = vld [vmem:[%s1572_s5 + $0x30] sm:$0xff]  ;;  %v1160_v23 = vld [vmem:[%s1572_s5 + $0x28] sm:$0xff] }
 0x2cb   : > { %900 = vmatpush.bf16.msrb.mxu2 %v1161_v20 }
 0x2cf   : > { %901 = vmatpush.bf16.msrb.mxu2 %v1160_v23 }
 0x2d0   : > { %v744_v24 = vpop.f32.mrf.mxu0 }
 0x2e3   : > { %785 = vrot.lane.b32.xlu1 %v606_v56, %s1232_s9 }
 0x32d   : > { %v748_v25 = vpop.xlane.xlu2 %747 }
 0x32e   : > { %v755_v26 = vsub.f32 %v737_v14, %v748_v25  ;;  %v1159_v25 = vld [vmem:[%s1572_s5 + $0x20] sm:$0xff] }
 0x32f   : > { %902 = vmatpush.bf16.msrb.mxu2 %v1159_v25 }
 0x330   : > { %v758_v27 = vmul.f32 1.442695, %v755_v26 }
 0x332   : > { %1199 = vpow2.f32 %v758_v27  ;;  %v1158_v27 = vld [vmem:[%s1572_s5 + $0x18] sm:$0xff] }
 0x333   : > { %903 = vmatpush.bf16.msrb.mxu2 %v1158_v27 }
 0x335   : > { %v751_v28 = vpop.xlane.xlu1 %750  ;;  %v641_v34 = vpop.xlane.xlu2 %640 }
 0x336   : > { %v756_v29 = vsub.f32 %v739_v17, %v751_v28  ;;  %v649_v40 = vsub.f32 %v629_v10, %v641_v34 }
 0x338   : > { %v1200_v30 = vpop.eup %1199  ;;  %v760_v31 = vmul.f32 1.442695, %v756_v29  ;;  %v652_v43 = vmul.f32 1.442695, %v649_v40  ;;  %v1157_v29 = vld [vmem:[%s1572_s5 + $0x10] sm:$0xff] }
 0x339   : > { %v764_v32 = vsel %vm638_vm12, %v1200_v30, 0.0  ;;  %904 = vmatpush.bf16.msrb.mxu2 %v1157_v29 }
 0x33a   : > { %765 = vadd.xlane.f32.xlu0 %v764_v32  ;;  %1201 = vpow2.f32 %v760_v31  ;;  %v1155_v32 = vld [vmem:[%s1572_s5] sm:$0xff] }
 0x33d   : > { %v644_v33 = vpop.xlane.xlu1 %643  ;;  %v754_v22 = vpop.xlane.xlu0 %753 }
 0x33e   : > { %v650_v35 = vsub.f32 %v631_v11, %v644_v33  ;;  %v757_v36 = vsub.f32 %v742_v19, %v754_v22 }
 0x340   : > { %v654_v37 = vmul.f32 1.442695, %v650_v35  ;;  %v762_v38 = vmul.f32 1.442695, %v757_v36  ;;  %v1202_v39 = vpop.eup %1201 }
 0x341   : > { %v767_v42 = vsel %vm638_vm12, %v1202_v39, 0.0 }
 0x342   : > { %1203 = vpow2.f32 %v654_v37  ;;  %647 = vmax.xlane.f32.xlu0 %v646_v41  ;;  %768 = vadd.xlane.f32.xlu2 %v767_v42 }
 0x343   : > { %1205 = vpow2.f32 %v762_v38 }
 0x344   : > { %1207 = vpow2.f32 %v652_v43 }
 0x348   : > { %v1204_v44 = vpop.eup %1203 }
 0x349   : > { %v1206_v45 = vpop.eup %1205  ;;  %v661_v46 = vsel %vm638_vm12, %v1204_v44, 0.0 }
 0x34a   : > { %662 = vadd.xlane.f32.xlu1 %v661_v46  ;;  %v770_v47 = vsel %vm645_vm13, %v1206_v45, 0.0  ;;  %v1208_v48 = vpop.eup %1207 }
 0x34b   : > { %771 = vadd.xlane.f32.xlu0 %v770_v47  ;;  %v658_v49 = vsel %vm638_vm12, %v1208_v48, 0.0 }
 0x353   : > { %659 = vadd.xlane.f32.xlu0 %v658_v49 }
 0x355   : > { %v786_v50 = vpop.permute.xlu1 %785 }
 0x356   : > { %v795_v51 = vand.u32 %v786_v50, %v1485_v58 }
 0x358   : > { %803 = vmatpush.bf16.msrb.mxu1 %v795_v51 }
 0x35a   : > { %783 = vrot.lane.b32.xlu2 %v1490_v0, %s1232_s9 }
 0x3ad   : > { %v766_v52 = vpop.xlane.xlu0 %765 }
 0x3ae   : > { %1209 = vrcp.f32 %v766_v52 }
 0x3b4   : > { %v1210_v57 = vpop.eup %1209 }
 0x3b5   : > { %v648_v53 = vpop.xlane.xlu0 %647  ;;  %v769_v54 = vpop.xlane.xlu2 %768  ;;  %v776_v60 = vmul.f32 %v1210_v57, %v1200_v30  ;;  %v1156_v30 = vld [vmem:[%s1572_s5 + $0x8] sm:$0xff] }
 0x3b6   : > { %v651_v55 = vsub.f32 %v1499_v15, %v648_v53  ;;  %1211 = vrcp.f32 %v769_v54  ;;  %905 = vmatpush.bf16.msrb.mxu2 %v1156_v30 }
 0x3b8   : > { %v656_v56 = vmul.f32 1.442695, %v651_v55 }
 0x3ba   : > { %1213 = vpow2.f32 %v656_v56  ;;  %906 = vmatpush.bf16.msrb.mxu2 %v1155_v32 }
 0x3bc   : > { %v1212_v59 = vpop.eup %1211 }
 0x3bd   : > { %v777_v61 = vmul.f32 %v1212_v59, %v1202_v39  ;;  %v784_v62 = vpop.permute.xlu2 %783  ;;  %v663_v1 = vpop.xlane.xlu1 %662  ;;  %v928_v59 = vld [vmem:[%s278_s10 + $0x8] sm:$0x1] }
 0x3be   : > { %v772_v63 = vpop.xlane.xlu0 %771  ;;  %804 = vmatpush.bf16.msrb.mxu1 %v784_v62 }
 0x3bf   : > { %v779_v12 = vpack.c.bf16 %v777_v61, %v776_v60  ;;  %1215 = vrcp.f32 %v772_v63 }
 0x3c0   : > { %v1214_v58 = vpop.eup %1213  ;;  %1217 = vrcp.f32 %v663_v1 }
 0x3c1   : > { %v664_v0 = vsel %vm645_vm13, %v1214_v58, 0.0  ;;  %1095 = vmatmul.msk.bf16.vlgmr.msrb.gmra.mxu1 %vm638_vm12, %v779_v12 }
 0x3c2   : > { %665 = vadd.xlane.f32.xlu0 %v664_v0 }
 0x3c5   : > { %v1216_v6 = vpop.eup %1215 }
 0x3c6   : > { %v660_v4 = vpop.xlane.xlu0 %659  ;;  %v1218_v7 = vpop.eup %1217  ;;  %v778_v8 = vmul.f32 %v1216_v6, %v1206_v45  ;;  %v848_v45 = vld [vmem:[%s1573_s6] sm:$0x1] }
 0x3c7   : > { %1219 = vrcp.f32 %v660_v4  ;;  %v671_v10 = vmul.f32 %v1218_v7, %v1204_v44  ;;  %v849_v46 = vunpack.c.l.bf16 %v848_v45 }
 0x3c8   : > { %v780_v13 = vpack.c.bf16 %v778_v8, %v778_v8 }
 0x3cd   : > { %v1220_v9 = vpop.eup %1219 }
 0x3ce   : > { %v670_v11 = vmul.f32 %v1220_v9, %v1208_v48  ;;  %v850_v48 = vperm.slane %v849_v46, 0 }
 0x3d0   : > { %v673_v15 = vpack.c.bf16 %v671_v10, %v670_v11 }
 0x3d1   : > { %1096 = vmatmul.msk.bf16.gmra.mxu1 %vm638_vm12, %v780_v13 }
 0x3d2   : > { %1091 = vmatmul.msk.bf16.vlgmr.msrb.gmra.mxu3 %vm638_vm12, %v673_v15 }
 0x435   : > { %v666_v14 = vpop.xlane.xlu0 %665 }
 0x436   : > { %1221 = vrcp.f32 %v666_v14 }
 0x43c   : > { %v1222_v16 = vpop.eup %1221 }
 0x43d   : > { %v672_v17 = vmul.f32 %v1222_v16, %v1214_v58 }
 0x43e   : > { %v806_v21 = vpop.f32.mrf.mxu1 }
 0x43f   : > { %v674_v19 = vpack.c.bf16 %v672_v17, %v672_v17 }
 0x441   : > { %1092 = vmatmul.msk.bf16.gmra.mxu3 %vm638_vm12, %v674_v19 }
 0x446   : > { %v808_v24 = vpop.f32.mrf.mxu1 }
 0x447   : > { %v1184_v26 = vpack.i.bf16 %v808_v24, %v806_v21 }
 0x449   : > { %1185 = vrot.lane.b32.xlu2 %v1184_v26, %s1232_s9 }
 0x44e   : > { %v811_v28 = vpop.f32.mrf.mxu1 }
 0x44f   : > { %822 = vrot.lane.b32.xlu0 %v811_v28, %s1232_s9 }
 0x455   : > { %v695_v33 = vpop.f32.mrf.mxu3 }
 0x456   : > { %v813_v31 = vpop.f32.mrf.mxu1 }
 0x45d   : > { %v697_v36 = vpop.f32.mrf.mxu3 }
 0x4a3   : > { %v1186_v22 = vpop.permute.xlu2 %1185 }
 0x4a4   : > { %v1188_v34 = vunpack.i.h.bf16 %v1186_v22  ;;  %v1187_v35 = vunpack.i.l.bf16 %v1186_v22 }
 0x4a6   : > { %v827_v37 = vsel %vm607_vm11, %v695_v33, %v1187_v35  ;;  %v828_v38 = vsel %vm607_vm11, %v697_v36, %v1188_v34 }
 0x4a7   : > { %v830_v39 = vpack.c.bf16 %v828_v38, %v827_v37 }
 0x4a9   : > { %907 = vmatmul.bf16.vlgmr.msrb.gmra.mxu2 %v830_v39 }
 0x4c1   : > { %v823_v40 = vpop.permute.xlu0 %822 }
 0x4c4   : > { %v700_v41 = vpop.f32.mrf.mxu3 }
 0x4c5   : > { %v829_v42 = vsel %vm607_vm11, %v700_v41, %v823_v40 }
 0x4c6   : > { %v831_v43 = vpack.c.bf16 %v829_v42, %v829_v42 }
 0x4c8   : > { %912 = vmatmul.bf16.gmra.mxu2 %v831_v43 }
 0x4cc   : > { %v702_v44 = vpop.f32.mrf.mxu3 }
 0x52c   : > { %v908_v47 = vpop.f32.mrf.mxu2 }
 0x52d   : > { %v909_v49 = vadd.f32 %v908_v47, %v850_v48 }
 0x52f   : > { %v917_v52 = vadd.f32 %v1290_v2, %v909_v49 }
 0x534   : > { %v910_v50 = vpop.f32.mrf.mxu2 }
 0x535   : > { %v911_v51 = vadd.f32 %v910_v50, %v850_v48 }
 0x537   : > { %v918_v53 = vadd.f32 %v1297_v5, %v911_v51 }
 0x539   : > { %v1170_v54 = vpack.c.bf16 %v918_v53, %v917_v52 }
 0x53b   : > { %1171 = vst [vmem:[%s278_s10] sm:$0xff] %v1170_v54  }
 0x54b   : > { %v913_v55 = vpop.f32.mrf.mxu2 }
 0x54c   : > { %v914_v56 = vadd.f32 %v913_v55, %v850_v48 }
 0x54e   : > { %v919_v57 = vadd.f32 %v914_v56, %v1292_v3 }
 0x550   : > { %v922_v60 = vpack.c.bf16 %v919_v57, %v919_v57 }
 0x552   : > { %v929_v61 = vsel %vm927_vm15, %v922_v60, %v928_v59 }
 0x553   : > { %930 = vst [vmem:[%s278_s10 + $0x8] sm:$0x1] %v929_v61  ;;  %v915_v2 = vpop.f32.mrf.mxu2 }
 0x554 PF: > { %s17_s24 = sadd.s32 1, %s1229_s24  }
 0x555   : > { %p14_p4 = scmp.ge.s32.totalorder %s17_s24, 4  }
 0x557   :  { %16 = sbr.rel (!%p14_p4) target bundleno = 1 (0x1), region = 78 }

</bundles_post_ra>
